<compile_context>
chip_gen: v5e
topology: v5e:2x2
jax: 0.10.0
libtpu: 0.0.40
codegen_flags: <defaults>
</compile_context>

<pallas_src>
import math
import functools
import numpy as np
import jax
import jax.numpy as jnp
from jax import lax
from jax.experimental import pallas as pl
from jax.experimental.pallas import tpu as pltpu

# ----------------------------------------------------------------------------
# Config (mirrors the json config the torch module would load): m=4
# ----------------------------------------------------------------------------
M_ITEMS = 4
INPUT_DIM = 2 ** M_ITEMS            # 16
VOCAB_SIZE = 2 ** M_ITEMS + 2       # 18
MAX_SEQ_LEN = VOCAB_SIZE - 1        # 17
HIDDEN = 32
N_HEADS = 4
HEAD_DIM = HIDDEN // N_HEADS        # 8
N_LAYERS = 2
FFN_DIM = 2048                      # nn.TransformerDecoderLayer default dim_feedforward
LN_EPS = 1e-5

VPAD = 128                          # padded logits width (lane-dense output stores)
MAX_TB = 8                          # max batch elements fused per grid step


# ----------------------------------------------------------------------------
# Fused forward kernel: one grid step processes TB batch elements end-to-end.
# ----------------------------------------------------------------------------
def _fused_forward_kernel(S, SP, TB,
                          cond_ref, xp_ref,
                          in_w_ref, in_b_ref,
                          wqkv_ref, bqkv_ref, wo_ref, bo_ref,
                          ca_wv_ref, ca_bv_ref, ca_wo_ref, ca_bo_ref,
                          ln_g_ref, ln_b_ref,
                          w1_ref, b1_ref, w2_ref, b2_ref,
                          fin_g_ref, fin_b_ref, out_w_ref, out_b_ref,
                          logits_ref, kemb_ref, attn_ref):
    D, H, dh = HIDDEN, N_HEADS, HEAD_DIM
    rows = TB * SP
    scale = 1.0 / math.sqrt(dh)
    bf16, f32 = jnp.bfloat16, jnp.float32

    def ln(v, g, b):
        mean = jnp.mean(v, axis=-1, keepdims=True)
        var = jnp.mean((v - mean) ** 2, axis=-1, keepdims=True)
        return (v - mean) * lax.rsqrt(var + LN_EPS) * g + b

    def mm(a, w):   # bf16 MXU inputs, f32 accumulate
        return jnp.dot(a.astype(bf16), w, preferred_element_type=f32)

    def stack_rows(parts):   # concat along sublanes (SP is a multiple of 8)
        return parts[0] if len(parts) == 1 else jnp.concatenate(parts, axis=0)

    # stack TB batch elements along the row (sublane) axis: (rows, D)
    x = stack_rows([xp_ref[b] for b in range(TB)])
    cond = stack_rows([cond_ref[b] for b in range(TB)])      # (TB, INPUT_DIM)

    # ----- input projection -> memory (K_embedding) -----
    kemb = mm(cond, in_w_ref[...]) + in_b_ref[...]           # (TB, D)
    for b in range(TB):
        kemb_ref[b] = kemb[b:b + 1, :].astype(kemb_ref.dtype)

    # causal mask over the (unpadded-key) axis, shared by all batch/heads
    row_i = lax.broadcasted_iota(jnp.int32, (SP, SP), 0)
    col_i = lax.broadcasted_iota(jnp.int32, (SP, SP), 1)
    mask = (col_i <= row_i) & (col_i < S)

    for l in range(N_LAYERS):
        # ---------------- self attention: fused QKV projection ----------------
        qkv = mm(x, wqkv_ref[l]) + bqkv_ref[l]               # (rows, 3D) f32
        qb = qkv.astype(bf16)
        sa_blocks = []
        for b in range(TB):
            r0 = b * SP
            hv_heads = []
            for h in range(H):
                q = qb[r0:r0 + SP, h * dh:(h + 1) * dh]              # (SP, dh)
                k = qb[r0:r0 + SP, D + h * dh:D + (h + 1) * dh]
                v = qb[r0:r0 + SP, 2 * D + h * dh:2 * D + (h + 1) * dh]
                # scores (SP, SP): NT matmul, no explicit transpose materialized
                s = lax.dot_general(q, k, (((1,), (1,)), ((), ())),
                                    preferred_element_type=f32) * scale
                s = jnp.where(mask, s, -jnp.inf)
                s = s - jnp.max(s, axis=-1, keepdims=True)
                p = jnp.exp(s)
                p = p / jnp.sum(p, axis=-1, keepdims=True)           # exact softmax
                attn_ref[b, l, h] = p.astype(attn_ref.dtype)
                hv_heads.append(jnp.dot(p.astype(bf16), v,
                                        preferred_element_type=f32))  # (SP, dh)
            sa_blocks.append(jnp.concatenate(hv_heads, axis=-1))      # (SP, D)
        sa = stack_rows(sa_blocks)                                     # (rows, D)
        # fused head-concat output projection: one (rows, D) @ (D, D)
        sa = mm(sa, wo_ref[l]) + bo_ref[l]
        x = ln(x + sa, ln_g_ref[l, 0:1, :], ln_b_ref[l, 0:1, :])

        # ------- cross attention: single memory token -> softmax weights == 1 -------
        v2 = mm(kemb, ca_wv_ref[l]) + ca_bv_ref[l]           # (TB, D)
        ca = mm(v2, ca_wo_ref[l]) + ca_bo_ref[l]             # (TB, D)
        ca_rows = stack_rows([jnp.broadcast_to(ca[b:b + 1, :], (SP, D))
                              for b in range(TB)])           # (rows, D)
        x = ln(x + ca_rows, ln_g_ref[l, 1:2, :], ln_b_ref[l, 1:2, :])

        # ---------------- feed-forward (relu) ----------------
        h1 = jnp.maximum(mm(x, w1_ref[l]) + b1_ref[l], 0.0)  # (rows, F)
        ff = mm(h1, w2_ref[l]) + b2_ref[l]                   # (rows, D)
        x = ln(x + ff, ln_g_ref[l, 2:3, :], ln_b_ref[l, 2:3, :])

    # ---------------- final LayerNorm + padded output projection ----------------
    x = ln(x, fin_g_ref[...], fin_b_ref[...])
    logits = mm(x, out_w_ref[...]) + out_b_ref[...]          # (rows, VPAD)
    for b in range(TB):
        logits_ref[b] = logits[b * SP:(b + 1) * SP, :].astype(logits_ref.dtype)


# ----------------------------------------------------------------------------
# Wrapper: weight re-packing + pallas_call
# ----------------------------------------------------------------------------
def _prepare_kernel_params(params):
    D = HIDDEN
    bf16 = jnp.bfloat16
    st = lambda key: jnp.stack([lp[key] for lp in params['layers']])

    V1 = VOCAB_SIZE - 1
    out_w = jnp.zeros((D, VPAD), jnp.float32).at[:, :V1].set(params['output_proj_w'])
    out_b = jnp.zeros((1, VPAD), jnp.float32).at[:, :V1].set(params['output_proj_b'])

    return dict(
        in_w=params['input_proj_w'].astype(bf16),
        in_b=params['input_proj_b'].reshape(1, D),
        wqkv=st('sa_in_w').astype(bf16),                    # (L, D, 3D) fused QKV
        bqkv=st('sa_in_b'),                                 # (L, 1, 3D)
        wo=st('sa_out_w').astype(bf16),                     # (L, D, D)
        bo=st('sa_out_b'),                                  # (L, 1, D)
        ca_wv=st('ca_in_w')[:, :, 2 * D:3 * D].astype(bf16),
        ca_bv=st('ca_in_b')[:, :, 2 * D:3 * D],
        ca_wo=st('ca_out_w').astype(bf16),
        ca_bo=st('ca_out_b'),
        ln_g=st('ln_g'), ln_b=st('ln_b'),
        w1=st('w1').astype(bf16), b1=st('b1'),
        w2=st('w2').astype(bf16), b2=st('b2'),
        fin_g=params['final_ln_g'].reshape(1, D),
        fin_b=params['final_ln_b'].reshape(1, D),
        out_w=out_w.astype(bf16), out_b=out_b,
    )


def model_forward(params, conditionals, input_seq):
    """Returns (output (S,B,V-1), K_embedding (B,D), attn_weights list of (B,H,S,S))."""
    B, S = input_seq.shape
    D = HIDDEN
    assert 1 <= S <= MAX_SEQ_LEN
    SP = ((S + 7) // 8) * 8                      # sublane-aligned row count actually computed
    TB = max(1, min(MAX_TB, B // 2))             # fuse TB batch elems per step, keep grid >= 2
    G = (B + TB - 1) // TB
    Bp = G * TB

    # glue: embedding lookup + sinusoidal positional encoding + pad to (Bp, SP, D)
    x = jnp.take(params['embedding'], input_seq, axis=0) + params['pe'][None, :S, :]
    xp = jnp.zeros((Bp, SP, D), jnp.float32).at[:B, :S, :].set(x.astype(jnp.float32))
    cond3 = jnp.zeros((Bp, 1, INPUT_DIM), jnp.float32).at[:B, 0, :].set(
        conditionals.astype(jnp.float32))

    kp = _prepare_kernel_params(params)
    kernel = functools.partial(_fused_forward_kernel, S, SP, TB)

    def cspec(shape):                            # resident weight: constant index map
        r = len(shape)
        return pl.BlockSpec(shape, lambda b, _r=r: (0,) * _r)

    weight_arrays = (kp['in_w'], kp['in_b'],
                     kp['wqkv'], kp['bqkv'], kp['wo'], kp['bo'],
                     kp['ca_wv'], kp['ca_bv'], kp['ca_wo'], kp['ca_bo'],
                     kp['ln_g'], kp['ln_b'],
                     kp['w1'], kp['b1'], kp['w2'], kp['b2'],
                     kp['fin_g'], kp['fin_b'], kp['out_w'], kp['out_b'])

    in_specs = [
        pl.BlockSpec((TB, 1, INPUT_DIM), lambda b: (b, 0, 0)),
        pl.BlockSpec((TB, SP, D), lambda b: (b, 0, 0)),
    ] + [cspec(a.shape) for a in weight_arrays]

    out_shapes = (
        jax.ShapeDtypeStruct((Bp, SP, VPAD), jnp.float32),
        jax.ShapeDtypeStruct((Bp, 1, D), jnp.float32),
        jax.ShapeDtypeStruct((Bp, N_LAYERS, N_HEADS, SP, SP), jnp.float32),
    )
    out_specs = (
        pl.BlockSpec((TB, SP, VPAD), lambda b: (b, 0, 0)),
        pl.BlockSpec((TB, 1, D), lambda b: (b, 0, 0)),
        pl.BlockSpec((TB, N_LAYERS, N_HEADS, SP, SP), lambda b: (b, 0, 0, 0, 0)),
    )

    logits_pad, kemb, attn = pl.pallas_call(
        kernel,
        out_shape=out_shapes,
        grid=(G,),
        in_specs=in_specs,
        out_specs=out_specs,
        compiler_params=pltpu.CompilerParams(dimension_semantics=("parallel",)),
    )(cond3, xp, *weight_arrays)

    out = logits_pad[:B, :S, :VOCAB_SIZE - 1].transpose(1, 0, 2)     # (S, B, V-1)
    K_embedding = kemb[:B, 0, :]
    attn_weights = [attn[:B, l, :, :S, :S] for l in range(N_LAYERS)]
    return out, K_embedding, attn_weights


# ----------------------------------------------------------------------------
# Parameter setup (mirrors the torch module layout)
# ----------------------------------------------------------------------------
def make_pos_encoding(hidden_dim, max_len):
    position = np.arange(max_len, dtype=np.float32)[:, None]
    div_term = np.exp(np.arange(0, hidden_dim, 2, dtype=np.float32) *
                      (-math.log(10000.0) / hidden_dim))
    pe = np.zeros((max_len, hidden_dim), dtype=np.float32)
    pe[:, 0::2] = np.sin(position * div_term)
    pe[:, 1::2] = np.cos(position * div_term)
    return jnp.asarray(pe)


def init_params(key):
    D, F, V = HIDDEN, FFN_DIM, VOCAB_SIZE

    def nrm(k, shape, std=0.05):
        return std * jax.random.normal(k, shape, dtype=jnp.float32)

    keys = iter(jax.random.split(key, 16 + 16 * N_LAYERS))
    params = {
        'embedding': nrm(next(keys), (V, D), 1.0),
        'pe': make_pos_encoding(D, MAX_SEQ_LEN),
        'input_proj_w': nrm(next(keys), (INPUT_DIM, D)),
        'input_proj_b': nrm(next(keys), (D,), 0.02),
        'output_proj_w': nrm(next(keys), (D, V - 1)),
        'output_proj_b': nrm(next(keys), (V - 1,), 0.02),
        'final_ln_g': jnp.ones((D,), jnp.float32),
        'final_ln_b': jnp.zeros((D,), jnp.float32),
        'layers': [],
    }
    for _ in range(N_LAYERS):
        params['layers'].append({
            'sa_in_w': nrm(next(keys), (D, 3 * D)),
            'sa_in_b': nrm(next(keys), (1, 3 * D), 0.02),
            'sa_out_w': nrm(next(keys), (D, D)),
            'sa_out_b': nrm(next(keys), (1, D), 0.02),
            'ca_in_w': nrm(next(keys), (D, 3 * D)),
            'ca_in_b': nrm(next(keys), (1, 3 * D), 0.02),
            'ca_out_w': nrm(next(keys), (D, D)),
            'ca_out_b': nrm(next(keys), (1, D), 0.02),
            'ln_g': jnp.ones((3, D), jnp.float32),
            'ln_b': jnp.zeros((3, D), jnp.float32),
            'w1': nrm(next(keys), (D, F)),
            'b1': nrm(next(keys), (1, F), 0.02),
            'w2': nrm(next(keys), (F, D)),
            'b2': nrm(next(keys), (1, D), 0.02),
        })
    return params


# ----------------------------------------------------------------------------
# Pure-JAX reference (for correctness sanity check, all f32)
# ----------------------------------------------------------------------------
def _ref_ln(x, g, b):
    mean = jnp.mean(x, axis=-1, keepdims=True)
    var = jnp.mean((x - mean) ** 2, axis=-1, keepdims=True)
    return (x - mean) / jnp.sqrt(var + LN_EPS) * g + b


def ref_forward(params, conditionals, input_seq):
    B, S = input_seq.shape
    D, H = HIDDEN, N_HEADS
    dh = D // H
    x = jnp.take(params['embedding'], input_seq, axis=0) + params['pe'][None, :S, :]
    x = x.astype(jnp.float32)
    K = conditionals @ params['input_proj_w'] + params['input_proj_b']
    mem = K.reshape(B, 1, D)
    attns = []
    mask = jnp.tril(jnp.ones((S, S), bool))
    for lp in params['layers']:
        qkv = x @ lp['sa_in_w'] + lp['sa_in_b'][0]
        q, k, v = jnp.split(qkv, 3, axis=-1)
        q = q.reshape(B, S, H, dh).transpose(0, 2, 1, 3)
        k = k.reshape(B, S, H, dh).transpose(0, 2, 1, 3)
        v = v.reshape(B, S, H, dh).transpose(0, 2, 1, 3)
        s = jnp.einsum('bhqd,bhkd->bhqk', q, k) / math.sqrt(dh)
        s = jnp.where(mask, s, -jnp.inf)
        p = jax.nn.softmax(s, axis=-1)
        attns.append(p)
        sa = jnp.einsum('bhqk,bhkd->bhqd', p, v).transpose(0, 2, 1, 3).reshape(B, S, D)
        sa = sa @ lp['sa_out_w'] + lp['sa_out_b'][0]
        x = _ref_ln(x + sa, lp['ln_g'][0], lp['ln_b'][0])
        # cross-attn over a single memory token -> weights are 1, output = V
        v2 = mem[:, 0] @ lp['ca_in_w'][:, 2 * D:] + lp['ca_in_b'][0, 2 * D:]
        ca = jnp.broadcast_to(v2[:, None, :], (B, S, D))
        ca = ca @ lp['ca_out_w'] + lp['ca_out_b'][0]
        x = _ref_ln(x + ca, lp['ln_g'][1], lp['ln_b'][1])
        ff = jnp.maximum(x @ lp['w1'] + lp['b1'][0], 0.0) @ lp['w2'] + lp['b2'][0]
        x = _ref_ln(x + ff, lp['ln_g'][2], lp['ln_b'][2])
    x = _ref_ln(x, params['final_ln_g'], params['final_ln_b'])
    out = x @ params['output_proj_w'] + params['output_proj_b']
    return out.transpose(1, 0, 2), K, attns


# ----------------------------------------------------------------------------
if __name__ == "__main__":
    key = jax.random.PRNGKey(0)
    pk, ck, sk = jax.random.split(key, 3)
    params = init_params(pk)

    B, S = 2, 8
    conditionals = jax.random.uniform(ck, (B, INPUT_DIM), dtype=jnp.float32)
    input_seq = jax.random.randint(sk, (B, S), 0, VOCAB_SIZE, dtype=jnp.int32)

    fwd = jax.jit(model_forward)
    out, k_emb, attns = fwd(params, conditionals, input_seq)
    jax.block_until_ready((out, k_emb, attns))

    # sanity check against pure-JAX f32 reference (tolerance covers bf16 MXU inputs)
    ref_out, ref_k, ref_attns = ref_forward(params, conditionals, input_seq)
    np.testing.assert_allclose(np.asarray(k_emb), np.asarray(ref_k), rtol=5e-2, atol=5e-2)
    np.testing.assert_allclose(np.asarray(out), np.asarray(ref_out), rtol=5e-2, atol=5e-2)
    for a, ra in zip(attns, ref_attns):
        np.testing.assert_allclose(np.asarray(a), np.asarray(ra), rtol=5e-2, atol=5e-2)

    assert out.shape == (S, B, VOCAB_SIZE - 1)
    assert k_emb.shape == (B, HIDDEN)
    assert len(attns) == N_LAYERS and attns[0].shape == (B, N_HEADS, S, S)

    # TODO(synk): dropout layers are treated as inference-mode identity (no RNG path).
    print("KERNEL_OK")
</pallas_src>

<mosaic_0001>
module attributes {stable_mosaic.version = 11 : i64} {
  func.func @_fused_forward_kernel(%arg0: i32, %arg1: memref<1x1x16xf32, #tpu.memory_space<vmem>>, %arg2: memref<1x8x32xf32, #tpu.memory_space<vmem>>, %arg3: memref<16x32xbf16, #tpu.memory_space<vmem>>, %arg4: memref<1x32xf32, #tpu.memory_space<vmem>>, %arg5: memref<2x32x96xbf16, #tpu.memory_space<vmem>>, %arg6: memref<2x1x96xf32, #tpu.memory_space<vmem>>, %arg7: memref<2x32x32xbf16, #tpu.memory_space<vmem>>, %arg8: memref<2x1x32xf32, #tpu.memory_space<vmem>>, %arg9: memref<2x32x32xbf16, #tpu.memory_space<vmem>>, %arg10: memref<2x1x32xf32, #tpu.memory_space<vmem>>, %arg11: memref<2x32x32xbf16, #tpu.memory_space<vmem>>, %arg12: memref<2x1x32xf32, #tpu.memory_space<vmem>>, %arg13: memref<2x3x32xf32, #tpu.memory_space<vmem>>, %arg14: memref<2x3x32xf32, #tpu.memory_space<vmem>>, %arg15: memref<2x32x2048xbf16, #tpu.memory_space<vmem>>, %arg16: memref<2x1x2048xf32, #tpu.memory_space<vmem>>, %arg17: memref<2x2048x32xbf16, #tpu.memory_space<vmem>>, %arg18: memref<2x1x32xf32, #tpu.memory_space<vmem>>, %arg19: memref<1x32xf32, #tpu.memory_space<vmem>>, %arg20: memref<1x32xf32, #tpu.memory_space<vmem>>, %arg21: memref<32x128xbf16, #tpu.memory_space<vmem>>, %arg22: memref<1x128xf32, #tpu.memory_space<vmem>>, %arg23: memref<1x8x128xf32, #tpu.memory_space<vmem>>, %arg24: memref<1x1x32xf32, #tpu.memory_space<vmem>>, %arg25: memref<1x2x4x8x8xf32, #tpu.memory_space<vmem>>) attributes {dimension_semantics = [#tpu.dimension_semantics<parallel>], iteration_bounds = array<i64: 2>, scalar_prefetch = 0 : i64, scratch_operands = 0 : i64, tpu.core_type = #tpu.core_type<tc>, window_params = [{transform_indices = @transform_0, window_bounds = array<i64: 1, 1, 16>}, {transform_indices = @transform_1, window_bounds = array<i64: 1, 8, 32>}, {pipeline_mode = #tpu.pipeline_mode<synchronous>, transform_indices = @transform_2, window_bounds = array<i64: 16, 32>}, {pipeline_mode = #tpu.pipeline_mode<synchronous>, transform_indices = @transform_3, window_bounds = array<i64: 1, 32>}, {pipeline_mode = #tpu.pipeline_mode<synchronous>, transform_indices = @transform_4, window_bounds = array<i64: 2, 32, 96>}, {pipeline_mode = #tpu.pipeline_mode<synchronous>, transform_indices = @transform_5, window_bounds = array<i64: 2, 1, 96>}, {pipeline_mode = #tpu.pipeline_mode<synchronous>, transform_indices = @transform_6, window_bounds = array<i64: 2, 32, 32>}, {pipeline_mode = #tpu.pipeline_mode<synchronous>, transform_indices = @transform_7, window_bounds = array<i64: 2, 1, 32>}, {pipeline_mode = #tpu.pipeline_mode<synchronous>, transform_indices = @transform_8, window_bounds = array<i64: 2, 32, 32>}, {pipeline_mode = #tpu.pipeline_mode<synchronous>, transform_indices = @transform_9, window_bounds = array<i64: 2, 1, 32>}, {pipeline_mode = #tpu.pipeline_mode<synchronous>, transform_indices = @transform_10, window_bounds = array<i64: 2, 32, 32>}, {pipeline_mode = #tpu.pipeline_mode<synchronous>, transform_indices = @transform_11, window_bounds = array<i64: 2, 1, 32>}, {pipeline_mode = #tpu.pipeline_mode<synchronous>, transform_indices = @transform_12, window_bounds = array<i64: 2, 3, 32>}, {pipeline_mode = #tpu.pipeline_mode<synchronous>, transform_indices = @transform_13, window_bounds = array<i64: 2, 3, 32>}, {pipeline_mode = #tpu.pipeline_mode<synchronous>, transform_indices = @transform_14, window_bounds = array<i64: 2, 32, 2048>}, {pipeline_mode = #tpu.pipeline_mode<synchronous>, transform_indices = @transform_15, window_bounds = array<i64: 2, 1, 2048>}, {pipeline_mode = #tpu.pipeline_mode<synchronous>, transform_indices = @transform_16, window_bounds = array<i64: 2, 2048, 32>}, {pipeline_mode = #tpu.pipeline_mode<synchronous>, transform_indices = @transform_17, window_bounds = array<i64: 2, 1, 32>}, {pipeline_mode = #tpu.pipeline_mode<synchronous>, transform_indices = @transform_18, window_bounds = array<i64: 1, 32>}, {pipeline_mode = #tpu.pipeline_mode<synchronous>, transform_indices = @transform_19, window_bounds = array<i64: 1, 32>}, {pipeline_mode = #tpu.pipeline_mode<synchronous>, transform_indices = @transform_20, window_bounds = array<i64: 32, 128>}, {pipeline_mode = #tpu.pipeline_mode<synchronous>, transform_indices = @transform_21, window_bounds = array<i64: 1, 128>}, {transform_indices = @transform_22, window_bounds = array<i64: 1, 8, 128>}, {transform_indices = @transform_23, window_bounds = array<i64: 1, 1, 32>}, {transform_indices = @transform_24, window_bounds = array<i64: 1, 2, 4, 8, 8>}]} {
    %c0 = arith.constant 0 : index
    %c0_0 = arith.constant 0 : index
    %c0_1 = arith.constant 0 : index
    %0 = vector.load %arg2[%c0, %c0_0, %c0_1] : memref<1x8x32xf32, #tpu.memory_space<vmem>>, vector<1x8x32xf32>
    %1 = vector.shape_cast %0 : vector<1x8x32xf32> to vector<8x32xf32>
    %c0_2 = arith.constant 0 : index
    %c0_3 = arith.constant 0 : index
    %c0_4 = arith.constant 0 : index
    %2 = vector.load %arg1[%c0_2, %c0_3, %c0_4] : memref<1x1x16xf32, #tpu.memory_space<vmem>>, vector<1x1x16xf32>
    %3 = vector.shape_cast %2 : vector<1x1x16xf32> to vector<1x16xf32>
    %c0_5 = arith.constant 0 : index
    %c0_6 = arith.constant 0 : index
    %4 = vector.load %arg3[%c0_5, %c0_6] : memref<16x32xbf16, #tpu.memory_space<vmem>>, vector<16x32xbf16>
    %5 = arith.truncf %3 : vector<1x16xf32> to vector<1x16xbf16>
    %cst = arith.constant dense<0.000000e+00> : vector<1x32xf32>
    %6 = tpu.matmul %5, %4, %cst {dimension_numbers = #tpu.dot_dimension_numbers<[1], [0], [0], [1], [0, 0, 1, 1], [], []>} : vector<1x16xbf16>, vector<16x32xbf16>, vector<1x32xf32> -> vector<1x32xf32>
    %c0_7 = arith.constant 0 : index
    %c0_8 = arith.constant 0 : index
    %7 = vector.load %arg4[%c0_7, %c0_8] : memref<1x32xf32, #tpu.memory_space<vmem>>, vector<1x32xf32>
    %8 = arith.addf %6, %7 : vector<1x32xf32>
    %c0_9 = arith.constant 0 : index
    %c0_10 = arith.constant 0 : index
    %c0_11 = arith.constant 0 : index
    %9 = vector.load %arg24[%c0_9, %c0_10, %c0_11] : memref<1x1x32xf32, #tpu.memory_space<vmem>>, vector<1x1x32xf32>
    %10 = vector.shape_cast %9 : vector<1x1x32xf32> to vector<1x32xf32>
    %11 = vector.shape_cast %8 : vector<1x32xf32> to vector<1x1x32xf32>
    tpu.vector_store %arg24[%c0_9, %c0_10, %c0_11], %11 {strides = array<i32>} : memref<1x1x32xf32, #tpu.memory_space<vmem>>, vector<1x1x32xf32>,
    %12 = tpu.iota {dimensions = array<i32: 0>} : vector<8x8xi32>
    %13 = tpu.iota {dimensions = array<i32: 1>} : vector<8x8xi32>
    %14 = arith.cmpi sle, %13, %12 : vector<8x8xi32>
    %c8_i32 = arith.constant 8 : i32
    %15 = vector.broadcast %c8_i32 : i32 to vector<8x8xi32>
    %16 = arith.cmpi slt, %13, %15 : vector<8x8xi32>
    %17 = arith.andi %14, %16 : vector<8x8xi1>
    %c0_12 = arith.constant 0 : index
    %c0_13 = arith.constant 0 : index
    %c0_14 = arith.constant 0 : index
    %18 = vector.load %arg5[%c0_12, %c0_13, %c0_14] : memref<2x32x96xbf16, #tpu.memory_space<vmem>>, vector<1x32x96xbf16>
    %19 = vector.shape_cast %18 : vector<1x32x96xbf16> to vector<32x96xbf16>
    %20 = arith.truncf %1 : vector<8x32xf32> to vector<8x32xbf16>
    %cst_15 = arith.constant dense<0.000000e+00> : vector<8x96xf32>
    %21 = tpu.matmul %20, %19, %cst_15 {dimension_numbers = #tpu.dot_dimension_numbers<[1], [0], [0], [1], [0, 0, 1, 1], [], []>} : vector<8x32xbf16>, vector<32x96xbf16>, vector<8x96xf32> -> vector<8x96xf32>
    %c0_16 = arith.constant 0 : index
    %c0_17 = arith.constant 0 : index
    %c0_18 = arith.constant 0 : index
    %22 = vector.load %arg6[%c0_16, %c0_17, %c0_18] : memref<2x1x96xf32, #tpu.memory_space<vmem>>, vector<1x1x96xf32>
    %23 = vector.shape_cast %22 : vector<1x1x96xf32> to vector<1x96xf32>
    %24 = vector.broadcast %23 : vector<1x96xf32> to vector<8x96xf32>
    %25 = arith.addf %21, %24 : vector<8x96xf32>
    %26 = arith.truncf %25 : vector<8x96xf32> to vector<8x96xbf16>
    %27 = vector.extract_strided_slice %26 {offsets = [0, 0], sizes = [8, 8], strides = [1, 1]} : vector<8x96xbf16> to vector<8x8xbf16>
    %28 = vector.extract_strided_slice %26 {offsets = [0, 32], sizes = [8, 8], strides = [1, 1]} : vector<8x96xbf16> to vector<8x8xbf16>
    %29 = vector.extract_strided_slice %26 {offsets = [0, 64], sizes = [8, 8], strides = [1, 1]} : vector<8x96xbf16> to vector<8x8xbf16>
    %cst_19 = arith.constant dense<0.000000e+00> : vector<8x8xf32>
    %30 = tpu.matmul %27, %28, %cst_19 {dimension_numbers = #tpu.dot_dimension_numbers<[1], [1], [0], [0], [0, 0, 1, 0], [], []>} : vector<8x8xbf16>, vector<8x8xbf16>, vector<8x8xf32> -> vector<8x8xf32>
    %cst_20 = arith.constant 0.353553385 : f32
    %31 = vector.broadcast %cst_20 : f32 to vector<8x8xf32>
    %32 = arith.mulf %30, %31 : vector<8x8xf32>
    %cst_21 = arith.constant 0xFF800000 : f32
    %33 = vector.broadcast %cst_21 : f32 to vector<8x8xf32>
    %34 = arith.select %17, %32, %33 : vector<8x8xi1>, vector<8x8xf32>
    %cst_22 = arith.constant dense<0xFF800000> : vector<8xf32>
    %35 = vector.multi_reduction <maximumf>, %34, %cst_22 [1] : vector<8x8xf32> to vector<8xf32>
    %36 = vector.shape_cast %35 : vector<8xf32> to vector<8x1xf32>
    %37 = vector.broadcast %36 : vector<8x1xf32> to vector<8x8xf32>
    %38 = arith.subf %34, %37 : vector<8x8xf32>
    %39 = math.exp %38 : vector<8x8xf32>
    %cst_23 = arith.constant dense<0.000000e+00> : vector<8xf32>
    %40 = vector.multi_reduction <add>, %39, %cst_23 [1] : vector<8x8xf32> to vector<8xf32>
    %41 = vector.shape_cast %40 : vector<8xf32> to vector<8x1xf32>
    %42 = vector.broadcast %41 : vector<8x1xf32> to vector<8x8xf32>
    %43 = arith.divf %39, %42 : vector<8x8xf32>
    %c0_24 = arith.constant 0 : index
    %c0_25 = arith.constant 0 : index
    %c0_26 = arith.constant 0 : index
    %c0_27 = arith.constant 0 : index
    %c0_28 = arith.constant 0 : index
    %44 = vector.load %arg25[%c0_24, %c0_25, %c0_26, %c0_27, %c0_28] : memref<1x2x4x8x8xf32, #tpu.memory_space<vmem>>, vector<1x1x1x8x8xf32>
    %45 = vector.shape_cast %44 : vector<1x1x1x8x8xf32> to vector<8x8xf32>
    %46 = vector.shape_cast %43 : vector<8x8xf32> to vector<1x1x1x8x8xf32>
    tpu.vector_store %arg25[%c0_24, %c0_25, %c0_26, %c0_27, %c0_28], %46 {strides = array<i32>} : memref<1x2x4x8x8xf32, #tpu.memory_space<vmem>>, vector<1x1x1x8x8xf32>,
    %47 = arith.truncf %43 : vector<8x8xf32> to vector<8x8xbf16>
    %cst_29 = arith.constant dense<0.000000e+00> : vector<8x8xf32>
    %48 = tpu.matmul %47, %29, %cst_29 {dimension_numbers = #tpu.dot_dimension_numbers<[1], [0], [0], [1], [0, 0, 1, 1], [], []>} : vector<8x8xbf16>, vector<8x8xbf16>, vector<8x8xf32> -> vector<8x8xf32>
    %49 = vector.extract_strided_slice %26 {offsets = [0, 8], sizes = [8, 8], strides = [1, 1]} : vector<8x96xbf16> to vector<8x8xbf16>
    %50 = vector.extract_strided_slice %26 {offsets = [0, 40], sizes = [8, 8], strides = [1, 1]} : vector<8x96xbf16> to vector<8x8xbf16>
    %51 = vector.extract_strided_slice %26 {offsets = [0, 72], sizes = [8, 8], strides = [1, 1]} : vector<8x96xbf16> to vector<8x8xbf16>
    %cst_30 = arith.constant dense<0.000000e+00> : vector<8x8xf32>
    %52 = tpu.matmul %49, %50, %cst_30 {dimension_numbers = #tpu.dot_dimension_numbers<[1], [1], [0], [0], [0, 0, 1, 0], [], []>} : vector<8x8xbf16>, vector<8x8xbf16>, vector<8x8xf32> -> vector<8x8xf32>
    %cst_31 = arith.constant 0.353553385 : f32
    %53 = vector.broadcast %cst_31 : f32 to vector<8x8xf32>
    %54 = arith.mulf %52, %53 : vector<8x8xf32>
    %cst_32 = arith.constant 0xFF800000 : f32
    %55 = vector.broadcast %cst_32 : f32 to vector<8x8xf32>
    %56 = arith.select %17, %54, %55 : vector<8x8xi1>, vector<8x8xf32>
    %cst_33 = arith.constant dense<0xFF800000> : vector<8xf32>
    %57 = vector.multi_reduction <maximumf>, %56, %cst_33 [1] : vector<8x8xf32> to vector<8xf32>
    %58 = vector.shape_cast %57 : vector<8xf32> to vector<8x1xf32>
    %59 = vector.broadcast %58 : vector<8x1xf32> to vector<8x8xf32>
    %60 = arith.subf %56, %59 : vector<8x8xf32>
    %61 = math.exp %60 : vector<8x8xf32>
    %cst_34 = arith.constant dense<0.000000e+00> : vector<8xf32>
    %62 = vector.multi_reduction <add>, %61, %cst_34 [1] : vector<8x8xf32> to vector<8xf32>
    %63 = vector.shape_cast %62 : vector<8xf32> to vector<8x1xf32>
    %64 = vector.broadcast %63 : vector<8x1xf32> to vector<8x8xf32>
    %65 = arith.divf %61, %64 : vector<8x8xf32>
    %c0_35 = arith.constant 0 : index
    %c0_36 = arith.constant 0 : index
    %c1 = arith.constant 1 : index
    %c0_37 = arith.constant 0 : index
    %c0_38 = arith.constant 0 : index
    %66 = vector.load %arg25[%c0_35, %c0_36, %c1, %c0_37, %c0_38] : memref<1x2x4x8x8xf32, #tpu.memory_space<vmem>>, vector<1x1x1x8x8xf32>
    %67 = vector.shape_cast %66 : vector<1x1x1x8x8xf32> to vector<8x8xf32>
    %68 = vector.shape_cast %65 : vector<8x8xf32> to vector<1x1x1x8x8xf32>
    tpu.vector_store %arg25[%c0_35, %c0_36, %c1, %c0_37, %c0_38], %68 {strides = array<i32>} : memref<1x2x4x8x8xf32, #tpu.memory_space<vmem>>, vector<1x1x1x8x8xf32>,
    %69 = arith.truncf %65 : vector<8x8xf32> to vector<8x8xbf16>
    %cst_39 = arith.constant dense<0.000000e+00> : vector<8x8xf32>
    %70 = tpu.matmul %69, %51, %cst_39 {dimension_numbers = #tpu.dot_dimension_numbers<[1], [0], [0], [1], [0, 0, 1, 1], [], []>} : vector<8x8xbf16>, vector<8x8xbf16>, vector<8x8xf32> -> vector<8x8xf32>
    %71 = vector.extract_strided_slice %26 {offsets = [0, 16], sizes = [8, 8], strides = [1, 1]} : vector<8x96xbf16> to vector<8x8xbf16>
    %72 = vector.extract_strided_slice %26 {offsets = [0, 48], sizes = [8, 8], strides = [1, 1]} : vector<8x96xbf16> to vector<8x8xbf16>
    %73 = vector.extract_strided_slice %26 {offsets = [0, 80], sizes = [8, 8], strides = [1, 1]} : vector<8x96xbf16> to vector<8x8xbf16>
    %cst_40 = arith.constant dense<0.000000e+00> : vector<8x8xf32>
    %74 = tpu.matmul %71, %72, %cst_40 {dimension_numbers = #tpu.dot_dimension_numbers<[1], [1], [0], [0], [0, 0, 1, 0], [], []>} : vector<8x8xbf16>, vector<8x8xbf16>, vector<8x8xf32> -> vector<8x8xf32>
    %cst_41 = arith.constant 0.353553385 : f32
    %75 = vector.broadcast %cst_41 : f32 to vector<8x8xf32>
    %76 = arith.mulf %74, %75 : vector<8x8xf32>
    %cst_42 = arith.constant 0xFF800000 : f32
    %77 = vector.broadcast %cst_42 : f32 to vector<8x8xf32>
    %78 = arith.select %17, %76, %77 : vector<8x8xi1>, vector<8x8xf32>
    %cst_43 = arith.constant dense<0xFF800000> : vector<8xf32>
    %79 = vector.multi_reduction <maximumf>, %78, %cst_43 [1] : vector<8x8xf32> to vector<8xf32>
    %80 = vector.shape_cast %79 : vector<8xf32> to vector<8x1xf32>
    %81 = vector.broadcast %80 : vector<8x1xf32> to vector<8x8xf32>
    %82 = arith.subf %78, %81 : vector<8x8xf32>
    %83 = math.exp %82 : vector<8x8xf32>
    %cst_44 = arith.constant dense<0.000000e+00> : vector<8xf32>
    %84 = vector.multi_reduction <add>, %83, %cst_44 [1] : vector<8x8xf32> to vector<8xf32>
    %85 = vector.shape_cast %84 : vector<8xf32> to vector<8x1xf32>
    %86 = vector.broadcast %85 : vector<8x1xf32> to vector<8x8xf32>
    %87 = arith.divf %83, %86 : vector<8x8xf32>
    %c0_45 = arith.constant 0 : index
    %c0_46 = arith.constant 0 : index
    %c2 = arith.constant 2 : index
    %c0_47 = arith.constant 0 : index
    %c0_48 = arith.constant 0 : index
    %88 = vector.load %arg25[%c0_45, %c0_46, %c2, %c0_47, %c0_48] : memref<1x2x4x8x8xf32, #tpu.memory_space<vmem>>, vector<1x1x1x8x8xf32>
    %89 = vector.shape_cast %88 : vector<1x1x1x8x8xf32> to vector<8x8xf32>
    %90 = vector.shape_cast %87 : vector<8x8xf32> to vector<1x1x1x8x8xf32>
    tpu.vector_store %arg25[%c0_45, %c0_46, %c2, %c0_47, %c0_48], %90 {strides = array<i32>} : memref<1x2x4x8x8xf32, #tpu.memory_space<vmem>>, vector<1x1x1x8x8xf32>,
    %91 = arith.truncf %87 : vector<8x8xf32> to vector<8x8xbf16>
    %cst_49 = arith.constant dense<0.000000e+00> : vector<8x8xf32>
    %92 = tpu.matmul %91, %73, %cst_49 {dimension_numbers = #tpu.dot_dimension_numbers<[1], [0], [0], [1], [0, 0, 1, 1], [], []>} : vector<8x8xbf16>, vector<8x8xbf16>, vector<8x8xf32> -> vector<8x8xf32>
    %93 = vector.extract_strided_slice %26 {offsets = [0, 24], sizes = [8, 8], strides = [1, 1]} : vector<8x96xbf16> to vector<8x8xbf16>
    %94 = vector.extract_strided_slice %26 {offsets = [0, 56], sizes = [8, 8], strides = [1, 1]} : vector<8x96xbf16> to vector<8x8xbf16>
    %95 = vector.extract_strided_slice %26 {offsets = [0, 88], sizes = [8, 8], strides = [1, 1]} : vector<8x96xbf16> to vector<8x8xbf16>
    %cst_50 = arith.constant dense<0.000000e+00> : vector<8x8xf32>
    %96 = tpu.matmul %93, %94, %cst_50 {dimension_numbers = #tpu.dot_dimension_numbers<[1], [1], [0], [0], [0, 0, 1, 0], [], []>} : vector<8x8xbf16>, vector<8x8xbf16>, vector<8x8xf32> -> vector<8x8xf32>
    %cst_51 = arith.constant 0.353553385 : f32
    %97 = vector.broadcast %cst_51 : f32 to vector<8x8xf32>
    %98 = arith.mulf %96, %97 : vector<8x8xf32>
    %cst_52 = arith.constant 0xFF800000 : f32
    %99 = vector.broadcast %cst_52 : f32 to vector<8x8xf32>
    %100 = arith.select %17, %98, %99 : vector<8x8xi1>, vector<8x8xf32>
    %cst_53 = arith.constant dense<0xFF800000> : vector<8xf32>
    %101 = vector.multi_reduction <maximumf>, %100, %cst_53 [1] : vector<8x8xf32> to vector<8xf32>
    %102 = vector.shape_cast %101 : vector<8xf32> to vector<8x1xf32>
    %103 = vector.broadcast %102 : vector<8x1xf32> to vector<8x8xf32>
    %104 = arith.subf %100, %103 : vector<8x8xf32>
    %105 = math.exp %104 : vector<8x8xf32>
    %cst_54 = arith.constant dense<0.000000e+00> : vector<8xf32>
    %106 = vector.multi_reduction <add>, %105, %cst_54 [1] : vector<8x8xf32> to vector<8xf32>
    %107 = vector.shape_cast %106 : vector<8xf32> to vector<8x1xf32>
    %108 = vector.broadcast %107 : vector<8x1xf32> to vector<8x8xf32>
    %109 = arith.divf %105, %108 : vector<8x8xf32>
    %c0_55 = arith.constant 0 : index
    %c0_56 = arith.constant 0 : index
    %c3 = arith.constant 3 : index
    %c0_57 = arith.constant 0 : index
    %c0_58 = arith.constant 0 : index
    %110 = vector.load %arg25[%c0_55, %c0_56, %c3, %c0_57, %c0_58] : memref<1x2x4x8x8xf32, #tpu.memory_space<vmem>>, vector<1x1x1x8x8xf32>
    %111 = vector.shape_cast %110 : vector<1x1x1x8x8xf32> to vector<8x8xf32>
    %112 = vector.shape_cast %109 : vector<8x8xf32> to vector<1x1x1x8x8xf32>
    tpu.vector_store %arg25[%c0_55, %c0_56, %c3, %c0_57, %c0_58], %112 {strides = array<i32>} : memref<1x2x4x8x8xf32, #tpu.memory_space<vmem>>, vector<1x1x1x8x8xf32>,
    %113 = arith.truncf %109 : vector<8x8xf32> to vector<8x8xbf16>
    %cst_59 = arith.constant dense<0.000000e+00> : vector<8x8xf32>
    %114 = tpu.matmul %113, %95, %cst_59 {dimension_numbers = #tpu.dot_dimension_numbers<[1], [0], [0], [1], [0, 0, 1, 1], [], []>} : vector<8x8xbf16>, vector<8x8xbf16>, vector<8x8xf32> -> vector<8x8xf32>
    %115 = tpu.concatenate %48, %70, %92, %114 in 1 : vector<8x8xf32>, vector<8x8xf32>, vector<8x8xf32>, vector<8x8xf32> -> vector<8x32xf32>
    %c0_60 = arith.constant 0 : index
    %c0_61 = arith.constant 0 : index
    %c0_62 = arith.constant 0 : index
    %116 = vector.load %arg7[%c0_60, %c0_61, %c0_62] : memref<2x32x32xbf16, #tpu.memory_space<vmem>>, vector<1x32x32xbf16>
    %117 = vector.shape_cast %116 : vector<1x32x32xbf16> to vector<32x32xbf16>
    %118 = arith.truncf %115 : vector<8x32xf32> to vector<8x32xbf16>
    %cst_63 = arith.constant dense<0.000000e+00> : vector<8x32xf32>
    %119 = tpu.matmul %118, %117, %cst_63 {dimension_numbers = #tpu.dot_dimension_numbers<[1], [0], [0], [1], [0, 0, 1, 1], [], []>} : vector<8x32xbf16>, vector<32x32xbf16>, vector<8x32xf32> -> vector<8x32xf32>
    %c0_64 = arith.constant 0 : index
    %c0_65 = arith.constant 0 : index
    %c0_66 = arith.constant 0 : index
    %120 = vector.load %arg8[%c0_64, %c0_65, %c0_66] : memref<2x1x32xf32, #tpu.memory_space<vmem>>, vector<1x1x32xf32>
    %121 = vector.shape_cast %120 : vector<1x1x32xf32> to vector<1x32xf32>
    %122 = vector.broadcast %121 : vector<1x32xf32> to vector<8x32xf32>
    %123 = arith.addf %119, %122 : vector<8x32xf32>
    %124 = arith.addf %1, %123 : vector<8x32xf32>
    %c0_67 = arith.constant 0 : index
    %c0_68 = arith.constant 0 : index
    %c0_69 = arith.constant 0 : index
    %125 = vector.load %arg13[%c0_67, %c0_68, %c0_69] : memref<2x3x32xf32, #tpu.memory_space<vmem>>, vector<1x1x32xf32>
    %126 = vector.shape_cast %125 : vector<1x1x32xf32> to vector<1x32xf32>
    %c0_70 = arith.constant 0 : index
    %c0_71 = arith.constant 0 : index
    %c0_72 = arith.constant 0 : index
    %127 = vector.load %arg14[%c0_70, %c0_71, %c0_72] : memref<2x3x32xf32, #tpu.memory_space<vmem>>, vector<1x1x32xf32>
    %128 = vector.shape_cast %127 : vector<1x1x32xf32> to vector<1x32xf32>
    %cst_73 = arith.constant dense<0.000000e+00> : vector<8xf32>
    %129 = vector.multi_reduction <add>, %124, %cst_73 [1] : vector<8x32xf32> to vector<8xf32>
    %130 = vector.shape_cast %129 : vector<8xf32> to vector<8x1xf32>
    %cst_74 = arith.constant 3.200000e+01 : f32
    %131 = vector.broadcast %cst_74 : f32 to vector<8x1xf32>
    %132 = arith.divf %130, %131 : vector<8x1xf32>
    %133 = vector.broadcast %132 : vector<8x1xf32> to vector<8x32xf32>
    %134 = arith.subf %124, %133 : vector<8x32xf32>
    %135 = arith.mulf %134, %134 : vector<8x32xf32>
    %cst_75 = arith.constant dense<0.000000e+00> : vector<8xf32>
    %136 = vector.multi_reduction <add>, %135, %cst_75 [1] : vector<8x32xf32> to vector<8xf32>
    %137 = vector.shape_cast %136 : vector<8xf32> to vector<8x1xf32>
    %cst_76 = arith.constant 3.200000e+01 : f32
    %138 = vector.broadcast %cst_76 : f32 to vector<8x1xf32>
    %139 = arith.divf %137, %138 : vector<8x1xf32>
    %140 = vector.broadcast %132 : vector<8x1xf32> to vector<8x32xf32>
    %141 = arith.subf %124, %140 : vector<8x32xf32>
    %cst_77 = arith.constant 9.99999974E-6 : f32
    %142 = vector.broadcast %cst_77 : f32 to vector<8x1xf32>
    %143 = arith.addf %139, %142 : vector<8x1xf32>
    %144 = math.rsqrt %143 : vector<8x1xf32>
    %145 = vector.broadcast %144 : vector<8x1xf32> to vector<8x32xf32>
    %146 = arith.mulf %141, %145 : vector<8x32xf32>
    %147 = vector.broadcast %126 : vector<1x32xf32> to vector<8x32xf32>
    %148 = arith.mulf %146, %147 : vector<8x32xf32>
    %149 = vector.broadcast %128 : vector<1x32xf32> to vector<8x32xf32>
    %150 = arith.addf %148, %149 : vector<8x32xf32>
    %c0_78 = arith.constant 0 : index
    %c0_79 = arith.constant 0 : index
    %c0_80 = arith.constant 0 : index
    %151 = vector.load %arg9[%c0_78, %c0_79, %c0_80] : memref<2x32x32xbf16, #tpu.memory_space<vmem>>, vector<1x32x32xbf16>
    %152 = vector.shape_cast %151 : vector<1x32x32xbf16> to vector<32x32xbf16>
    %153 = arith.truncf %8 : vector<1x32xf32> to vector<1x32xbf16>
    %cst_81 = arith.constant dense<0.000000e+00> : vector<1x32xf32>
    %154 = tpu.matmul %153, %152, %cst_81 {dimension_numbers = #tpu.dot_dimension_numbers<[1], [0], [0], [1], [0, 0, 1, 1], [], []>} : vector<1x32xbf16>, vector<32x32xbf16>, vector<1x32xf32> -> vector<1x32xf32>
    %c0_82 = arith.constant 0 : index
    %c0_83 = arith.constant 0 : index
    %c0_84 = arith.constant 0 : index
    %155 = vector.load %arg10[%c0_82, %c0_83, %c0_84] : memref<2x1x32xf32, #tpu.memory_space<vmem>>, vector<1x1x32xf32>
    %156 = vector.shape_cast %155 : vector<1x1x32xf32> to vector<1x32xf32>
    %157 = arith.addf %154, %156 : vector<1x32xf32>
    %c0_85 = arith.constant 0 : index
    %c0_86 = arith.constant 0 : index
    %c0_87 = arith.constant 0 : index
    %158 = vector.load %arg11[%c0_85, %c0_86, %c0_87] : memref<2x32x32xbf16, #tpu.memory_space<vmem>>, vector<1x32x32xbf16>
    %159 = vector.shape_cast %158 : vector<1x32x32xbf16> to vector<32x32xbf16>
    %160 = arith.truncf %157 : vector<1x32xf32> to vector<1x32xbf16>
    %cst_88 = arith.constant dense<0.000000e+00> : vector<1x32xf32>
    %161 = tpu.matmul %160, %159, %cst_88 {dimension_numbers = #tpu.dot_dimension_numbers<[1], [0], [0], [1], [0, 0, 1, 1], [], []>} : vector<1x32xbf16>, vector<32x32xbf16>, vector<1x32xf32> -> vector<1x32xf32>
    %c0_89 = arith.constant 0 : index
    %c0_90 = arith.constant 0 : index
    %c0_91 = arith.constant 0 : index
    %162 = vector.load %arg12[%c0_89, %c0_90, %c0_91] : memref<2x1x32xf32, #tpu.memory_space<vmem>>, vector<1x1x32xf32>
    %163 = vector.shape_cast %162 : vector<1x1x32xf32> to vector<1x32xf32>
    %164 = arith.addf %161, %163 : vector<1x32xf32>
    %165 = vector.shape_cast %164 : vector<1x32xf32> to vector<1x32xf32>
    %166 = vector.broadcast %165 : vector<1x32xf32> to vector<8x32xf32>
    %167 = arith.addf %150, %166 : vector<8x32xf32>
    %c0_92 = arith.constant 0 : index
    %c1_93 = arith.constant 1 : index
    %c0_94 = arith.constant 0 : index
    %168 = vector.load %arg13[%c0_92, %c1_93, %c0_94] : memref<2x3x32xf32, #tpu.memory_space<vmem>>, vector<1x1x32xf32>
    %169 = vector.shape_cast %168 : vector<1x1x32xf32> to vector<1x32xf32>
    %c0_95 = arith.constant 0 : index
    %c1_96 = arith.constant 1 : index
    %c0_97 = arith.constant 0 : index
    %170 = vector.load %arg14[%c0_95, %c1_96, %c0_97] : memref<2x3x32xf32, #tpu.memory_space<vmem>>, vector<1x1x32xf32>
    %171 = vector.shape_cast %170 : vector<1x1x32xf32> to vector<1x32xf32>
    %cst_98 = arith.constant dense<0.000000e+00> : vector<8xf32>
    %172 = vector.multi_reduction <add>, %167, %cst_98 [1] : vector<8x32xf32> to vector<8xf32>
    %173 = vector.shape_cast %172 : vector<8xf32> to vector<8x1xf32>
    %cst_99 = arith.constant 3.200000e+01 : f32
    %174 = vector.broadcast %cst_99 : f32 to vector<8x1xf32>
    %175 = arith.divf %173, %174 : vector<8x1xf32>
    %176 = vector.broadcast %175 : vector<8x1xf32> to vector<8x32xf32>
    %177 = arith.subf %167, %176 : vector<8x32xf32>
    %178 = arith.mulf %177, %177 : vector<8x32xf32>
    %cst_100 = arith.constant dense<0.000000e+00> : vector<8xf32>
    %179 = vector.multi_reduction <add>, %178, %cst_100 [1] : vector<8x32xf32> to vector<8xf32>
    %180 = vector.shape_cast %179 : vector<8xf32> to vector<8x1xf32>
    %cst_101 = arith.constant 3.200000e+01 : f32
    %181 = vector.broadcast %cst_101 : f32 to vector<8x1xf32>
    %182 = arith.divf %180, %181 : vector<8x1xf32>
    %183 = vector.broadcast %175 : vector<8x1xf32> to vector<8x32xf32>
    %184 = arith.subf %167, %183 : vector<8x32xf32>
    %cst_102 = arith.constant 9.99999974E-6 : f32
    %185 = vector.broadcast %cst_102 : f32 to vector<8x1xf32>
    %186 = arith.addf %182, %185 : vector<8x1xf32>
    %187 = math.rsqrt %186 : vector<8x1xf32>
    %188 = vector.broadcast %187 : vector<8x1xf32> to vector<8x32xf32>
    %189 = arith.mulf %184, %188 : vector<8x32xf32>
    %190 = vector.broadcast %169 : vector<1x32xf32> to vector<8x32xf32>
    %191 = arith.mulf %189, %190 : vector<8x32xf32>
    %192 = vector.broadcast %171 : vector<1x32xf32> to vector<8x32xf32>
    %193 = arith.addf %191, %192 : vector<8x32xf32>
    %c0_103 = arith.constant 0 : index
    %c0_104 = arith.constant 0 : index
    %c0_105 = arith.constant 0 : index
    %194 = vector.load %arg15[%c0_103, %c0_104, %c0_105] : memref<2x32x2048xbf16, #tpu.memory_space<vmem>>, vector<1x32x2048xbf16>
    %195 = vector.shape_cast %194 : vector<1x32x2048xbf16> to vector<32x2048xbf16>
    %196 = arith.truncf %193 : vector<8x32xf32> to vector<8x32xbf16>
    %cst_106 = arith.constant dense<0.000000e+00> : vector<8x2048xf32>
    %197 = tpu.matmul %196, %195, %cst_106 {dimension_numbers = #tpu.dot_dimension_numbers<[1], [0], [0], [1], [0, 0, 1, 1], [], []>} : vector<8x32xbf16>, vector<32x2048xbf16>, vector<8x2048xf32> -> vector<8x2048xf32>
    %c0_107 = arith.constant 0 : index
    %c0_108 = arith.constant 0 : index
    %c0_109 = arith.constant 0 : index
    %198 = vector.load %arg16[%c0_107, %c0_108, %c0_109] : memref<2x1x2048xf32, #tpu.memory_space<vmem>>, vector<1x1x2048xf32>
    %199 = vector.shape_cast %198 : vector<1x1x2048xf32> to vector<1x2048xf32>
    %200 = vector.broadcast %199 : vector<1x2048xf32> to vector<8x2048xf32>
    %201 = arith.addf %197, %200 : vector<8x2048xf32>
    %cst_110 = arith.constant 0.000000e+00 : f32
    %202 = vector.broadcast %cst_110 : f32 to vector<8x2048xf32>
    %203 = arith.maximumf %201, %202 : vector<8x2048xf32>
    %c0_111 = arith.constant 0 : index
    %c0_112 = arith.constant 0 : index
    %c0_113 = arith.constant 0 : index
    %204 = vector.load %arg17[%c0_111, %c0_112, %c0_113] : memref<2x2048x32xbf16, #tpu.memory_space<vmem>>, vector<1x2048x32xbf16>
    %205 = vector.shape_cast %204 : vector<1x2048x32xbf16> to vector<2048x32xbf16>
    %206 = arith.truncf %203 : vector<8x2048xf32> to vector<8x2048xbf16>
    %cst_114 = arith.constant dense<0.000000e+00> : vector<8x32xf32>
    %207 = tpu.matmul %206, %205, %cst_114 {dimension_numbers = #tpu.dot_dimension_numbers<[1], [0], [0], [1], [0, 0, 1, 1], [], []>} : vector<8x2048xbf16>, vector<2048x32xbf16>, vector<8x32xf32> -> vector<8x32xf32>
    %c0_115 = arith.constant 0 : index
    %c0_116 = arith.constant 0 : index
    %c0_117 = arith.constant 0 : index
    %208 = vector.load %arg18[%c0_115, %c0_116, %c0_117] : memref<2x1x32xf32, #tpu.memory_space<vmem>>, vector<1x1x32xf32>
    %209 = vector.shape_cast %208 : vector<1x1x32xf32> to vector<1x32xf32>
    %210 = vector.broadcast %209 : vector<1x32xf32> to vector<8x32xf32>
    %211 = arith.addf %207, %210 : vector<8x32xf32>
    %212 = arith.addf %193, %211 : vector<8x32xf32>
    %c0_118 = arith.constant 0 : index
    %c2_119 = arith.constant 2 : index
    %c0_120 = arith.constant 0 : index
    %213 = vector.load %arg13[%c0_118, %c2_119, %c0_120] : memref<2x3x32xf32, #tpu.memory_space<vmem>>, vector<1x1x32xf32>
    %214 = vector.shape_cast %213 : vector<1x1x32xf32> to vector<1x32xf32>
    %c0_121 = arith.constant 0 : index
    %c2_122 = arith.constant 2 : index
    %c0_123 = arith.constant 0 : index
    %215 = vector.load %arg14[%c0_121, %c2_122, %c0_123] : memref<2x3x32xf32, #tpu.memory_space<vmem>>, vector<1x1x32xf32>
    %216 = vector.shape_cast %215 : vector<1x1x32xf32> to vector<1x32xf32>
    %cst_124 = arith.constant dense<0.000000e+00> : vector<8xf32>
    %217 = vector.multi_reduction <add>, %212, %cst_124 [1] : vector<8x32xf32> to vector<8xf32>
    %218 = vector.shape_cast %217 : vector<8xf32> to vector<8x1xf32>
    %cst_125 = arith.constant 3.200000e+01 : f32
    %219 = vector.broadcast %cst_125 : f32 to vector<8x1xf32>
    %220 = arith.divf %218, %219 : vector<8x1xf32>
    %221 = vector.broadcast %220 : vector<8x1xf32> to vector<8x32xf32>
    %222 = arith.subf %212, %221 : vector<8x32xf32>
    %223 = arith.mulf %222, %222 : vector<8x32xf32>
    %cst_126 = arith.constant dense<0.000000e+00> : vector<8xf32>
    %224 = vector.multi_reduction <add>, %223, %cst_126 [1] : vector<8x32xf32> to vector<8xf32>
    %225 = vector.shape_cast %224 : vector<8xf32> to vector<8x1xf32>
    %cst_127 = arith.constant 3.200000e+01 : f32
    %226 = vector.broadcast %cst_127 : f32 to vector<8x1xf32>
    %227 = arith.divf %225, %226 : vector<8x1xf32>
    %228 = vector.broadcast %220 : vector<8x1xf32> to vector<8x32xf32>
    %229 = arith.subf %212, %228 : vector<8x32xf32>
    %cst_128 = arith.constant 9.99999974E-6 : f32
    %230 = vector.broadcast %cst_128 : f32 to vector<8x1xf32>
    %231 = arith.addf %227, %230 : vector<8x1xf32>
    %232 = math.rsqrt %231 : vector<8x1xf32>
    %233 = vector.broadcast %232 : vector<8x1xf32> to vector<8x32xf32>
    %234 = arith.mulf %229, %233 : vector<8x32xf32>
    %235 = vector.broadcast %214 : vector<1x32xf32> to vector<8x32xf32>
    %236 = arith.mulf %234, %235 : vector<8x32xf32>
    %237 = vector.broadcast %216 : vector<1x32xf32> to vector<8x32xf32>
    %238 = arith.addf %236, %237 : vector<8x32xf32>
    %c1_129 = arith.constant 1 : index
    %c0_130 = arith.constant 0 : index
    %c0_131 = arith.constant 0 : index
    %239 = vector.load %arg5[%c1_129, %c0_130, %c0_131] : memref<2x32x96xbf16, #tpu.memory_space<vmem>>, vector<1x32x96xbf16>
    %240 = vector.shape_cast %239 : vector<1x32x96xbf16> to vector<32x96xbf16>
    %241 = arith.truncf %238 : vector<8x32xf32> to vector<8x32xbf16>
    %cst_132 = arith.constant dense<0.000000e+00> : vector<8x96xf32>
    %242 = tpu.matmul %241, %240, %cst_132 {dimension_numbers = #tpu.dot_dimension_numbers<[1], [0], [0], [1], [0, 0, 1, 1], [], []>} : vector<8x32xbf16>, vector<32x96xbf16>, vector<8x96xf32> -> vector<8x96xf32>
    %c1_133 = arith.constant 1 : index
    %c0_134 = arith.constant 0 : index
    %c0_135 = arith.constant 0 : index
    %243 = vector.load %arg6[%c1_133, %c0_134, %c0_135] : memref<2x1x96xf32, #tpu.memory_space<vmem>>, vector<1x1x96xf32>
    %244 = vector.shape_cast %243 : vector<1x1x96xf32> to vector<1x96xf32>
    %245 = vector.broadcast %244 : vector<1x96xf32> to vector<8x96xf32>
    %246 = arith.addf %242, %245 : vector<8x96xf32>
    %247 = arith.truncf %246 : vector<8x96xf32> to vector<8x96xbf16>
    %248 = vector.extract_strided_slice %247 {offsets = [0, 0], sizes = [8, 8], strides = [1, 1]} : vector<8x96xbf16> to vector<8x8xbf16>
    %249 = vector.extract_strided_slice %247 {offsets = [0, 32], sizes = [8, 8], strides = [1, 1]} : vector<8x96xbf16> to vector<8x8xbf16>
    %250 = vector.extract_strided_slice %247 {offsets = [0, 64], sizes = [8, 8], strides = [1, 1]} : vector<8x96xbf16> to vector<8x8xbf16>
    %cst_136 = arith.constant dense<0.000000e+00> : vector<8x8xf32>
    %251 = tpu.matmul %248, %249, %cst_136 {dimension_numbers = #tpu.dot_dimension_numbers<[1], [1], [0], [0], [0, 0, 1, 0], [], []>} : vector<8x8xbf16>, vector<8x8xbf16>, vector<8x8xf32> -> vector<8x8xf32>
    %cst_137 = arith.constant 0.353553385 : f32
    %252 = vector.broadcast %cst_137 : f32 to vector<8x8xf32>
    %253 = arith.mulf %251, %252 : vector<8x8xf32>
    %cst_138 = arith.constant 0xFF800000 : f32
    %254 = vector.broadcast %cst_138 : f32 to vector<8x8xf32>
    %255 = arith.select %17, %253, %254 : vector<8x8xi1>, vector<8x8xf32>
    %cst_139 = arith.constant dense<0xFF800000> : vector<8xf32>
    %256 = vector.multi_reduction <maximumf>, %255, %cst_139 [1] : vector<8x8xf32> to vector<8xf32>
    %257 = vector.shape_cast %256 : vector<8xf32> to vector<8x1xf32>
    %258 = vector.broadcast %257 : vector<8x1xf32> to vector<8x8xf32>
    %259 = arith.subf %255, %258 : vector<8x8xf32>
    %260 = math.exp %259 : vector<8x8xf32>
    %cst_140 = arith.constant dense<0.000000e+00> : vector<8xf32>
    %261 = vector.multi_reduction <add>, %260, %cst_140 [1] : vector<8x8xf32> to vector<8xf32>
    %262 = vector.shape_cast %261 : vector<8xf32> to vector<8x1xf32>
    %263 = vector.broadcast %262 : vector<8x1xf32> to vector<8x8xf32>
    %264 = arith.divf %260, %263 : vector<8x8xf32>
    %c0_141 = arith.constant 0 : index
    %c1_142 = arith.constant 1 : index
    %c0_143 = arith.constant 0 : index
    %c0_144 = arith.constant 0 : index
    %c0_145 = arith.constant 0 : index
    %265 = vector.load %arg25[%c0_141, %c1_142, %c0_143, %c0_144, %c0_145] : memref<1x2x4x8x8xf32, #tpu.memory_space<vmem>>, vector<1x1x1x8x8xf32>
    %266 = vector.shape_cast %265 : vector<1x1x1x8x8xf32> to vector<8x8xf32>
    %267 = vector.shape_cast %264 : vector<8x8xf32> to vector<1x1x1x8x8xf32>
    tpu.vector_store %arg25[%c0_141, %c1_142, %c0_143, %c0_144, %c0_145], %267 {strides = array<i32>} : memref<1x2x4x8x8xf32, #tpu.memory_space<vmem>>, vector<1x1x1x8x8xf32>,
    %268 = arith.truncf %264 : vector<8x8xf32> to vector<8x8xbf16>
    %cst_146 = arith.constant dense<0.000000e+00> : vector<8x8xf32>
    %269 = tpu.matmul %268, %250, %cst_146 {dimension_numbers = #tpu.dot_dimension_numbers<[1], [0], [0], [1], [0, 0, 1, 1], [], []>} : vector<8x8xbf16>, vector<8x8xbf16>, vector<8x8xf32> -> vector<8x8xf32>
    %270 = vector.extract_strided_slice %247 {offsets = [0, 8], sizes = [8, 8], strides = [1, 1]} : vector<8x96xbf16> to vector<8x8xbf16>
    %271 = vector.extract_strided_slice %247 {offsets = [0, 40], sizes = [8, 8], strides = [1, 1]} : vector<8x96xbf16> to vector<8x8xbf16>
    %272 = vector.extract_strided_slice %247 {offsets = [0, 72], sizes = [8, 8], strides = [1, 1]} : vector<8x96xbf16> to vector<8x8xbf16>
    %cst_147 = arith.constant dense<0.000000e+00> : vector<8x8xf32>
    %273 = tpu.matmul %270, %271, %cst_147 {dimension_numbers = #tpu.dot_dimension_numbers<[1], [1], [0], [0], [0, 0, 1, 0], [], []>} : vector<8x8xbf16>, vector<8x8xbf16>, vector<8x8xf32> -> vector<8x8xf32>
    %cst_148 = arith.constant 0.353553385 : f32
    %274 = vector.broadcast %cst_148 : f32 to vector<8x8xf32>
    %275 = arith.mulf %273, %274 : vector<8x8xf32>
    %cst_149 = arith.constant 0xFF800000 : f32
    %276 = vector.broadcast %cst_149 : f32 to vector<8x8xf32>
    %277 = arith.select %17, %275, %276 : vector<8x8xi1>, vector<8x8xf32>
    %cst_150 = arith.constant dense<0xFF800000> : vector<8xf32>
    %278 = vector.multi_reduction <maximumf>, %277, %cst_150 [1] : vector<8x8xf32> to vector<8xf32>
    %279 = vector.shape_cast %278 : vector<8xf32> to vector<8x1xf32>
    %280 = vector.broadcast %279 : vector<8x1xf32> to vector<8x8xf32>
    %281 = arith.subf %277, %280 : vector<8x8xf32>
    %282 = math.exp %281 : vector<8x8xf32>
    %cst_151 = arith.constant dense<0.000000e+00> : vector<8xf32>
    %283 = vector.multi_reduction <add>, %282, %cst_151 [1] : vector<8x8xf32> to vector<8xf32>
    %284 = vector.shape_cast %283 : vector<8xf32> to vector<8x1xf32>
    %285 = vector.broadcast %284 : vector<8x1xf32> to vector<8x8xf32>
    %286 = arith.divf %282, %285 : vector<8x8xf32>
    %c0_152 = arith.constant 0 : index
    %c1_153 = arith.constant 1 : index
    %c1_154 = arith.constant 1 : index
    %c0_155 = arith.constant 0 : index
    %c0_156 = arith.constant 0 : index
    %287 = vector.load %arg25[%c0_152, %c1_153, %c1_154, %c0_155, %c0_156] : memref<1x2x4x8x8xf32, #tpu.memory_space<vmem>>, vector<1x1x1x8x8xf32>
    %288 = vector.shape_cast %287 : vector<1x1x1x8x8xf32> to vector<8x8xf32>
    %289 = vector.shape_cast %286 : vector<8x8xf32> to vector<1x1x1x8x8xf32>
    tpu.vector_store %arg25[%c0_152, %c1_153, %c1_154, %c0_155, %c0_156], %289 {strides = array<i32>} : memref<1x2x4x8x8xf32, #tpu.memory_space<vmem>>, vector<1x1x1x8x8xf32>,
    %290 = arith.truncf %286 : vector<8x8xf32> to vector<8x8xbf16>
    %cst_157 = arith.constant dense<0.000000e+00> : vector<8x8xf32>
    %291 = tpu.matmul %290, %272, %cst_157 {dimension_numbers = #tpu.dot_dimension_numbers<[1], [0], [0], [1], [0, 0, 1, 1], [], []>} : vector<8x8xbf16>, vector<8x8xbf16>, vector<8x8xf32> -> vector<8x8xf32>
    %292 = vector.extract_strided_slice %247 {offsets = [0, 16], sizes = [8, 8], strides = [1, 1]} : vector<8x96xbf16> to vector<8x8xbf16>
    %293 = vector.extract_strided_slice %247 {offsets = [0, 48], sizes = [8, 8], strides = [1, 1]} : vector<8x96xbf16> to vector<8x8xbf16>
    %294 = vector.extract_strided_slice %247 {offsets = [0, 80], sizes = [8, 8], strides = [1, 1]} : vector<8x96xbf16> to vector<8x8xbf16>
    %cst_158 = arith.constant dense<0.000000e+00> : vector<8x8xf32>
    %295 = tpu.matmul %292, %293, %cst_158 {dimension_numbers = #tpu.dot_dimension_numbers<[1], [1], [0], [0], [0, 0, 1, 0], [], []>} : vector<8x8xbf16>, vector<8x8xbf16>, vector<8x8xf32> -> vector<8x8xf32>
    %cst_159 = arith.constant 0.353553385 : f32
    %296 = vector.broadcast %cst_159 : f32 to vector<8x8xf32>
    %297 = arith.mulf %295, %296 : vector<8x8xf32>
    %cst_160 = arith.constant 0xFF800000 : f32
    %298 = vector.broadcast %cst_160 : f32 to vector<8x8xf32>
    %299 = arith.select %17, %297, %298 : vector<8x8xi1>, vector<8x8xf32>
    %cst_161 = arith.constant dense<0xFF800000> : vector<8xf32>
    %300 = vector.multi_reduction <maximumf>, %299, %cst_161 [1] : vector<8x8xf32> to vector<8xf32>
    %301 = vector.shape_cast %300 : vector<8xf32> to vector<8x1xf32>
    %302 = vector.broadcast %301 : vector<8x1xf32> to vector<8x8xf32>
    %303 = arith.subf %299, %302 : vector<8x8xf32>
    %304 = math.exp %303 : vector<8x8xf32>
    %cst_162 = arith.constant dense<0.000000e+00> : vector<8xf32>
    %305 = vector.multi_reduction <add>, %304, %cst_162 [1] : vector<8x8xf32> to vector<8xf32>
    %306 = vector.shape_cast %305 : vector<8xf32> to vector<8x1xf32>
    %307 = vector.broadcast %306 : vector<8x1xf32> to vector<8x8xf32>
    %308 = arith.divf %304, %307 : vector<8x8xf32>
    %c0_163 = arith.constant 0 : index
    %c1_164 = arith.constant 1 : index
    %c2_165 = arith.constant 2 : index
    %c0_166 = arith.constant 0 : index
    %c0_167 = arith.constant 0 : index
    %309 = vector.load %arg25[%c0_163, %c1_164, %c2_165, %c0_166, %c0_167] : memref<1x2x4x8x8xf32, #tpu.memory_space<vmem>>, vector<1x1x1x8x8xf32>
    %310 = vector.shape_cast %309 : vector<1x1x1x8x8xf32> to vector<8x8xf32>
    %311 = vector.shape_cast %308 : vector<8x8xf32> to vector<1x1x1x8x8xf32>
    tpu.vector_store %arg25[%c0_163, %c1_164, %c2_165, %c0_166, %c0_167], %311 {strides = array<i32>} : memref<1x2x4x8x8xf32, #tpu.memory_space<vmem>>, vector<1x1x1x8x8xf32>,
    %312 = arith.truncf %308 : vector<8x8xf32> to vector<8x8xbf16>
    %cst_168 = arith.constant dense<0.000000e+00> : vector<8x8xf32>
    %313 = tpu.matmul %312, %294, %cst_168 {dimension_numbers = #tpu.dot_dimension_numbers<[1], [0], [0], [1], [0, 0, 1, 1], [], []>} : vector<8x8xbf16>, vector<8x8xbf16>, vector<8x8xf32> -> vector<8x8xf32>
    %314 = vector.extract_strided_slice %247 {offsets = [0, 24], sizes = [8, 8], strides = [1, 1]} : vector<8x96xbf16> to vector<8x8xbf16>
    %315 = vector.extract_strided_slice %247 {offsets = [0, 56], sizes = [8, 8], strides = [1, 1]} : vector<8x96xbf16> to vector<8x8xbf16>
    %316 = vector.extract_strided_slice %247 {offsets = [0, 88], sizes = [8, 8], strides = [1, 1]} : vector<8x96xbf16> to vector<8x8xbf16>
    %cst_169 = arith.constant dense<0.000000e+00> : vector<8x8xf32>
    %317 = tpu.matmul %314, %315, %cst_169 {dimension_numbers = #tpu.dot_dimension_numbers<[1], [1], [0], [0], [0, 0, 1, 0], [], []>} : vector<8x8xbf16>, vector<8x8xbf16>, vector<8x8xf32> -> vector<8x8xf32>
    %cst_170 = arith.constant 0.353553385 : f32
    %318 = vector.broadcast %cst_170 : f32 to vector<8x8xf32>
    %319 = arith.mulf %317, %318 : vector<8x8xf32>
    %cst_171 = arith.constant 0xFF800000 : f32
    %320 = vector.broadcast %cst_171 : f32 to vector<8x8xf32>
    %321 = arith.select %17, %319, %320 : vector<8x8xi1>, vector<8x8xf32>
    %cst_172 = arith.constant dense<0xFF800000> : vector<8xf32>
    %322 = vector.multi_reduction <maximumf>, %321, %cst_172 [1] : vector<8x8xf32> to vector<8xf32>
    %323 = vector.shape_cast %322 : vector<8xf32> to vector<8x1xf32>
    %324 = vector.broadcast %323 : vector<8x1xf32> to vector<8x8xf32>
    %325 = arith.subf %321, %324 : vector<8x8xf32>
    %326 = math.exp %325 : vector<8x8xf32>
    %cst_173 = arith.constant dense<0.000000e+00> : vector<8xf32>
    %327 = vector.multi_reduction <add>, %326, %cst_173 [1] : vector<8x8xf32> to vector<8xf32>
    %328 = vector.shape_cast %327 : vector<8xf32> to vector<8x1xf32>
    %329 = vector.broadcast %328 : vector<8x1xf32> to vector<8x8xf32>
    %330 = arith.divf %326, %329 : vector<8x8xf32>
    %c0_174 = arith.constant 0 : index
    %c1_175 = arith.constant 1 : index
    %c3_176 = arith.constant 3 : index
    %c0_177 = arith.constant 0 : index
    %c0_178 = arith.constant 0 : index
    %331 = vector.load %arg25[%c0_174, %c1_175, %c3_176, %c0_177, %c0_178] : memref<1x2x4x8x8xf32, #tpu.memory_space<vmem>>, vector<1x1x1x8x8xf32>
    %332 = vector.shape_cast %331 : vector<1x1x1x8x8xf32> to vector<8x8xf32>
    %333 = vector.shape_cast %330 : vector<8x8xf32> to vector<1x1x1x8x8xf32>
    tpu.vector_store %arg25[%c0_174, %c1_175, %c3_176, %c0_177, %c0_178], %333 {strides = array<i32>} : memref<1x2x4x8x8xf32, #tpu.memory_space<vmem>>, vector<1x1x1x8x8xf32>,
    %334 = arith.truncf %330 : vector<8x8xf32> to vector<8x8xbf16>
    %cst_179 = arith.constant dense<0.000000e+00> : vector<8x8xf32>
    %335 = tpu.matmul %334, %316, %cst_179 {dimension_numbers = #tpu.dot_dimension_numbers<[1], [0], [0], [1], [0, 0, 1, 1], [], []>} : vector<8x8xbf16>, vector<8x8xbf16>, vector<8x8xf32> -> vector<8x8xf32>
    %336 = tpu.concatenate %269, %291, %313, %335 in 1 : vector<8x8xf32>, vector<8x8xf32>, vector<8x8xf32>, vector<8x8xf32> -> vector<8x32xf32>
    %c1_180 = arith.constant 1 : index
    %c0_181 = arith.constant 0 : index
    %c0_182 = arith.constant 0 : index
    %337 = vector.load %arg7[%c1_180, %c0_181, %c0_182] : memref<2x32x32xbf16, #tpu.memory_space<vmem>>, vector<1x32x32xbf16>
    %338 = vector.shape_cast %337 : vector<1x32x32xbf16> to vector<32x32xbf16>
    %339 = arith.truncf %336 : vector<8x32xf32> to vector<8x32xbf16>
    %cst_183 = arith.constant dense<0.000000e+00> : vector<8x32xf32>
    %340 = tpu.matmul %339, %338, %cst_183 {dimension_numbers = #tpu.dot_dimension_numbers<[1], [0], [0], [1], [0, 0, 1, 1], [], []>} : vector<8x32xbf16>, vector<32x32xbf16>, vector<8x32xf32> -> vector<8x32xf32>
    %c1_184 = arith.constant 1 : index
    %c0_185 = arith.constant 0 : index
    %c0_186 = arith.constant 0 : index
    %341 = vector.load %arg8[%c1_184, %c0_185, %c0_186] : memref<2x1x32xf32, #tpu.memory_space<vmem>>, vector<1x1x32xf32>
    %342 = vector.shape_cast %341 : vector<1x1x32xf32> to vector<1x32xf32>
    %343 = vector.broadcast %342 : vector<1x32xf32> to vector<8x32xf32>
    %344 = arith.addf %340, %343 : vector<8x32xf32>
    %345 = arith.addf %238, %344 : vector<8x32xf32>
    %c1_187 = arith.constant 1 : index
    %c0_188 = arith.constant 0 : index
    %c0_189 = arith.constant 0 : index
    %346 = vector.load %arg13[%c1_187, %c0_188, %c0_189] : memref<2x3x32xf32, #tpu.memory_space<vmem>>, vector<1x1x32xf32>
    %347 = vector.shape_cast %346 : vector<1x1x32xf32> to vector<1x32xf32>
    %c1_190 = arith.constant 1 : index
    %c0_191 = arith.constant 0 : index
    %c0_192 = arith.constant 0 : index
    %348 = vector.load %arg14[%c1_190, %c0_191, %c0_192] : memref<2x3x32xf32, #tpu.memory_space<vmem>>, vector<1x1x32xf32>
    %349 = vector.shape_cast %348 : vector<1x1x32xf32> to vector<1x32xf32>
    %cst_193 = arith.constant dense<0.000000e+00> : vector<8xf32>
    %350 = vector.multi_reduction <add>, %345, %cst_193 [1] : vector<8x32xf32> to vector<8xf32>
    %351 = vector.shape_cast %350 : vector<8xf32> to vector<8x1xf32>
    %cst_194 = arith.constant 3.200000e+01 : f32
    %352 = vector.broadcast %cst_194 : f32 to vector<8x1xf32>
    %353 = arith.divf %351, %352 : vector<8x1xf32>
    %354 = vector.broadcast %353 : vector<8x1xf32> to vector<8x32xf32>
    %355 = arith.subf %345, %354 : vector<8x32xf32>
    %356 = arith.mulf %355, %355 : vector<8x32xf32>
    %cst_195 = arith.constant dense<0.000000e+00> : vector<8xf32>
    %357 = vector.multi_reduction <add>, %356, %cst_195 [1] : vector<8x32xf32> to vector<8xf32>
    %358 = vector.shape_cast %357 : vector<8xf32> to vector<8x1xf32>
    %cst_196 = arith.constant 3.200000e+01 : f32
    %359 = vector.broadcast %cst_196 : f32 to vector<8x1xf32>
    %360 = arith.divf %358, %359 : vector<8x1xf32>
    %361 = vector.broadcast %353 : vector<8x1xf32> to vector<8x32xf32>
    %362 = arith.subf %345, %361 : vector<8x32xf32>
    %cst_197 = arith.constant 9.99999974E-6 : f32
    %363 = vector.broadcast %cst_197 : f32 to vector<8x1xf32>
    %364 = arith.addf %360, %363 : vector<8x1xf32>
    %365 = math.rsqrt %364 : vector<8x1xf32>
    %366 = vector.broadcast %365 : vector<8x1xf32> to vector<8x32xf32>
    %367 = arith.mulf %362, %366 : vector<8x32xf32>
    %368 = vector.broadcast %347 : vector<1x32xf32> to vector<8x32xf32>
    %369 = arith.mulf %367, %368 : vector<8x32xf32>
    %370 = vector.broadcast %349 : vector<1x32xf32> to vector<8x32xf32>
    %371 = arith.addf %369, %370 : vector<8x32xf32>
    %c1_198 = arith.constant 1 : index
    %c0_199 = arith.constant 0 : index
    %c0_200 = arith.constant 0 : index
    %372 = vector.load %arg9[%c1_198, %c0_199, %c0_200] : memref<2x32x32xbf16, #tpu.memory_space<vmem>>, vector<1x32x32xbf16>
    %373 = vector.shape_cast %372 : vector<1x32x32xbf16> to vector<32x32xbf16>
    %374 = arith.truncf %8 : vector<1x32xf32> to vector<1x32xbf16>
    %cst_201 = arith.constant dense<0.000000e+00> : vector<1x32xf32>
    %375 = tpu.matmul %374, %373, %cst_201 {dimension_numbers = #tpu.dot_dimension_numbers<[1], [0], [0], [1], [0, 0, 1, 1], [], []>} : vector<1x32xbf16>, vector<32x32xbf16>, vector<1x32xf32> -> vector<1x32xf32>
    %c1_202 = arith.constant 1 : index
    %c0_203 = arith.constant 0 : index
    %c0_204 = arith.constant 0 : index
    %376 = vector.load %arg10[%c1_202, %c0_203, %c0_204] : memref<2x1x32xf32, #tpu.memory_space<vmem>>, vector<1x1x32xf32>
    %377 = vector.shape_cast %376 : vector<1x1x32xf32> to vector<1x32xf32>
    %378 = arith.addf %375, %377 : vector<1x32xf32>
    %c1_205 = arith.constant 1 : index
    %c0_206 = arith.constant 0 : index
    %c0_207 = arith.constant 0 : index
    %379 = vector.load %arg11[%c1_205, %c0_206, %c0_207] : memref<2x32x32xbf16, #tpu.memory_space<vmem>>, vector<1x32x32xbf16>
    %380 = vector.shape_cast %379 : vector<1x32x32xbf16> to vector<32x32xbf16>
    %381 = arith.truncf %378 : vector<1x32xf32> to vector<1x32xbf16>
    %cst_208 = arith.constant dense<0.000000e+00> : vector<1x32xf32>
    %382 = tpu.matmul %381, %380, %cst_208 {dimension_numbers = #tpu.dot_dimension_numbers<[1], [0], [0], [1], [0, 0, 1, 1], [], []>} : vector<1x32xbf16>, vector<32x32xbf16>, vector<1x32xf32> -> vector<1x32xf32>
    %c1_209 = arith.constant 1 : index
    %c0_210 = arith.constant 0 : index
    %c0_211 = arith.constant 0 : index
    %383 = vector.load %arg12[%c1_209, %c0_210, %c0_211] : memref<2x1x32xf32, #tpu.memory_space<vmem>>, vector<1x1x32xf32>
    %384 = vector.shape_cast %383 : vector<1x1x32xf32> to vector<1x32xf32>
    %385 = arith.addf %382, %384 : vector<1x32xf32>
    %386 = vector.shape_cast %385 : vector<1x32xf32> to vector<1x32xf32>
    %387 = vector.broadcast %386 : vector<1x32xf32> to vector<8x32xf32>
    %388 = arith.addf %371, %387 : vector<8x32xf32>
    %c1_212 = arith.constant 1 : index
    %c1_213 = arith.constant 1 : index
    %c0_214 = arith.constant 0 : index
    %389 = vector.load %arg13[%c1_212, %c1_213, %c0_214] : memref<2x3x32xf32, #tpu.memory_space<vmem>>, vector<1x1x32xf32>
    %390 = vector.shape_cast %389 : vector<1x1x32xf32> to vector<1x32xf32>
    %c1_215 = arith.constant 1 : index
    %c1_216 = arith.constant 1 : index
    %c0_217 = arith.constant 0 : index
    %391 = vector.load %arg14[%c1_215, %c1_216, %c0_217] : memref<2x3x32xf32, #tpu.memory_space<vmem>>, vector<1x1x32xf32>
    %392 = vector.shape_cast %391 : vector<1x1x32xf32> to vector<1x32xf32>
    %cst_218 = arith.constant dense<0.000000e+00> : vector<8xf32>
    %393 = vector.multi_reduction <add>, %388, %cst_218 [1] : vector<8x32xf32> to vector<8xf32>
    %394 = vector.shape_cast %393 : vector<8xf32> to vector<8x1xf32>
    %cst_219 = arith.constant 3.200000e+01 : f32
    %395 = vector.broadcast %cst_219 : f32 to vector<8x1xf32>
    %396 = arith.divf %394, %395 : vector<8x1xf32>
    %397 = vector.broadcast %396 : vector<8x1xf32> to vector<8x32xf32>
    %398 = arith.subf %388, %397 : vector<8x32xf32>
    %399 = arith.mulf %398, %398 : vector<8x32xf32>
    %cst_220 = arith.constant dense<0.000000e+00> : vector<8xf32>
    %400 = vector.multi_reduction <add>, %399, %cst_220 [1] : vector<8x32xf32> to vector<8xf32>
    %401 = vector.shape_cast %400 : vector<8xf32> to vector<8x1xf32>
    %cst_221 = arith.constant 3.200000e+01 : f32
    %402 = vector.broadcast %cst_221 : f32 to vector<8x1xf32>
    %403 = arith.divf %401, %402 : vector<8x1xf32>
    %404 = vector.broadcast %396 : vector<8x1xf32> to vector<8x32xf32>
    %405 = arith.subf %388, %404 : vector<8x32xf32>
    %cst_222 = arith.constant 9.99999974E-6 : f32
    %406 = vector.broadcast %cst_222 : f32 to vector<8x1xf32>
    %407 = arith.addf %403, %406 : vector<8x1xf32>
    %408 = math.rsqrt %407 : vector<8x1xf32>
    %409 = vector.broadcast %408 : vector<8x1xf32> to vector<8x32xf32>
    %410 = arith.mulf %405, %409 : vector<8x32xf32>
    %411 = vector.broadcast %390 : vector<1x32xf32> to vector<8x32xf32>
    %412 = arith.mulf %410, %411 : vector<8x32xf32>
    %413 = vector.broadcast %392 : vector<1x32xf32> to vector<8x32xf32>
    %414 = arith.addf %412, %413 : vector<8x32xf32>
    %c1_223 = arith.constant 1 : index
    %c0_224 = arith.constant 0 : index
    %c0_225 = arith.constant 0 : index
    %415 = vector.load %arg15[%c1_223, %c0_224, %c0_225] : memref<2x32x2048xbf16, #tpu.memory_space<vmem>>, vector<1x32x2048xbf16>
    %416 = vector.shape_cast %415 : vector<1x32x2048xbf16> to vector<32x2048xbf16>
    %417 = arith.truncf %414 : vector<8x32xf32> to vector<8x32xbf16>
    %cst_226 = arith.constant dense<0.000000e+00> : vector<8x2048xf32>
    %418 = tpu.matmul %417, %416, %cst_226 {dimension_numbers = #tpu.dot_dimension_numbers<[1], [0], [0], [1], [0, 0, 1, 1], [], []>} : vector<8x32xbf16>, vector<32x2048xbf16>, vector<8x2048xf32> -> vector<8x2048xf32>
    %c1_227 = arith.constant 1 : index
    %c0_228 = arith.constant 0 : index
    %c0_229 = arith.constant 0 : index
    %419 = vector.load %arg16[%c1_227, %c0_228, %c0_229] : memref<2x1x2048xf32, #tpu.memory_space<vmem>>, vector<1x1x2048xf32>
    %420 = vector.shape_cast %419 : vector<1x1x2048xf32> to vector<1x2048xf32>
    %421 = vector.broadcast %420 : vector<1x2048xf32> to vector<8x2048xf32>
    %422 = arith.addf %418, %421 : vector<8x2048xf32>
    %cst_230 = arith.constant 0.000000e+00 : f32
    %423 = vector.broadcast %cst_230 : f32 to vector<8x2048xf32>
    %424 = arith.maximumf %422, %423 : vector<8x2048xf32>
    %c1_231 = arith.constant 1 : index
    %c0_232 = arith.constant 0 : index
    %c0_233 = arith.constant 0 : index
    %425 = vector.load %arg17[%c1_231, %c0_232, %c0_233] : memref<2x2048x32xbf16, #tpu.memory_space<vmem>>, vector<1x2048x32xbf16>
    %426 = vector.shape_cast %425 : vector<1x2048x32xbf16> to vector<2048x32xbf16>
    %427 = arith.truncf %424 : vector<8x2048xf32> to vector<8x2048xbf16>
    %cst_234 = arith.constant dense<0.000000e+00> : vector<8x32xf32>
    %428 = tpu.matmul %427, %426, %cst_234 {dimension_numbers = #tpu.dot_dimension_numbers<[1], [0], [0], [1], [0, 0, 1, 1], [], []>} : vector<8x2048xbf16>, vector<2048x32xbf16>, vector<8x32xf32> -> vector<8x32xf32>
    %c1_235 = arith.constant 1 : index
    %c0_236 = arith.constant 0 : index
    %c0_237 = arith.constant 0 : index
    %429 = vector.load %arg18[%c1_235, %c0_236, %c0_237] : memref<2x1x32xf32, #tpu.memory_space<vmem>>, vector<1x1x32xf32>
    %430 = vector.shape_cast %429 : vector<1x1x32xf32> to vector<1x32xf32>
    %431 = vector.broadcast %430 : vector<1x32xf32> to vector<8x32xf32>
    %432 = arith.addf %428, %431 : vector<8x32xf32>
    %433 = arith.addf %414, %432 : vector<8x32xf32>
    %c1_238 = arith.constant 1 : index
    %c2_239 = arith.constant 2 : index
    %c0_240 = arith.constant 0 : index
    %434 = vector.load %arg13[%c1_238, %c2_239, %c0_240] : memref<2x3x32xf32, #tpu.memory_space<vmem>>, vector<1x1x32xf32>
    %435 = vector.shape_cast %434 : vector<1x1x32xf32> to vector<1x32xf32>
    %c1_241 = arith.constant 1 : index
    %c2_242 = arith.constant 2 : index
    %c0_243 = arith.constant 0 : index
    %436 = vector.load %arg14[%c1_241, %c2_242, %c0_243] : memref<2x3x32xf32, #tpu.memory_space<vmem>>, vector<1x1x32xf32>
    %437 = vector.shape_cast %436 : vector<1x1x32xf32> to vector<1x32xf32>
    %cst_244 = arith.constant dense<0.000000e+00> : vector<8xf32>
    %438 = vector.multi_reduction <add>, %433, %cst_244 [1] : vector<8x32xf32> to vector<8xf32>
    %439 = vector.shape_cast %438 : vector<8xf32> to vector<8x1xf32>
    %cst_245 = arith.constant 3.200000e+01 : f32
    %440 = vector.broadcast %cst_245 : f32 to vector<8x1xf32>
    %441 = arith.divf %439, %440 : vector<8x1xf32>
    %442 = vector.broadcast %441 : vector<8x1xf32> to vector<8x32xf32>
    %443 = arith.subf %433, %442 : vector<8x32xf32>
    %444 = arith.mulf %443, %443 : vector<8x32xf32>
    %cst_246 = arith.constant dense<0.000000e+00> : vector<8xf32>
    %445 = vector.multi_reduction <add>, %444, %cst_246 [1] : vector<8x32xf32> to vector<8xf32>
    %446 = vector.shape_cast %445 : vector<8xf32> to vector<8x1xf32>
    %cst_247 = arith.constant 3.200000e+01 : f32
    %447 = vector.broadcast %cst_247 : f32 to vector<8x1xf32>
    %448 = arith.divf %446, %447 : vector<8x1xf32>
    %449 = vector.broadcast %441 : vector<8x1xf32> to vector<8x32xf32>
    %450 = arith.subf %433, %449 : vector<8x32xf32>
    %cst_248 = arith.constant 9.99999974E-6 : f32
    %451 = vector.broadcast %cst_248 : f32 to vector<8x1xf32>
    %452 = arith.addf %448, %451 : vector<8x1xf32>
    %453 = math.rsqrt %452 : vector<8x1xf32>
    %454 = vector.broadcast %453 : vector<8x1xf32> to vector<8x32xf32>
    %455 = arith.mulf %450, %454 : vector<8x32xf32>
    %456 = vector.broadcast %435 : vector<1x32xf32> to vector<8x32xf32>
    %457 = arith.mulf %455, %456 : vector<8x32xf32>
    %458 = vector.broadcast %437 : vector<1x32xf32> to vector<8x32xf32>
    %459 = arith.addf %457, %458 : vector<8x32xf32>
    %c0_249 = arith.constant 0 : index
    %c0_250 = arith.constant 0 : index
    %460 = vector.load %arg19[%c0_249, %c0_250] : memref<1x32xf32, #tpu.memory_space<vmem>>, vector<1x32xf32>
    %c0_251 = arith.constant 0 : index
    %c0_252 = arith.constant 0 : index
    %461 = vector.load %arg20[%c0_251, %c0_252] : memref<1x32xf32, #tpu.memory_space<vmem>>, vector<1x32xf32>
    %cst_253 = arith.constant dense<0.000000e+00> : vector<8xf32>
    %462 = vector.multi_reduction <add>, %459, %cst_253 [1] : vector<8x32xf32> to vector<8xf32>
    %463 = vector.shape_cast %462 : vector<8xf32> to vector<8x1xf32>
    %cst_254 = arith.constant 3.200000e+01 : f32
    %464 = vector.broadcast %cst_254 : f32 to vector<8x1xf32>
    %465 = arith.divf %463, %464 : vector<8x1xf32>
    %466 = vector.broadcast %465 : vector<8x1xf32> to vector<8x32xf32>
    %467 = arith.subf %459, %466 : vector<8x32xf32>
    %468 = arith.mulf %467, %467 : vector<8x32xf32>
    %cst_255 = arith.constant dense<0.000000e+00> : vector<8xf32>
    %469 = vector.multi_reduction <add>, %468, %cst_255 [1] : vector<8x32xf32> to vector<8xf32>
    %470 = vector.shape_cast %469 : vector<8xf32> to vector<8x1xf32>
    %cst_256 = arith.constant 3.200000e+01 : f32
    %471 = vector.broadcast %cst_256 : f32 to vector<8x1xf32>
    %472 = arith.divf %470, %471 : vector<8x1xf32>
    %473 = vector.broadcast %465 : vector<8x1xf32> to vector<8x32xf32>
    %474 = arith.subf %459, %473 : vector<8x32xf32>
    %cst_257 = arith.constant 9.99999974E-6 : f32
    %475 = vector.broadcast %cst_257 : f32 to vector<8x1xf32>
    %476 = arith.addf %472, %475 : vector<8x1xf32>
    %477 = math.rsqrt %476 : vector<8x1xf32>
    %478 = vector.broadcast %477 : vector<8x1xf32> to vector<8x32xf32>
    %479 = arith.mulf %474, %478 : vector<8x32xf32>
    %480 = vector.broadcast %460 : vector<1x32xf32> to vector<8x32xf32>
    %481 = arith.mulf %479, %480 : vector<8x32xf32>
    %482 = vector.broadcast %461 : vector<1x32xf32> to vector<8x32xf32>
    %483 = arith.addf %481, %482 : vector<8x32xf32>
    %c0_258 = arith.constant 0 : index
    %c0_259 = arith.constant 0 : index
    %484 = vector.load %arg21[%c0_258, %c0_259] : memref<32x128xbf16, #tpu.memory_space<vmem>>, vector<32x128xbf16>
    %485 = arith.truncf %483 : vector<8x32xf32> to vector<8x32xbf16>
    %cst_260 = arith.constant dense<0.000000e+00> : vector<8x128xf32>
    %486 = tpu.matmul %485, %484, %cst_260 {dimension_numbers = #tpu.dot_dimension_numbers<[1], [0], [0], [1], [0, 0, 1, 1], [], []>} : vector<8x32xbf16>, vector<32x128xbf16>, vector<8x128xf32> -> vector<8x128xf32>
    %c0_261 = arith.constant 0 : index
    %c0_262 = arith.constant 0 : index
    %487 = vector.load %arg22[%c0_261, %c0_262] : memref<1x128xf32, #tpu.memory_space<vmem>>, vector<1x128xf32>
    %488 = vector.broadcast %487 : vector<1x128xf32> to vector<8x128xf32>
    %489 = arith.addf %486, %488 : vector<8x128xf32>
    %c0_263 = arith.constant 0 : index
    %c0_264 = arith.constant 0 : index
    %c0_265 = arith.constant 0 : index
    %490 = vector.load %arg23[%c0_263, %c0_264, %c0_265] : memref<1x8x128xf32, #tpu.memory_space<vmem>>, vector<1x8x128xf32>
    %491 = vector.shape_cast %490 : vector<1x8x128xf32> to vector<8x128xf32>
    %492 = vector.shape_cast %489 : vector<8x128xf32> to vector<1x8x128xf32>
    tpu.vector_store %arg23[%c0_263, %c0_264, %c0_265], %492 {strides = array<i32>} : memref<1x8x128xf32, #tpu.memory_space<vmem>>, vector<1x8x128xf32>,
    return
  }
  func.func @transform_0(%arg0: i32) -> (i32, i32, i32) {
    %c0_i32 = arith.constant 0 : i32
    %c0_i32_0 = arith.constant 0 : i32
    %c0_i32_1 = arith.constant 0 : i32
    return %arg0, %c0_i32, %c0_i32_0 : i32, i32, i32
  }
  func.func @transform_1(%arg0: i32) -> (i32, i32, i32) {
    %c0_i32 = arith.constant 0 : i32
    %c0_i32_0 = arith.constant 0 : i32
    %c0_i32_1 = arith.constant 0 : i32
    return %arg0, %c0_i32, %c0_i32_0 : i32, i32, i32
  }
  func.func @transform_2(%arg0: i32) -> (i32, i32) {
    %c0_i32 = arith.constant 0 : i32
    %c0_i32_0 = arith.constant 0 : i32
    %c0_i32_1 = arith.constant 0 : i32
    return %c0_i32, %c0_i32_0 : i32, i32
  }
  func.func @transform_3(%arg0: i32) -> (i32, i32) {
    %c0_i32 = arith.constant 0 : i32
    %c0_i32_0 = arith.constant 0 : i32
    %c0_i32_1 = arith.constant 0 : i32
    return %c0_i32, %c0_i32_0 : i32, i32
  }
  func.func @transform_4(%arg0: i32) -> (i32, i32, i32) {
    %c0_i32 = arith.constant 0 : i32
    %c0_i32_0 = arith.constant 0 : i32
    %c0_i32_1 = arith.constant 0 : i32
    %c0_i32_2 = arith.constant 0 : i32
    return %c0_i32, %c0_i32_0, %c0_i32_1 : i32, i32, i32
  }
  func.func @transform_5(%arg0: i32) -> (i32, i32, i32) {
    %c0_i32 = arith.constant 0 : i32
    %c0_i32_0 = arith.constant 0 : i32
    %c0_i32_1 = arith.constant 0 : i32
    %c0_i32_2 = arith.constant 0 : i32
    return %c0_i32, %c0_i32_0, %c0_i32_1 : i32, i32, i32
  }
  func.func @transform_6(%arg0: i32) -> (i32, i32, i32) {
    %c0_i32 = arith.constant 0 : i32
    %c0_i32_0 = arith.constant 0 : i32
    %c0_i32_1 = arith.constant 0 : i32
    %c0_i32_2 = arith.constant 0 : i32
    return %c0_i32, %c0_i32_0, %c0_i32_1 : i32, i32, i32
  }
  func.func @transform_7(%arg0: i32) -> (i32, i32, i32) {
    %c0_i32 = arith.constant 0 : i32
    %c0_i32_0 = arith.constant 0 : i32
    %c0_i32_1 = arith.constant 0 : i32
    %c0_i32_2 = arith.constant 0 : i32
    return %c0_i32, %c0_i32_0, %c0_i32_1 : i32, i32, i32
  }
  func.func @transform_8(%arg0: i32) -> (i32, i32, i32) {
    %c0_i32 = arith.constant 0 : i32
    %c0_i32_0 = arith.constant 0 : i32
    %c0_i32_1 = arith.constant 0 : i32
    %c0_i32_2 = arith.constant 0 : i32
    return %c0_i32, %c0_i32_0, %c0_i32_1 : i32, i32, i32
  }
  func.func @transform_9(%arg0: i32) -> (i32, i32, i32) {
    %c0_i32 = arith.constant 0 : i32
    %c0_i32_0 = arith.constant 0 : i32
    %c0_i32_1 = arith.constant 0 : i32
    %c0_i32_2 = arith.constant 0 : i32
    return %c0_i32, %c0_i32_0, %c0_i32_1 : i32, i32, i32
  }
  func.func @transform_10(%arg0: i32) -> (i32, i32, i32) {
    %c0_i32 = arith.constant 0 : i32
    %c0_i32_0 = arith.constant 0 : i32
    %c0_i32_1 = arith.constant 0 : i32
    %c0_i32_2 = arith.constant 0 : i32
    return %c0_i32, %c0_i32_0, %c0_i32_1 : i32, i32, i32
  }
  func.func @transform_11(%arg0: i32) -> (i32, i32, i32) {
    %c0_i32 = arith.constant 0 : i32
    %c0_i32_0 = arith.constant 0 : i32
    %c0_i32_1 = arith.constant 0 : i32
    %c0_i32_2 = arith.constant 0 : i32
    return %c0_i32, %c0_i32_0, %c0_i32_1 : i32, i32, i32
  }
  func.func @transform_12(%arg0: i32) -> (i32, i32, i32) {
    %c0_i32 = arith.constant 0 : i32
    %c0_i32_0 = arith.constant 0 : i32
    %c0_i32_1 = arith.constant 0 : i32
    %c0_i32_2 = arith.constant 0 : i32
    return %c0_i32, %c0_i32_0, %c0_i32_1 : i32, i32, i32
  }
  func.func @transform_13(%arg0: i32) -> (i32, i32, i32) {
    %c0_i32 = arith.constant 0 : i32
    %c0_i32_0 = arith.constant 0 : i32
    %c0_i32_1 = arith.constant 0 : i32
    %c0_i32_2 = arith.constant 0 : i32
    return %c0_i32, %c0_i32_0, %c0_i32_1 : i32, i32, i32
  }
  func.func @transform_14(%arg0: i32) -> (i32, i32, i32) {
    %c0_i32 = arith.constant 0 : i32
    %c0_i32_0 = arith.constant 0 : i32
    %c0_i32_1 = arith.constant 0 : i32
    %c0_i32_2 = arith.constant 0 : i32
    return %c0_i32, %c0_i32_0, %c0_i32_1 : i32, i32, i32
  }
  func.func @transform_15(%arg0: i32) -> (i32, i32, i32) {
    %c0_i32 = arith.constant 0 : i32
    %c0_i32_0 = arith.constant 0 : i32
    %c0_i32_1 = arith.constant 0 : i32
    %c0_i32_2 = arith.constant 0 : i32
    return %c0_i32, %c0_i32_0, %c0_i32_1 : i32, i32, i32
  }
  func.func @transform_16(%arg0: i32) -> (i32, i32, i32) {
    %c0_i32 = arith.constant 0 : i32
    %c0_i32_0 = arith.constant 0 : i32
    %c0_i32_1 = arith.constant 0 : i32
    %c0_i32_2 = arith.constant 0 : i32
    return %c0_i32, %c0_i32_0, %c0_i32_1 : i32, i32, i32
  }
  func.func @transform_17(%arg0: i32) -> (i32, i32, i32) {
    %c0_i32 = arith.constant 0 : i32
    %c0_i32_0 = arith.constant 0 : i32
    %c0_i32_1 = arith.constant 0 : i32
    %c0_i32_2 = arith.constant 0 : i32
    return %c0_i32, %c0_i32_0, %c0_i32_1 : i32, i32, i32
  }
  func.func @transform_18(%arg0: i32) -> (i32, i32) {
    %c0_i32 = arith.constant 0 : i32
    %c0_i32_0 = arith.constant 0 : i32
    %c0_i32_1 = arith.constant 0 : i32
    return %c0_i32, %c0_i32_0 : i32, i32
  }
  func.func @transform_19(%arg0: i32) -> (i32, i32) {
    %c0_i32 = arith.constant 0 : i32
    %c0_i32_0 = arith.constant 0 : i32
    %c0_i32_1 = arith.constant 0 : i32
    return %c0_i32, %c0_i32_0 : i32, i32
  }
  func.func @transform_20(%arg0: i32) -> (i32, i32) {
    %c0_i32 = arith.constant 0 : i32
    %c0_i32_0 = arith.constant 0 : i32
    %c0_i32_1 = arith.constant 0 : i32
    return %c0_i32, %c0_i32_0 : i32, i32
  }
  func.func @transform_21(%arg0: i32) -> (i32, i32) {
    %c0_i32 = arith.constant 0 : i32
    %c0_i32_0 = arith.constant 0 : i32
    %c0_i32_1 = arith.constant 0 : i32
    return %c0_i32, %c0_i32_0 : i32, i32
  }
  func.func @transform_22(%arg0: i32) -> (i32, i32, i32) {
    %c0_i32 = arith.constant 0 : i32
    %c0_i32_0 = arith.constant 0 : i32
    %c0_i32_1 = arith.constant 0 : i32
    return %arg0, %c0_i32, %c0_i32_0 : i32, i32, i32
  }
  func.func @transform_23(%arg0: i32) -> (i32, i32, i32) {
    %c0_i32 = arith.constant 0 : i32
    %c0_i32_0 = arith.constant 0 : i32
    %c0_i32_1 = arith.constant 0 : i32
    return %arg0, %c0_i32, %c0_i32_0 : i32, i32, i32
  }
  func.func @transform_24(%arg0: i32) -> (i32, i32, i32, i32, i32) {
    %c0_i32 = arith.constant 0 : i32
    %c0_i32_0 = arith.constant 0 : i32
    %c0_i32_1 = arith.constant 0 : i32
    %c0_i32_2 = arith.constant 0 : i32
    %c0_i32_3 = arith.constant 0 : i32
    return %arg0, %c0_i32, %c0_i32_0, %c0_i32_1, %c0_i32_2 : i32, i32, i32, i32, i32
  }
}

</mosaic_0001>

<bundles_post_ra>
// kernel: model_forward.1
= control target key start
LH: loop header
LB: loop body
LE: loop exit
PB: predicated region body
PF: predicated region fallthrough
CT: control target
= control target key end

     0   :  { %s9719_s0 = inlined_call_operand.vmem [shape: f32[2,1,16], index: 0, kind: input, shape index: {}]   ;;  %s9720_s1 = inlined_call_operand.vmem [shape: f32[2,8,32], index: 1, kind: input, shape index: {}]   ;;  %s9721_s2 = inlined_call_operand.vmem [shape: bf16[16,32], index: 2, kind: input, shape index: {}]   ;;  %s9722_s3 = inlined_call_operand.vmem [shape: f32[1,32], index: 3, kind: input, shape index: {}]   ;;  %s9723_s4 = inlined_call_operand.vmem [shape: bf16[2,32,96], index: 4, kind: input, shape index: {}]   ;;  %s9724_s5 = inlined_call_operand.vmem [shape: f32[2,1,96], index: 5, kind: input, shape index: {}]   ;;  %s9725_s6 = inlined_call_operand.vmem [shape: bf16[2,32,32], index: 6, kind: input, shape index: {}]   ;;  %s9726_s7 = inlined_call_operand.vmem [shape: f32[2,1,32], index: 7, kind: input, shape index: {}]   ;;  %s9727_s8 = inlined_call_operand.vmem [shape: bf16[2,32,32], index: 8, kind: input, shape index: {}]   ;;  %s9728_s9 = inlined_call_operand.vmem [shape: f32[2,1,32], index: 9, kind: input, shape index: {}]   ;;  %s9729_s10 = inlined_call_operand.vmem [shape: bf16[2,32,32], index: 10, kind: input, shape index: {}]   ;;  %s9730_s11 = inlined_call_operand.vmem [shape: f32[2,1,32], index: 11, kind: input, shape index: {}]   ;;  %s9731_s12 = inlined_call_operand.vmem [shape: f32[2,3,32], index: 12, kind: input, shape index: {}]   ;;  %s9732_s13 = inlined_call_operand.vmem [shape: f32[2,3,32], index: 13, kind: input, shape index: {}]   ;;  %s9733_s14 = inlined_call_operand.vmem [shape: bf16[2,32,2048], index: 14, kind: input, shape index: {}]   ;;  %s9734_s15 = inlined_call_operand.vmem [shape: f32[2,1,2048], index: 15, kind: input, shape index: {}]   ;;  %s9735_s16 = inlined_call_operand.vmem [shape: bf16[2,2048,32], index: 16, kind: input, shape index: {}]   ;;  %s9736_s17 = inlined_call_operand.vmem [shape: f32[2,1,32], index: 17, kind: input, shape index: {}]   ;;  %s9737_s18 = inlined_call_operand.vmem [shape: f32[1,32], index: 18, kind: input, shape index: {}]   ;;  %s9738_s19 = inlined_call_operand.vmem [shape: f32[1,32], index: 19, kind: input, shape index: {}]   ;;  %s9739_s20 = inlined_call_operand.vmem [shape: bf16[32,128], index: 20, kind: input, shape index: {}]   ;;  %s9740_s21 = inlined_call_operand.vmem [shape: f32[1,128], index: 21, kind: input, shape index: {}]   ;;  %s9741_s22 = inlined_call_operand.vmem [shape: f32[2,8,128], index: 22, kind: output, shape index: {0}]   ;;  %s9742_s23 = inlined_call_operand.hbm [shape: f32[2,1,32], index: 23, kind: output, shape index: {1}]   ;;  %s9743_s24 = inlined_call_operand.vmem [shape: f32[2,2,4,8,8], index: 24, kind: output, shape index: {2}]  }
   0x1   :  { %9779 = sst [smem:[#allocation13_spill]] %s9719_s0 }
   0x2   :  { %9780 = sst [smem:[#allocation14_spill]] %s9720_s1 }
   0x3   :  { %9781 = sst [smem:[#allocation15_spill]] %s9721_s2 }
   0x4   :  { %9782 = sst [smem:[#allocation16_spill]] %s9722_s3 }
   0x5   :  { %9783 = sst [smem:[#allocation17_spill]] %s9723_s4 }
   0x6   :  { %9784 = sst [smem:[#allocation18_spill]] %s9724_s5 }
   0x7   :  { %9785 = sst [smem:[#allocation19_spill]] %s9725_s6 }
   0x8   :  { %9786 = sst [smem:[#allocation20_spill]] %s9726_s7 }
   0x9   :  { %9787 = sst [smem:[#allocation21_spill]] %s9727_s8 }
   0xa   :  { %9788 = sst [smem:[#allocation22_spill]] %s9737_s18 }
   0xb   :  { %9789 = sst [smem:[#allocation23_spill]] %s9738_s19 }
   0xc   :  { %9790 = sst [smem:[#allocation24_spill]] %s9740_s21 }
   0xd   :  { %9791 = sst [smem:[#allocation25_spill]] %s9741_s22 }
   0xe   :  { %9792 = sst [smem:[#allocation26_spill]] %s9742_s23 }
   0xf   :  { %9793 = sst [smem:[#allocation27_spill]] %s9743_s24 }
  0x10   :  { %30 = vsyncpa [#allocation3], 0 }
  0x11   :  { %32 = vsyncpa [#allocation3 + $0x1], 0  ;;  %s7948_s5 = smov 0   ;;  %s7950_s26 = smov 0  }
  0x12   :  { %s7952_s27 = smov 0   ;;  %s7954_s28 = smov 0  }
  0x13 LB: > { %9794 = sst [smem:[#allocation5_spill]] %s7794_s5  ;;  %s7969_s6 = sadd.s32 4294967295, %s7806_s28   ;;  %s7806_s28 = sphi %s7954_s28, %s9842_s28   ;;  %s7802_s27 = sphi %s7952_s27, %s9844_s27   ;;  %s7798_s26 = sphi %s7950_s26, %s9846_s26   ;;  %s7794_s5 = sphi %s7948_s5, %s9845_s5  }
  0x14   : > { %9795 = sst [smem:[#allocation6_spill]] %s7802_s27  ;;  %s5533_s2 = sadd.s32 4294967294, %s7806_s28  }
  0x15   : > { %9796 = sst [smem:[#allocation7_spill]] %s7806_s28  ;;  %s7973_s29 = sadd.s32 1, %s7806_s28  }
  0x16   : > { %9797 = sst [smem:[#allocation8_spill]] %s7973_s29  ;;  %s543_s0 = sadd.s32 1, %s7802_s27 }
  0x17   : > { %s540_s7 = ssub.s32 %s7806_s28, %s7973_s29  ;;  %p553_p0 = scmp.ne.s32.totalorder %s7802_s27, %s7798_s26 }
  0x18   : > { %p541_p1 = scmp.eq.s32.totalorder %s540_s7, 0  ;;  %p554_p2 = scmp.eq.s32.totalorder %s7969_s6, 1 }
  0x19   : > { %p559_p3 = scmp.ne.s32.totalorder %s7798_s26, %s7794_s5  ;;  %p560_p4 = scmp.eq.s32.totalorder %s5533_s2, 1 }
  0x1a   : > { %s7984_s30 = scalar_select %p541_p1, %s7802_s27, %s543_s0  }
  0x1b   : > { %p7986_p5 = por %p554_p2, %p553_p0  ;;  %p7990_p6 = por %p560_p4, %p559_p3 }
  0x1c   : > { %9798 = sst [smem:[#allocation9_spill]] %s7984_s30  ;;  %p5536_p7 = scmp.ge.s32.totalorder %s7806_s28, 1 }
  0x1d   : > { %s9799_s3 = scalar_select %p7986_p5, 1, 0 }
  0x1e   : > { %s9801_s25 = scalar_select %p7990_p6, 1, 0 }
  0x1f   : > { %9800 = sst [smem:[#allocation10_spill]] %s9799_s3  ;;  %p677_p8 = scmp.lt.s32.totalorder %s7806_s28, 3 }
  0x20   : > { %9802 = sst [smem:[#allocation11_spill]] %s9801_s25 }
  0x21   : > { %p678_p9 = pnand %p5536_p7, %p677_p8 }
  0x23   : > { %681 = sbr.rel (%p678_p9) target bundleno = 4912 (0x1330), region = 108 }
  0x28   : > { %s9803_s1 = sld [smem:[#allocation17_spill]]  ;;  %p753_p10 = scmp.lt.s32.totalorder %s7969_s6, 1  ;;  %vm829_vm0 = vcmask 261120   ;;  %vm782_vm1 = vcmask 130048   ;;  %vm852_vm2 = vcmask 64512   ;;  %vm799_vm3 = vcmask 253952  }
  0x29   : > { %s9805_s25 = sld [smem:[#allocation14_spill]]  ;;  %s9755_s27 = smov 72   ;;  %v801_v29 = vlaneseq  ;;  %vm905_vm7 = vcmask 1043456  }
  0x2a   : > { %s8004_s7 = scalar_select %p753_p10, %s7969_s6, 1 }
  0x2b   : > { %s9806_s2 = sld [smem:[#allocation18_spill]]  ;;  %s9757_s29 = smov 96   ;;  %v802_v30 = vshrl.u32 %v801_v29, 7  ;;  %v804_v31 = vand.u32 127, %v801_v29 }
  0x2c   : > { %9804 = sst [smem:[#allocation12_spill]] %s8004_s7  ;;  %s9754_s30 = sshll.u32 %s8004_s7, 3 }
  0x2d   : > { %s9766_s0 = smov 80   ;;  %s9767_s8 = smov 88   ;;  %vm805_vm4 = vcmp.le.s32.totalorder %v804_v31, %v802_v30  ;;  %vm806_vm5 = vcmp.lt.s32.totalorder %v804_v31, 8 }
  0x2e   : > { %v7284_v0 = vld [vmem:[%s9803_s1 + $0x8] sm:$0xff]  ;;  %v7283_v1 = vld [vmem:[%s9803_s1] sm:$0xff]  ;;  %s9765_s4 = smov 104   ;;  %vm8064_vm6 = vmand %vm805_vm4, %vm806_vm5  ;;  %s9761_s28 = smov 48  }
  0x2f   : > { %839 = vmatpush.bf16.msra.mxu1 %v7284_v0  ;;  %s759_s5 = scalar_lea.vmem %s9805_s25, %s9754_s30  ;;  %s9759_s25 = smov 112  }
  0x30   : > { %v8012_v2 = vld [vmem:[%s759_s5] sm:$0xff]  ;;  %s9756_s5 = smov 120   ;;  %s9809_s30 = sld [smem:[#allocation16_spill]] }
  0x31   : > { %v812_v3 = vpack.c.bf16 %v8012_v2, %v8012_v2  ;;  %v7675_v4 = vld [vmem:[%s9806_s2] ss:$0 sm:$0xff]  ;;  %s9812_s24 = sld [smem:[#allocation27_spill]]  ;;  %s9816_s21 = smov 120  }
  0x32   : > { %s9817_s23 = smov 88   ;;  %s9818_s19 = smov 96  }
  0x33   : > { %840 = vmatpush.bf16.msra.mxu1 %v7283_v1  ;;  %s9819_s3 = smov 72   ;;  %s9820_s18 = smov 112  }
  0x36   : > { %5554 = vmatmul.msk.bf16.vlgmr.msra.gmra.mxu1 %vm829_vm0, %v812_v3  ;;  %v775_v27 = vld [vmem:[%s9809_s30] sm:$0x1]  ;;  %s7281_s30 = sshll.u32 %s8004_s7, 6 }
  0xb3   : > { %v842_v5 = vpop.f32.mrf.mxu1 }
  0xb4   : > { %v843_v6 = vadd.f32 %v7675_v4, %v842_v5 }
  0xb6   : > { %v846_v7 = vpack.c.bf16 %v843_v6, %v843_v6 }
  0xb8   : > { %v848_v8 = vunpack.c.l.b16 %v846_v7 }
  0xba   : > { %v8020_v9 = vpack.c.b16 %v848_v8, %v848_v8 }
  0xbb   : > { %v844_v10 = vpop.f32.mrf.mxu1 }
  0xbc   : > { %1070 = vrot.lane.b32.xlu2 %v8020_v9, %s9755_s27  ;;  %922 = vrot.lane.b32.xlu1 %v8020_v9, %s9756_s5  ;;  %s9807_s5 = sld [smem:[#allocation15_spill]]  ;;  %s9760_s27 = sand.u32 1, %s7798_s26  }
  0xbd   : > { %850 = vrot.lane.b32.xlu0 %v8020_v9, %s9757_s29  ;;  %s9762_s29 = smov 64  }
  0xc2   : > { %v7282_v11 = vld [vmem:[%s9807_s5] sm:$0xff]  ;;  %s8060_s5 = scalar_lea.vmem [#allocation2], %s9760_s27  ;;  %s9830_s27 = sld [smem:[#allocation22_spill]] }
  0xc3   : > { %793 = vmatpush.bf16.msra.mxu0 %v7282_v11 }
  0xc4   : > { %995 = vrot.lane.b32.xlu2 %v8020_v9, %s9759_s25  ;;  %997 = vrot.lane.b32.xlu1 %v8020_v9, %s9766_s0  ;;  %s9808_s25 = sld [smem:[#allocation13_spill]] }
  0xc5   : > { %924 = vrot.lane.b32.xlu0 %v8020_v9, %s9767_s8  ;;  %s9814_s0 = sld [smem:[#allocation19_spill]]  ;;  %s9826_s8 = smov 48  }
  0xca   : > { %s755_s22 = scalar_lea.vmem %s9808_s25, %s8004_s7  ;;  %s9763_s25 = smov 40  }
  0xcb   : > { %v771_v12 = vld [vmem:[%s755_s22] sm:$0x1]  ;;  %s9764_s22 = smov 56   ;;  %s9821_s7 = smov 80  }
  0xcc   : > { %v774_v13 = vpack.c.bf16 %v771_v12, %v771_v12 }
  0xcd   : > { %1068 = vrot.lane.b32.xlu0 %v8020_v9, %s9765_s4  ;;  %s9768_s4 = smov 16  }
  0xce   : > { %5545 = vmatmul.msk.bf16.vlgmr.msra.gmra.mxu0 %vm782_vm1, %v774_v13 }
 0x116   : > { %v1071_v17 = vpop.permute.xlu2 %1070 }
 0x117   : > { %v1076_v22 = vsel %vm852_vm2, %v1071_v17, 0 }
 0x11e   : > { %v996_v23 = vpop.permute.xlu2 %995 }
 0x12e   : > { %v923_v14 = vpop.permute.xlu1 %922 }
 0x12f   : > { %v851_v15 = vpop.permute.xlu0 %850 }
 0x130   : > { %v857_v16 = vsel %vm852_vm2, %v851_v15, 0 }
 0x131   : > { %866 = vmatpush.bf16.xpose.msra.mxu2 %v857_v16 }
 0x136   : > { %v998_v18 = vpop.permute.xlu1 %997 }
 0x137   : > { %v925_v19 = vpop.permute.xlu0 %924  ;;  %v1003_v20 = vsel %vm852_vm2, %v998_v18, 0 }
 0x138   : > { %5555 = vmatmul.msk.bf16.vlgmr.msra.gmra.mxu2 %vm852_vm2, %v846_v7  ;;  %v930_v21 = vsel %vm852_vm2, %v925_v19, 0  ;;  %1012 = vmatpush.bf16.xpose.msrb.mxu1 %v1003_v20 }
 0x139   : > { %939 = vmatpush.bf16.xpose.msrb.mxu0 %v930_v21 }
 0x13f   : > { %5560 = vmatmul.msk.bf16.vlgmr.msrb.gmra.mxu1 %vm852_vm2, %v996_v23  ;;  %v1069_v24 = vpop.permute.xlu0 %1068 }
 0x140   : > { %5557 = vmatmul.msk.bf16.vlgmr.msrb.gmra.mxu0 %vm852_vm2, %v923_v14 }
 0x141   : > { %1085 = vmatpush.bf16.xpose.msra.mxu0 %v1076_v22 }
 0x14b   : > { %v795_v25 = vpop.f32.mrf.mxu0 }
 0x14c   : > { %v8056_v28 = vadd.f32 %v795_v25, %v775_v27 }
 0x14e   : > { %800 = vst.msk [vmem:[%s8060_s5] sm:$0x1] %vm799_vm3, %v8056_v28 }
 0x150   : > { %5563 = vmatmul.msk.bf16.vlgmr.msra.gmra.mxu0 %vm852_vm2, %v1069_v24 }
 0x153   : > { %v797_v26 = vpop.f32.mrf.mxu0 }
 0x1bb   : > { %v868_v32 = vpop.f32.mrf.mxu2 }
 0x1bc   : > { %v872_v34 = vmul.f32 0.35355338, %v868_v32  ;;  %v1014_v35 = vpop.f32.mrf.mxu1 }
 0x1bd   : > { %v941_v36 = vpop.f32.mrf.mxu0  ;;  %v1018_v37 = vmul.f32 0.35355338, %v1014_v35 }
 0x1be   : > { %v945_v38 = vmul.f32 0.35355338, %v941_v36  ;;  %v873_v39 = vsel %vm8064_vm6, %v872_v34, -inf }
 0x1bf   : > { %v874_v40 = vsel %vm852_vm2, %v873_v39, -inf  ;;  %v1019_v41 = vsel %vm8064_vm6, %v1018_v37, -inf }
 0x1c0   : > { %875 = vmax.xlane.f32.xlu1 %v874_v40  ;;  %v1020_v42 = vsel %vm852_vm2, %v1019_v41, -inf  ;;  %v946_v43 = vsel %vm8064_vm6, %v945_v38, -inf }
 0x1c1   : > { %1021 = vmax.xlane.f32.xlu0 %v1020_v42  ;;  %v947_v44 = vsel %vm852_vm2, %v946_v43, -inf }
 0x1c2   : > { %948 = vmax.xlane.f32.xlu2 %v947_v44 }
 0x1c3   : > { %v870_v45 = vpop.f32.mrf.mxu2 }
 0x1c4   : > { %v1016_v46 = vpop.f32.mrf.mxu1 }
 0x1c5   : > { %v943_v47 = vpop.f32.mrf.mxu0 }
 0x1cd   : > { %v1087_v48 = vpop.f32.mrf.mxu0 }
 0x1ce   : > { %v1091_v49 = vmul.f32 0.35355338, %v1087_v48 }
 0x1d0   : > { %v1092_v50 = vsel %vm8064_vm6, %v1091_v49, -inf }
 0x1d1   : > { %v1093_v51 = vsel %vm852_vm2, %v1092_v50, -inf }
 0x1d2   : > { %1094 = vmax.xlane.f32.xlu2 %v1093_v51 }
 0x1d5   : > { %v1089_v52 = vpop.f32.mrf.mxu0  ;;  %900 = vrot.lane.b32.xlu0 %v8020_v9, %s9762_s29  ;;  %s8109_s29 = scalar_lea.vmem %s9812_s24, %s7281_s30  ;;  %s9813_s30 = sld [smem:[#allocation21_spill]] }
 0x1d6   : > { %s9823_s24 = smov 56  }
 0x1dd   : > { %1120 = vrot.lane.b32.xlu0 %v8020_v9, %s9763_s25  ;;  %s9770_s25 = smov 8  }
 0x233   : > { %v876_v53 = vpop.xlane.xlu1 %875 }
 0x234   : > { %v1022_v54 = vpop.xlane.xlu0 %1021  ;;  %v877_v58 = vsub.f32 %v873_v39, %v876_v53 }
 0x235   : > { %v1023_v55 = vsub.f32 %v1019_v41, %v1022_v54  ;;  %v949_v56 = vpop.xlane.xlu2 %948 }
 0x236   : > { %v950_v57 = vsub.f32 %v946_v43, %v949_v56  ;;  %v878_v61 = vmul.f32 1.442695, %v877_v58 }
 0x237   : > { %v1024_v59 = vmul.f32 1.442695, %v1023_v55 }
 0x238   : > { %v951_v60 = vmul.f32 1.442695, %v950_v57 }
 0x239   : > { %7696 = vpow2.f32 %v1024_v59 }
 0x23a   : > { %7698 = vpow2.f32 %v951_v60  ;;  %v7287_v60 = vld [vmem:[%s9813_s30] sm:$0xff] }
 0x23b   : > { %7700 = vpow2.f32 %v878_v61 }
 0x23f   : > { %v8084_v62 = vpop.eup %7696 }
 0x240   : > { %v8086_v63 = vpop.eup %7698  ;;  %v1026_v0 = vsel %vm852_vm2, %v8084_v62, 0.0 }
 0x241   : > { %1027 = vadd.xlane.f32.xlu1 %v1026_v0  ;;  %v953_v1 = vsel %vm852_vm2, %v8086_v63, 0.0  ;;  %v8092_v3 = vpop.eup %7700 }
 0x242   : > { %954 = vadd.xlane.f32.xlu2 %v953_v1  ;;  %v880_v8 = vsel %vm852_vm2, %v8092_v3, 0.0 }
 0x245   : > { %v1095_v4 = vpop.xlane.xlu2 %1094 }
 0x246   : > { %v1096_v5 = vsub.f32 %v1092_v50, %v1095_v4  ;;  %v7288_v50 = vld [vmem:[%s9813_s30 + $0x8] sm:$0xff] }
 0x247   : > { %v901_v6 = vpop.permute.xlu0 %900 }
 0x248   : > { %v1097_v7 = vmul.f32 1.442695, %v1096_v5  ;;  %v907_v10 = vsel %vm905_vm7, %v901_v6, 0 }
 0x249   : > { %881 = vadd.xlane.f32.xlu1 %v880_v8  ;;  %916 = vmatpush.bf16.msra.mxu3 %v907_v10  ;;  %v8136_v10 = vpack.c.bf16 %v8056_v28, %v8056_v28 }
 0x24a   : > { %7702 = vpow2.f32 %v1097_v7 }
 0x250   : > { %v8097_v11 = vpop.eup %7702 }
 0x251   : > { %v1099_v12 = vsel %vm852_vm2, %v8097_v11, 0.0 }
 0x252   : > { %1100 = vadd.xlane.f32.xlu2 %v1099_v12 }
 0x262   : > { %974 = vrot.lane.b32.xlu1 %v8020_v9, %s9764_s22  ;;  %s9769_s22 = smov 24  }
 0x26a   : > { %1047 = vrot.lane.b32.xlu2 %v8020_v9, %s9761_s28  ;;  %s9822_s28 = smov 104  }
 0x2b4   : > { %v1028_v13 = vpop.xlane.xlu1 %1027 }
 0x2b5   : > { %7704 = vrcp.f32 %v1028_v13  ;;  %v955_v14 = vpop.xlane.xlu2 %954  ;;  %v1040_v21 = vand.u32 2147483648, %v1028_v13  ;;  %v1038_v24 = vand.u32 2147483647, %v1028_v13  ;;  %vm1034_vm10 = vweird.f32 %v1028_v13 }
 0x2b6   : > { %7706 = vrcp.f32 %v955_v14  ;;  %v967_v9 = vand.u32 2147483648, %v955_v14  ;;  %v965_v27 = vand.u32 2147483647, %v955_v14  ;;  %vm961_vm12 = vweird.f32 %v955_v14 }
 0x2b7   : > { %v1041_v30 = vor.u32 1.1754944e-38, %v1040_v21  ;;  %vm1039_vm13 = vcmp.eq.f32.partialorder %v1038_v24, 8.507059e+37 }
 0x2b8   : > { %v968_v36 = vor.u32 1.1754944e-38, %v967_v9  ;;  %vm966_vm15 = vcmp.eq.f32.partialorder %v965_v27, 8.507059e+37  ;;  %v7285_v27 = vld [vmem:[%s9814_s0] sm:$0xff] }
 0x2bb   : > { %v7705_v15 = vpop.eup %7704 }
 0x2bc   : > { %v7707_v16 = vpop.eup %7706  ;;  %v1030_v17 = vmul.f32 %v7705_v15, %v1028_v13  ;;  %v882_v18 = vpop.xlane.xlu1 %881  ;;  %vm1035_vm8 = vweird.f32 %v7705_v15 }
 0x2bd   : > { %v957_v19 = vmul.f32 %v7707_v16, %v955_v14  ;;  %7708 = vrcp.f32 %v882_v18  ;;  %vm962_vm9 = vweird.f32 %v7707_v16  ;;  %vm1036_vm11 = vmor %vm1034_vm10, %vm1035_vm8  ;;  %v894_v40 = vand.u32 2147483648, %v882_v18  ;;  %v7289_v14 = vld [vmem:[%s9729_s10] sm:$0xff] }
 0x2be   : > { %v1031_v20 = vsub.f32 1.0, %v1030_v17  ;;  %vm963_vm14 = vmor %vm961_vm12, %vm962_vm9  ;;  %v892_v44 = vand.u32 2147483647, %v882_v18  ;;  %vm888_vm4 = vweird.f32 %v882_v18 }
 0x2bf   : > { %v958_v22 = vsub.f32 1.0, %v957_v19  ;;  %v895_v47 = vor.u32 1.1754944e-38, %v894_v40 }
 0x2c0   : > { %v1032_v23 = vmul.f32 %v7705_v15, %v1031_v20  ;;  %vm893_vm8 = vcmp.eq.f32.partialorder %v892_v44, 8.507059e+37 }
 0x2c1   : > { %v959_v25 = vmul.f32 %v7707_v16, %v958_v22 }
 0x2c2   : > { %v1033_v26 = vadd.f32 %v7705_v15, %v1032_v23 }
 0x2c3   : > { %v7709_v29 = vpop.eup %7708  ;;  %v960_v31 = vadd.f32 %v7707_v16, %v959_v25 }
 0x2c4   : > { %v1037_v32 = vsel %vm1036_vm11, %v7705_v15, %v1033_v26  ;;  %v884_v34 = vmul.f32 %v7709_v29, %v882_v18  ;;  %vm889_vm3 = vweird.f32 %v7709_v29  ;;  %v1235_v18 = vld [vmem:[%s9728_s9] sm:$0x1]  ;;  %v7286_v26 = vld [vmem:[%s9814_s0 + $0x8] sm:$0xff] }
 0x2c5   : > { %v964_v35 = vsel %vm963_vm14, %v7707_v16, %v960_v31  ;;  %v1101_v37 = vpop.xlane.xlu2 %1100  ;;  %v1042_v38 = vsel %vm1039_vm13, %v1041_v30, %v1037_v32  ;;  %vm890_vm5 = vmor %vm888_vm4, %vm889_vm3  ;;  %1187 = vmatpush.bf16.msra.mxu1 %v7286_v26  ;;  %vm1155_vm13 = vcmask 195584  }
 0x2c6   : > { %v885_v39 = vsub.f32 1.0, %v884_v34  ;;  %7710 = vrcp.f32 %v1101_v37  ;;  %v1043_v41 = vmul.f32 %v8084_v62, %v1042_v38  ;;  %v969_v42 = vsel %vm966_vm15, %v968_v36, %v964_v35 }
 0x2c7   : > { %v970_v45 = vmul.f32 %v8086_v63, %v969_v42  ;;  %v1113_v57 = vand.u32 2147483648, %v1101_v37  ;;  %v1111_v62 = vand.u32 2147483647, %v1101_v37  ;;  %v1121_v63 = vpop.permute.xlu0 %1120  ;;  %vm1107_vm10 = vweird.f32 %v1101_v37 }
 0x2c8   : > { %v886_v43 = vmul.f32 %v7709_v29, %v885_v39  ;;  %5561 = vst.msk [vmem:[%s8109_s29 + $0x10] sm:$0xff] %vm852_vm2, %v1043_v41  ;;  %v1046_v58 = vpack.c.bf16 %v1043_v41, %v1043_v41  ;;  %v1126_v6 = vsel %vm905_vm7, %v1121_v63, 0 }
 0x2c9   : > { %5558 = vst.msk [vmem:[%s8109_s29 + $0x8] sm:$0xff] %vm852_vm2, %v970_v45  ;;  %v1114_v1 = vor.u32 1.1754944e-38, %v1113_v57  ;;  %vm1112_vm12 = vcmp.eq.f32.partialorder %v1111_v62, 8.507059e+37  ;;  %v973_v12 = vpack.c.bf16 %v970_v45, %v970_v45  ;;  %1188 = vmatpush.bf16.msra.mxu1 %v7285_v27  ;;  %v7822_v45 = vmov 32.0   ;;  %v7308_v27 = vld [vmem:[%s9733_s14 + $0x8c] sm:$0xf] }
 0x2ca   : > { %v887_v46 = vadd.f32 %v7709_v29, %v886_v43  ;;  %7712 = vrcp.f32 %v7822_v45  ;;  %v5675_v45 = vld [vmem:[%s9733_s14 + $0x90] sm:$0xf] }
 0x2cc   : > { %v7711_v48 = vpop.eup %7710  ;;  %v891_v49 = vsel %vm890_vm5, %v7709_v29, %v887_v46 }
 0x2cd   : > { %v1103_v51 = vmul.f32 %v7711_v48, %v1101_v37  ;;  %v1048_v52 = vpop.permute.xlu2 %1047  ;;  %v896_v53 = vsel %vm893_vm8, %v895_v47, %v891_v49  ;;  %vm1108_vm9 = vweird.f32 %v7711_v48 }
 0x2ce   : > { %v1053_v54 = vsel %vm905_vm7, %v1048_v52, 0  ;;  %v897_v55 = vmul.f32 %v8092_v3, %v896_v53  ;;  %vm1109_vm11 = vmor %vm1107_vm10, %vm1108_vm9 }
 0x2cf   : > { %v1104_v56 = vsub.f32 1.0, %v1103_v51  ;;  %1062 = vmatpush.bf16.msrb.mxu2 %v1053_v54 }
 0x2d0   : > { %898 = vst.msk [vmem:[%s8109_s29] sm:$0xff] %vm852_vm2, %v897_v55  ;;  %v899_v59 = vpack.c.bf16 %v897_v55, %v897_v55  ;;  %v7713_v46 = vpop.eup %7712 }
 0x2d1   : > { %v1105_v61 = vmul.f32 %v7711_v48, %v1104_v56  ;;  %v1201_v47 = vmul.f32 32.0, %v7713_v46  ;;  %vm1205_vm14 = vweird.f32 %v7713_v46 }
 0x2d2   : > { %5562 = vmatmul.msk.bf16.vlgmr.msrb.gmra.mxu2 %vm852_vm2, %v1046_v58  ;;  %5556 = vmatmul.msk.bf16.vlgmr.msra.gmra.mxu3 %vm852_vm2, %v899_v59 }
 0x2d3   : > { %1257 = vmatpush.bf16.msra.mxu2 %v7288_v50  ;;  %v1106_v0 = vadd.f32 %v7711_v48, %v1105_v61 }
 0x2d4   : > { %v975_v3 = vpop.permute.xlu1 %974 }
 0x2d5   : > { %v1110_v4 = vsel %vm1109_vm11, %v7711_v48, %v1106_v0  ;;  %v980_v5 = vsel %vm905_vm7, %v975_v3, 0  ;;  %v1202_v48 = vsub.f32 1.0, %v1201_v47  ;;  %v1269_v0 = vld [vmem:[%s9730_s11] sm:$0x1]  ;;  %v7309_v47 = vld [vmem:[%s9733_s14 + $0x94] sm:$0xf] }
 0x2d6   : > { %v1115_v7 = vsel %vm1112_vm12, %v1114_v1, %v1110_v4  ;;  %989 = vmatpush.bf16.msrb.mxu3 %v980_v5  ;;  %v7677_v3 = vld [vmem:[%s9731_s12] ss:$0 sm:$0xff] }
 0x2d7   : > { %1258 = vmatpush.bf16.msra.mxu2 %v7287_v60  ;;  %v1116_v8 = vmul.f32 %v8097_v11, %v1115_v7  ;;  %v7290_v11 = vld [vmem:[%s9729_s10 + $0x8] sm:$0xff]  ;;  %v1203_v49 = vmul.f32 %v7713_v46, %v1202_v48  ;;  %v7678_v7 = vld [vmem:[%s9732_s13] ss:$0 sm:$0xff] }
 0x2d8   : > { %1291 = vmatpush.bf16.msrb.mxu0 %v7290_v11 }
 0x2d9   : > { %5564 = vst.msk [vmem:[%s8109_s29 + $0x18] sm:$0xff] %vm852_vm2, %v1116_v8  ;;  %v1119_v13 = vpack.c.bf16 %v1116_v8, %v1116_v8  ;;  %v1204_v50 = vadd.f32 %v7713_v46, %v1203_v49 }
 0x2da   : > { %1135 = vmatpush.bf16.msra.mxu3 %v1126_v6 }
 0x2db   : > { %v8170_v51 = vsel %vm1205_vm14, %v7713_v46, %v1204_v50  ;;  %v7317_v46 = vld [vmem:[%s9733_s14 + $0xcc] sm:$0xf0]  ;;  %v5677_v50 = vld [vmem:[%s9733_s14 + $0xd0] sm:$0xf0] }
 0x2dc   : > { %1292 = vmatpush.bf16.msrb.mxu0 %v7289_v14  ;;  %v5676_v49 = vor.u32 %v7317_v46, %v5675_v45 }
 0x2e2   : > { %5583 = vmatmul.msk.bf16.vlgmr.msra.gmra.mxu2 %vm829_vm0, %v8136_v10  ;;  %5559 = vmatmul.msk.bf16.vlgmr.msrb.gmra.mxu3 %vm852_vm2, %v973_v12 }
 0x2f2   : > { %5565 = vmatmul.msk.bf16.vlgmr.msra.gmra.mxu3 %vm852_vm2, %v1119_v13 }
 0x355   : > { %v1064_v28 = vpop.f32.mrf.mxu2  ;;  %v918_v15 = vpop.f32.mrf.mxu3 }
 0x356   : > { %1146 = vrot.lane.b32.xlu1 %v1064_v28, %s9768_s4  ;;  %s9815_s4 = sld [smem:[#allocation20_spill]] }
 0x35c   : > { %v7676_v39 = vld [vmem:[%s9815_s4] ss:$0 sm:$0xff] }
 0x35d   : > { %v1066_v16 = vpop.f32.mrf.mxu2  ;;  %v920_v17 = vpop.f32.mrf.mxu3 }
 0x365   : > { %v1260_v19 = vpop.f32.mrf.mxu2  ;;  %v991_v20 = vpop.f32.mrf.mxu3 }
 0x366   : > { %v1261_v21 = vadd.f32 %v1260_v19, %v1235_v18  ;;  %1142 = vrot.lane.b32.xlu0 %v991_v20, %s9770_s25  ;;  %v5659_v19 = vld [vmem:[%s9733_s14 + $0x80] sm:$0xf]  ;;  %s9824_s25 = smov 40  }
 0x367   : > { %v7315_v20 = vld [vmem:[%s9733_s14 + $0xbc] sm:$0xf0] }
 0x368   : > { %v1268_v22 = vpack.c.bf16 %v1261_v21, %v1261_v21  ;;  %v7307_v21 = vld [vmem:[%s9733_s14 + $0x84] sm:$0xf] }
 0x36a   : > { %5592 = vmatmul.msk.bf16.vlgmr.msrb.gmra.mxu0 %vm829_vm0, %v1268_v22  ;;  %v5660_v22 = vor.u32 %v7315_v20, %v5659_v19 }
 0x36c   : > { %1566 = vmatpush.bf16.msrb.mxu3 %v5660_v22  ;;  %v7319_v22 = vld [vmem:[%s9733_s14 + $0xdc] sm:$0xf0] }
 0x36d   : > { %v1262_v23 = vpop.f32.mrf.mxu2  ;;  %v993_v24 = vpop.f32.mrf.mxu3 }
 0x36e   : > { %v5661_v23 = vld [vmem:[%s9733_s14 + $0xc0] sm:$0xf0]  ;;  %v5667_v24 = vld [vmem:[%s9733_s14 + $0x88] sm:$0xf] }
 0x375   : > { %v1137_v25 = vpop.f32.mrf.mxu3 }
 0x376   : > { %1150 = vrot.lane.b32.xlu0 %v1137_v25, %s9769_s22  ;;  %v7316_v25 = vld [vmem:[%s9733_s14 + $0xc4] sm:$0xf0]  ;;  %s9825_s22 = smov 64  }
 0x377   : > { %v5668_v26 = vor.u32 %v7316_v25, %v5667_v24  ;;  %v5693_v24 = vld [vmem:[%s9733_s14 + $0xe0] sm:$0xf0] }
 0x379   : > { %1592 = vmatpush.bf16.msrb.mxu2 %v5668_v26  ;;  %v7312_v26 = vld [vmem:[%s9733_s14 + $0xac] sm:$0xf] }
 0x37d   : > { %v1139_v9 = vpop.f32.mrf.mxu3 }
 0x37e   : > { %v5664_v9 = vor.u32 %v7307_v21, %v5661_v23  ;;  %v5691_v21 = vld [vmem:[%s9733_s14 + $0xa0] sm:$0xf]  ;;  %v7311_v23 = vld [vmem:[%s9733_s14 + $0xa4] sm:$0xf] }
 0x380   : > { %1579 = vmatpush.bf16.msrb.mxu1 %v5664_v9  ;;  %v7320_v9 = vld [vmem:[%s9733_s14 + $0xe4] sm:$0xf0] }
 0x3c8   : > { %v1147_v31 = vpop.permute.xlu1 %1146 }
 0x3d8   : > { %v1143_v29 = vpop.permute.xlu0 %1142 }
 0x3d9   : > { %v1153_v30 = vsel %vm852_vm2, %v918_v15, %v1143_v29  ;;  %v5669_v29 = vld [vmem:[%s9733_s14 + $0xc8] sm:$0xf0] }
 0x3da   : > { %v1154_v35 = vsel %vm782_vm1, %v1153_v30, %v1147_v31  ;;  %v5672_v30 = vor.u32 %v7308_v27, %v5669_v29  ;;  %v5595_v31 = vld [vmem:[%s9733_s14] sm:$0xf]  ;;  %v5701_v27 = vld [vmem:[%s9733_s14 + $0xe8] sm:$0xf0] }
 0x3dc   : > { %1605 = vmatpush.bf16.msra.mxu0 %v5672_v30  ;;  %v5692_v30 = vor.u32 %v7319_v22, %v5691_v21  ;;  %v7344_v21 = vld [vmem:[%s9735_s16 + $0xa8] sm:$0xff]  ;;  %v7335_v22 = vld [vmem:[%s9735_s16 + $0x60] sm:$0xff] }
 0x3e7   : > { %v1294_v32 = vpop.f32.mrf.mxu0 }
 0x3e8   : > { %v1151_v34 = vpop.permute.xlu0 %1150  ;;  %v1295_v5 = vadd.f32 %v1294_v32, %v1269_v0  ;;  %v7299_v32 = vld [vmem:[%s9733_s14 + $0x3c] sm:$0xf0]  ;;  %v5619_v0 = vld [vmem:[%s9733_s14 + $0x18] sm:$0xf] }
 0x3e9   : > { %v1156_v36 = vsel %vm1155_vm13, %v1154_v35, %v1151_v34  ;;  %v7291_v34 = vld [vmem:[%s9733_s14 + $0x4] sm:$0xf]  ;;  %v5596_v35 = vor.u32 %v7299_v32, %v5595_v31  ;;  %v5696_v31 = vor.u32 %v7311_v23, %v5693_v24  ;;  %v5627_v32 = vld [vmem:[%s9733_s14 + $0x20] sm:$0xf] }
 0x3ea   : > { %v1161_v37 = vpack.c.bf16 %v1156_v36, %v1156_v36  ;;  %v1298_v12 = vperm.slane %v1295_v5, 0  ;;  %v5597_v36 = vld [vmem:[%s9733_s14 + $0x40] sm:$0xf0]  ;;  %v7294_v5 = vld [vmem:[%s9733_s14 + $0x1c] sm:$0xf] }
 0x3eb   : > { %1567 = vmatpush.bf16.msrb.mxu3 %v5596_v35  ;;  %v7351_v23 = vld [vmem:[%s9735_s16 + $0xe0] sm:$0xff] }
 0x3ec   : > { %5574 = vmatmul.msk.bf16.vlgmr.msra.gmra.mxu1 %vm829_vm0, %v1161_v37  ;;  %v5603_v37 = vld [vmem:[%s9733_s14 + $0x8] sm:$0xf]  ;;  %v7327_v24 = vld [vmem:[%s9735_s16 + $0x20] sm:$0xff] }
 0x3ef   : > { %v1296_v38 = vpop.f32.mrf.mxu0  ;;  %1618 = vmatpush.bf16.msra.mxu3 %v5676_v49  ;;  %v7313_v49 = vld [vmem:[%s9733_s14 + $0xb4] sm:$0xf] }
 0x3f0   : > { %v7300_v38 = vld [vmem:[%s9733_s14 + $0x44] sm:$0xf0] }
 0x469   : > { %v1190_v40 = vpop.f32.mrf.mxu1 }
 0x46a   : > { %v1191_v41 = vadd.f32 %v7676_v39, %v1190_v40  ;;  %v5600_v39 = vor.u32 %v7291_v34, %v5597_v36  ;;  %v5604_v40 = vor.u32 %v7300_v38, %v5603_v37  ;;  %v7303_v34 = vld [vmem:[%s9733_s14 + $0x5c] sm:$0xf0]  ;;  %v5704_v36 = vor.u32 %v7312_v26, %v5701_v27  ;;  %v7295_v37 = vld [vmem:[%s9733_s14 + $0x24] sm:$0xf]  ;;  %v7350_v26 = vld [vmem:[%s9735_s16 + $0xd8] sm:$0xff] }
 0x46b   : > { %v5629_v38 = vld [vmem:[%s9733_s14 + $0x60] sm:$0xf0]  ;;  %v7326_v27 = vld [vmem:[%s9735_s16 + $0x18] sm:$0xff] }
 0x46c   : > { %v1194_v42 = vadd.f32 %v1191_v41, %v8012_v2  ;;  %v7292_v41 = vld [vmem:[%s9733_s14 + $0xc] sm:$0xf]  ;;  %1580 = vmatpush.bf16.msrb.mxu1 %v5600_v39  ;;  %1593 = vmatpush.bf16.msrb.mxu2 %v5604_v40  ;;  %v5635_v39 = vld [vmem:[%s9733_s14 + $0x28] sm:$0xf] }
 0x46d   : > { %v7304_v40 = vld [vmem:[%s9733_s14 + $0x64] sm:$0xf0] }
 0x46e   : > { %v1197_v43 = vsel %vm829_vm0, %v1194_v42, 0.0  ;;  %v5636_v45 = vor.u32 %v7304_v40, %v5635_v39  ;;  %v7331_v39 = vld [vmem:[%s9735_s16 + $0x40] sm:$0xff] }
 0x46f   : > { %1198 = vadd.xlane.f32.xlu2 %v1197_v43  ;;  %v7347_v40 = vld [vmem:[%s9735_s16 + $0xc0] sm:$0xff] }
 0x471   : > { %v1192_v44 = vpop.f32.mrf.mxu1 }
 0x4e2   : > { %v1199_v52 = vpop.xlane.xlu2 %1198 }
 0x4e3   : > { %v1207_v53 = vmul.f32 %v8170_v51, %v1199_v52  ;;  %v5683_v52 = vld [vmem:[%s9733_s14 + $0x98] sm:$0xf] }
 0x4e5   : > { %v1208_v54 = vsub.f32 %v1194_v42, %v1207_v53  ;;  %v5605_v42 = vld [vmem:[%s9733_s14 + $0x48] sm:$0xf0]  ;;  %v7318_v53 = vld [vmem:[%s9733_s14 + $0xd4] sm:$0xf0] }
 0x4e6   : > { %v5608_v43 = vor.u32 %v7292_v41, %v5605_v42  ;;  %v7296_v41 = vld [vmem:[%s9733_s14 + $0x2c] sm:$0xf] }
 0x4e7   : > { %v1209_v55 = vmul.f32 %v1208_v54, %v1208_v54  ;;  %v5637_v42 = vld [vmem:[%s9733_s14 + $0x68] sm:$0xf0] }
 0x4e8   : > { %1606 = vmatpush.bf16.msra.mxu0 %v5608_v43  ;;  %v5628_v43 = vor.u32 %v7303_v34, %v5627_v32  ;;  %v5640_v46 = vor.u32 %v7296_v41, %v5637_v42  ;;  %v7349_v32 = vld [vmem:[%s9735_s16 + $0xd0] sm:$0xff]  ;;  %v7370_v41 = vld [vmem:[%s9735_s16 + $0x178] sm:$0xff] }
 0x4e9   : > { %v1210_v2 = vsel %vm829_vm0, %v1209_v55, 0.0  ;;  %v5684_v55 = vor.u32 %v7318_v53, %v5683_v52  ;;  %v5715_v52 = vld [vmem:[%s9733_s14 + $0xb8] sm:$0xf]  ;;  %v7325_v34 = vld [vmem:[%s9735_s16 + $0x10] sm:$0xff] }
 0x4ea   : > { %1211 = vadd.xlane.f32.xlu1 %v1210_v2  ;;  %v7310_v2 = vld [vmem:[%s9733_s14 + $0x9c] sm:$0xf]  ;;  %v7322_v53 = vld [vmem:[%s9733_s14 + $0xf4] sm:$0xf0] }
 0x4eb   : > { %1644 = vmatpush.bf16.msra.mxu2 %v5684_v55  ;;  %v5717_v55 = vld [vmem:[%s9733_s14 + $0xf8] sm:$0xf0] }
 0x4ec   : > { %v7386_v42 = vld [vmem:[%s9735_s16 + $0x1f8] sm:$0xff] }
 0x55d   : > { %v1212_v56 = vpop.xlane.xlu1 %1211 }
 0x55e   : > { %v1213_v57 = vmul.f32 %v1212_v56, %v8170_v51  ;;  %v5685_v56 = vld [vmem:[%s9733_s14 + $0xd8] sm:$0xf0] }
 0x560   : > { %v1214_v58 = vadd.f32 1e-05, %v1213_v57  ;;  %v5611_v57 = vld [vmem:[%s9733_s14 + $0x10] sm:$0xf] }
 0x562   : > { %7714 = vrsqrt.f32 %v1214_v58  ;;  %vm1221_vm3 = vweird.f32 %v1214_v58 }
 0x568   : > { %v7715_v59 = vpop.eup %7714 }
 0x569   : > { %v1216_v60 = vmul.f32 %v7715_v59, %v1214_v58  ;;  %vm1222_vm15 = vweird.f32 %v7715_v59 }
 0x56a   : > { %vm1223_vm4 = vmor %vm1221_vm3, %vm1222_vm15 }
 0x56b   : > { %v1217_v61 = vmul.f32 %v7715_v59, %v1216_v60  ;;  %v7301_v60 = vld [vmem:[%s9733_s14 + $0x4c] sm:$0xf0] }
 0x56d   : > { %v1218_v62 = vmul.f32 0.5, %v1217_v61  ;;  %v7293_v61 = vld [vmem:[%s9733_s14 + $0x14] sm:$0xf] }
 0x56f   : > { %v1219_v63 = vsub.f32 1.5, %v1218_v62  ;;  %v5612_v62 = vor.u32 %v7301_v60, %v5611_v57  ;;  %v5643_v57 = vld [vmem:[%s9733_s14 + $0x30] sm:$0xf] }
 0x571   : > { %v1220_v1 = vmul.f32 %v7715_v59, %v1219_v63  ;;  %v5613_v63 = vld [vmem:[%s9733_s14 + $0x50] sm:$0xf0]  ;;  %1619 = vmatpush.bf16.msra.mxu3 %v5612_v62 }
 0x572   : > { %v5645_v62 = vld [vmem:[%s9733_s14 + $0x70] sm:$0xf0] }
 0x573   : > { %v1224_v4 = vsel %vm1223_vm4, %v7715_v59, %v1220_v1  ;;  %v5688_v59 = vor.u32 %v7310_v2, %v5685_v56  ;;  %v7302_v1 = vld [vmem:[%s9733_s14 + $0x54] sm:$0xf0] }
 0x574   : > { %v1225_v6 = vmul.f32 %v1224_v4, %v1208_v54  ;;  %v5680_v54 = vor.u32 %v7309_v47, %v5677_v50  ;;  %v5620_v4 = vor.u32 %v7302_v1, %v5619_v0  ;;  %v5707_v47 = vld [vmem:[%s9733_s14 + $0xb0] sm:$0xf]  ;;  %v5709_v50 = vld [vmem:[%s9733_s14 + $0xf0] sm:$0xf0]  ;;  %v7306_v0 = vld [vmem:[%s9733_s14 + $0x74] sm:$0xf0] }
 0x575   : > { %1657 = vmatpush.bf16.msrb.mxu0 %v5688_v59  ;;  %v5712_v56 = vor.u32 %v7313_v49, %v5709_v50  ;;  %v5716_v59 = vor.u32 %v7322_v53, %v5715_v52  ;;  %v7298_v1 = vld [vmem:[%s9733_s14 + $0x3c] sm:$0xf]  ;;  %v7361_v49 = vld [vmem:[%s9735_s16 + $0x130] sm:$0xff]  ;;  %v7368_v52 = vld [vmem:[%s9735_s16 + $0x168] sm:$0xff] }
 0x576   : > { %v1227_v8 = vmul.f32 %v7677_v3, %v1225_v6  ;;  %1631 = vmatpush.bf16.msra.mxu1 %v5680_v54  ;;  %v5616_v3 = vor.u32 %v7293_v61, %v5613_v63  ;;  %v5621_v6 = vld [vmem:[%s9733_s14 + $0x58] sm:$0xf0]  ;;  %1645 = vmatpush.bf16.msra.mxu2 %v5620_v4  ;;  %v7297_v61 = vld [vmem:[%s9733_s14 + $0x34] sm:$0xf]  ;;  %v5651_v63 = vld [vmem:[%s9733_s14 + $0x38] sm:$0xf] }
 0x577   : > { %v7314_v54 = vld [vmem:[%s9733_s14 + $0xbc] sm:$0xf]  ;;  %v7377_v50 = vld [vmem:[%s9735_s16 + $0x1b0] sm:$0xff]  ;;  %v7384_v53 = vld [vmem:[%s9735_s16 + $0x1e8] sm:$0xff] }
 0x578   : > { %v1229_v13 = vadd.f32 %v7678_v7, %v1227_v8  ;;  %v5624_v7 = vor.u32 %v7294_v5, %v5621_v6  ;;  %v5720_v60 = vor.u32 %v7314_v54, %v5717_v55  ;;  %v5648_v5 = vor.u32 %v7297_v61, %v5645_v62  ;;  %v7360_v54 = vld [vmem:[%s9735_s16 + $0x128] sm:$0xff]  ;;  %v7365_v61 = vld [vmem:[%s9735_s16 + $0x150] sm:$0xff] }
 0x579   : > { %v5652_v6 = vor.u32 %v7306_v0, %v5651_v63  ;;  %v7376_v55 = vld [vmem:[%s9735_s16 + $0x1a8] sm:$0xff]  ;;  %v7381_v62 = vld [vmem:[%s9735_s16 + $0x1d0] sm:$0xff]  ;;  %v7358_v63 = vld [vmem:[%s9735_s16 + $0x118] sm:$0xff] }
 0x57a   : > { %v1299_v11 = vadd.f32 %v1298_v12, %v1229_v13  ;;  %1632 = vmatpush.bf16.msra.mxu1 %v5616_v3  ;;  %1658 = vmatpush.bf16.msrb.mxu0 %v5624_v7  ;;  %v5653_v3 = vld [vmem:[%s9733_s14 + $0x78] sm:$0xf0] }
 0x57b   : > { %v5656_v7 = vor.u32 %v7298_v1, %v5653_v3  ;;  %v7374_v0 = vld [vmem:[%s9735_s16 + $0x198] sm:$0xff]  ;;  %v7364_v1 = vld [vmem:[%s9735_s16 + $0x148] sm:$0xff] }
 0x57c   : > { %v1302_v14 = vsel %vm829_vm0, %v1299_v11, 0.0  ;;  %v7380_v3 = vld [vmem:[%s9735_s16 + $0x1c8] sm:$0xff] }
 0x57d   : > { %1303 = vadd.xlane.f32.xlu0 %v1302_v14 }
 0x5f0   : > { %v1304_v28 = vpop.xlane.xlu0 %1303 }
 0x5f1   : > { %v1305_v15 = vmul.f32 %v1304_v28, %v8170_v51 }
 0x5f3   : > { %v8186_v16 = vsub.f32 %v1299_v11, %v1305_v15  ;;  %v7679_v15 = vld [vmem:[%s9731_s12 + $0x1] ss:$0 sm:$0xff] }
 0x5f5   : > { %v1307_v17 = vmul.f32 %v8186_v16, %v8186_v16 }
 0x5f7   : > { %v1308_v18 = vsel %vm829_vm0, %v1307_v17, 0.0 }
 0x5f8   : > { %1309 = vadd.xlane.f32.xlu2 %v1308_v18  ;;  %v7680_v18 = vld [vmem:[%s9732_s13 + $0x1] ss:$0 sm:$0xff] }
 0x66b   : > { %v1310_v44 = vpop.xlane.xlu2 %1309 }
 0x66c   : > { %v1311_v48 = vmul.f32 %v1310_v44, %v8170_v51  ;;  %v5632_v44 = vor.u32 %v7295_v37, %v5629_v38  ;;  %v7324_v37 = vld [vmem:[%s9735_s16 + $0x8] sm:$0xff] }
 0x66d   : > { %v7340_v38 = vld [vmem:[%s9735_s16 + $0x88] sm:$0xff] }
 0x66e   : > { %v1312_v58 = vadd.f32 1e-05, %v1311_v48  ;;  %v7321_v48 = vld [vmem:[%s9733_s14 + $0xec] sm:$0xf0] }
 0x66f   : > { %v5708_v2 = vor.u32 %v7321_v48, %v5707_v47  ;;  %v7369_v47 = vld [vmem:[%s9735_s16 + $0x170] sm:$0xff] }
 0x670   : > { %7716 = vrsqrt.f32 %v1312_v58  ;;  %vm1319_vm8 = vweird.f32 %v1312_v58  ;;  %v7385_v48 = vld [vmem:[%s9735_s16 + $0x1f0] sm:$0xff] }
 0x676   : > { %v7717_v8 = vpop.eup %7716 }
 0x677   : > { %v1314_v12 = vmul.f32 %v7717_v8, %v1312_v58  ;;  %vm1320_vm5 = vweird.f32 %v7717_v8  ;;  %v7305_v58 = vld [vmem:[%s9733_s14 + $0x6c] sm:$0xf0] }
 0x678   : > { %vm1321_vm9 = vmor %vm1319_vm8, %vm1320_vm5  ;;  %v5644_v4 = vor.u32 %v7305_v58, %v5643_v57  ;;  %v7359_v57 = vld [vmem:[%s9735_s16 + $0x120] sm:$0xff] }
 0x679   : > { %v1315_v13 = vmul.f32 %v7717_v8, %v1314_v12  ;;  %v7354_v12 = vld [vmem:[%s9735_s16 + $0xf8] sm:$0xff]  ;;  %v7375_v58 = vld [vmem:[%s9735_s16 + $0x1a0] sm:$0xff] }
 0x67b   : > { %v1316_v11 = vmul.f32 0.5, %v1315_v13  ;;  %v7330_v13 = vld [vmem:[%s9735_s16 + $0x38] sm:$0xff] }
 0x67d   : > { %v1317_v14 = vsub.f32 1.5, %v1316_v11  ;;  %v7346_v11 = vld [vmem:[%s9735_s16 + $0xb8] sm:$0xff] }
 0x67f   : > { %v1318_v28 = vmul.f32 %v7717_v8, %v1317_v14  ;;  %v7337_v14 = vld [vmem:[%s9735_s16 + $0x70] sm:$0xff] }
 0x681   : > { %v1322_v17 = vsel %vm1321_vm9, %v7717_v8, %v1318_v28  ;;  %v7338_v8 = vld [vmem:[%s9735_s16 + $0x78] sm:$0xff]  ;;  %v7353_v28 = vld [vmem:[%s9735_s16 + $0xf0] sm:$0xff] }
 0x682   : > { %v1323_v19 = vmul.f32 %v1322_v17, %v8186_v16  ;;  %v5699_v16 = vld [vmem:[%s9733_s14 + $0xa8] sm:$0xf]  ;;  %v7345_v17 = vld [vmem:[%s9735_s16 + $0xb0] sm:$0xff] }
 0x683   : > { %v5700_v35 = vor.u32 %v7320_v9, %v5699_v16  ;;  %v7343_v16 = vld [vmem:[%s9735_s16 + $0xa0] sm:$0xff]  ;;  %v7334_v9 = vld [vmem:[%s9735_s16 + $0x58] sm:$0xff] }
 0x684   : > { %v1325_v20 = vmul.f32 %v7679_v15, %v1323_v19  ;;  %v7329_v15 = vld [vmem:[%s9735_s16 + $0x30] sm:$0xff]  ;;  %v7352_v19 = vld [vmem:[%s9735_s16 + $0xe8] sm:$0xff] }
 0x686   : > { %v8310_v25 = vadd.f32 %v7680_v18, %v1325_v20  ;;  %v7336_v18 = vld [vmem:[%s9735_s16 + $0x68] sm:$0xff] }
 0x687   : > { %v7328_v20 = vld [vmem:[%s9735_s16 + $0x28] sm:$0xff] }
 0x688   : > { %v8323_v29 = vpack.c.bf16 %v8310_v25, %v8310_v25 }
 0x68a   : > { %5721 = vmatmul.msk.bf16.vlgmr.msrb.gmra.mxu3 %vm829_vm0, %v8323_v29  ;;  %5722 = vmatmul.msk.bf16.vlgmr.msrb.gmra.mxu1 %vm829_vm0, %v8323_v29 }
 0x68b   : > { %5723 = vmatmul.msk.bf16.vlgmr.msrb.gmra.mxu2 %vm829_vm0, %v8323_v29  ;;  %5724 = vmatmul.msk.bf16.vlgmr.msra.gmra.mxu0 %vm829_vm0, %v8323_v29 }
 0x68c   : > { %1670 = vmatpush.bf16.msrb.mxu3 %v5692_v30  ;;  %1683 = vmatpush.bf16.msrb.mxu1 %v5696_v31  ;;  %v7342_v30 = vld [vmem:[%s9735_s16 + $0x98] sm:$0xff]  ;;  %v7333_v31 = vld [vmem:[%s9735_s16 + $0x50] sm:$0xff] }
 0x68d   : > { %1696 = vmatpush.bf16.msrb.mxu2 %v5700_v35  ;;  %1709 = vmatpush.bf16.msra.mxu0 %v5704_v36  ;;  %v7332_v35 = vld [vmem:[%s9735_s16 + $0x48] sm:$0xff] }
 0x68e   : > { %v7348_v36 = vld [vmem:[%s9735_s16 + $0xc8] sm:$0xff] }
 0x690   : > { %1671 = vmatpush.bf16.msrb.mxu3 %v5628_v43  ;;  %1684 = vmatpush.bf16.msrb.mxu1 %v5632_v44  ;;  %v7323_v43 = vld [vmem:[%s9735_s16] sm:$0xff] }
 0x691   : > { %1697 = vmatpush.bf16.msrb.mxu2 %v5636_v45  ;;  %1710 = vmatpush.bf16.msra.mxu0 %v5640_v46  ;;  %v7339_v44 = vld [vmem:[%s9735_s16 + $0x80] sm:$0xff]  ;;  %v7362_v45 = vld [vmem:[%s9735_s16 + $0x138] sm:$0xff] }
 0x692   : > { %v7378_v46 = vld [vmem:[%s9735_s16 + $0x1b8] sm:$0xff] }
 0x69a   : > { %5725 = vmatmul.msk.bf16.vlgmr.msra.gmra.mxu3 %vm829_vm0, %v8323_v29  ;;  %5726 = vmatmul.msk.bf16.vlgmr.msra.gmra.mxu1 %vm829_vm0, %v8323_v29 }
 0x69b   : > { %5727 = vmatmul.msk.bf16.vlgmr.msra.gmra.mxu2 %vm829_vm0, %v8323_v29  ;;  %5728 = vmatmul.msk.bf16.vlgmr.msrb.gmra.mxu0 %vm829_vm0, %v8323_v29 }
 0x69c   : > { %1722 = vmatpush.bf16.msra.mxu3 %v5708_v2  ;;  %1735 = vmatpush.bf16.msra.mxu1 %v5712_v56  ;;  %v7367_v2 = vld [vmem:[%s9735_s16 + $0x160] sm:$0xff] }
 0x69d   : > { %1748 = vmatpush.bf16.msra.mxu2 %v5716_v59  ;;  %1761 = vmatpush.bf16.msrb.mxu0 %v5720_v60  ;;  %v7383_v56 = vld [vmem:[%s9735_s16 + $0x1e0] sm:$0xff]  ;;  %v7366_v59 = vld [vmem:[%s9735_s16 + $0x158] sm:$0xff] }
 0x69e   : > { %v7382_v60 = vld [vmem:[%s9735_s16 + $0x1d8] sm:$0xff] }
 0x6a0   : > { %1723 = vmatpush.bf16.msra.mxu3 %v5644_v4  ;;  %1736 = vmatpush.bf16.msra.mxu1 %v5648_v5  ;;  %v7357_v4 = vld [vmem:[%s9735_s16 + $0x110] sm:$0xff] }
 0x6a1   : > { %1749 = vmatpush.bf16.msra.mxu2 %v5652_v6  ;;  %1762 = vmatpush.bf16.msrb.mxu0 %v5656_v7  ;;  %v7373_v5 = vld [vmem:[%s9735_s16 + $0x190] sm:$0xff]  ;;  %v7363_v6 = vld [vmem:[%s9735_s16 + $0x140] sm:$0xff] }
 0x6a2   : > { %v7379_v7 = vld [vmem:[%s9735_s16 + $0x1c0] sm:$0xff] }
 0x6aa   : > { %5729 = vmatmul.msk.bf16.vlgmr.msrb.gmra.mxu3 %vm829_vm0, %v8323_v29  ;;  %5730 = vmatmul.msk.bf16.vlgmr.msrb.gmra.mxu1 %vm829_vm0, %v8323_v29 }
 0x6ab   : > { %5731 = vmatmul.msk.bf16.vlgmr.msrb.gmra.mxu2 %vm829_vm0, %v8323_v29  ;;  %5732 = vmatmul.msk.bf16.vlgmr.msra.gmra.mxu0 %vm829_vm0, %v8323_v29 }
 0x6ac   : > { %2841 = vmatpush.bf16.msrb.mxu1 %v7338_v8  ;;  %2867 = vmatpush.bf16.msra.mxu0 %v7354_v12  ;;  %v7356_v8 = vld [vmem:[%s9735_s16 + $0x108] sm:$0xff] }
 0x6ad   : > { %2828 = vmatpush.bf16.msrb.mxu3 %v7330_v13  ;;  %2854 = vmatpush.bf16.msrb.mxu2 %v7346_v11  ;;  %v7372_v12 = vld [vmem:[%s9735_s16 + $0x188] sm:$0xff]  ;;  %v7355_v13 = vld [vmem:[%s9735_s16 + $0x100] sm:$0xff] }
 0x6ae   : > { %v7371_v11 = vld [vmem:[%s9735_s16 + $0x180] sm:$0xff] }
 0x6b0   : > { %2842 = vmatpush.bf16.msrb.mxu1 %v7337_v14  ;;  %2868 = vmatpush.bf16.msra.mxu0 %v7353_v28  ;;  %v8624_v14 = vld [vmem:[%s9734_s15] sm:$0xff] }
 0x6b1   : > { %2829 = vmatpush.bf16.msrb.mxu3 %v7329_v15  ;;  %2855 = vmatpush.bf16.msrb.mxu2 %v7345_v17  ;;  %v1366_v28 = vperm.slane %v8624_v14, 1  ;;  %v1368_v15 = vperm.slane %v8624_v14, 3 }
 0x6b4   : > { %2843 = vmatpush.bf16.msrb.mxu1 %v7336_v18  ;;  %2869 = vmatpush.bf16.msra.mxu0 %v7352_v19 }
 0x6b5   : > { %2830 = vmatpush.bf16.msrb.mxu3 %v7328_v20  ;;  %2856 = vmatpush.bf16.msrb.mxu2 %v7344_v21 }
 0x6b8   : > { %2844 = vmatpush.bf16.msrb.mxu1 %v7335_v22  ;;  %2870 = vmatpush.bf16.msra.mxu0 %v7351_v23  ;;  %v1365_v22 = vperm.slane %v8624_v14, 0 }
 0x6b9   : > { %2831 = vmatpush.bf16.msrb.mxu3 %v7327_v24  ;;  %2857 = vmatpush.bf16.msrb.mxu2 %v7343_v16  ;;  %v1367_v24 = vperm.slane %v8624_v14, 2  ;;  %v7402_v16 = vld [vmem:[%s9735_s16 + $0x278] sm:$0xff] }
 0x6ba   : > { %5733 = vmatmul.msk.bf16.vlgmr.msra.gmra.mxu3 %vm829_vm0, %v8323_v29  ;;  %5734 = vmatmul.msk.bf16.vlgmr.msra.gmra.mxu1 %vm829_vm0, %v8323_v29 }
 0x6bb   : > { %5735 = vmatmul.msk.bf16.vlgmr.msra.gmra.mxu2 %vm829_vm0, %v8323_v29  ;;  %5736 = vmatmul.msk.bf16.vlgmr.msrb.gmra.mxu0 %vm829_vm0, %v8323_v29  ;;  %v7341_v29 = vld [vmem:[%s9735_s16 + $0x90] sm:$0xff] }
 0x6bc   : > { %2845 = vmatpush.bf16.msrb.mxu1 %v7334_v9  ;;  %2871 = vmatpush.bf16.msra.mxu0 %v7350_v26  ;;  %v7418_v26 = vld [vmem:[%s9735_s16 + $0x2f8] sm:$0xff] }
 0x6bd   : > { %2832 = vmatpush.bf16.msrb.mxu3 %v7326_v27  ;;  %2858 = vmatpush.bf16.msrb.mxu2 %v7342_v30 }
 0x6c0   : > { %2846 = vmatpush.bf16.msrb.mxu1 %v7333_v31  ;;  %2872 = vmatpush.bf16.msra.mxu0 %v7349_v32 }
 0x6c1   : > { %2833 = vmatpush.bf16.msrb.mxu3 %v7325_v34  ;;  %2859 = vmatpush.bf16.msrb.mxu2 %v7341_v29 }
 0x6c4   : > { %2847 = vmatpush.bf16.msrb.mxu1 %v7332_v35  ;;  %2873 = vmatpush.bf16.msra.mxu0 %v7348_v36  ;;  %v7401_v35 = vld [vmem:[%s9735_s16 + $0x270] sm:$0xff] }
 0x6c5   : > { %2834 = vmatpush.bf16.msrb.mxu3 %v7324_v37  ;;  %2860 = vmatpush.bf16.msrb.mxu2 %v7340_v38  ;;  %v7417_v38 = vld [vmem:[%s9735_s16 + $0x2f0] sm:$0xff] }
 0x6c8   : > { %2848 = vmatpush.bf16.msrb.mxu1 %v7331_v39  ;;  %2874 = vmatpush.bf16.msra.mxu0 %v7347_v40  ;;  %v7394_v40 = vld [vmem:[%s9735_s16 + $0x238] sm:$0xff] }
 0x6c9   : > { %2835 = vmatpush.bf16.msrb.mxu3 %v7323_v43  ;;  %2861 = vmatpush.bf16.msrb.mxu2 %v7339_v44  ;;  %v7400_v44 = vld [vmem:[%s9735_s16 + $0x268] sm:$0xff] }
 0x6cc   : > { %2893 = vmatpush.bf16.msra.mxu1 %v7370_v41  ;;  %2919 = vmatpush.bf16.msrb.mxu0 %v7386_v42  ;;  %v7410_v42 = vld [vmem:[%s9735_s16 + $0x2b8] sm:$0xff] }
 0x6cd   : > { %2880 = vmatpush.bf16.msra.mxu3 %v7362_v45  ;;  %2906 = vmatpush.bf16.msra.mxu2 %v7378_v46  ;;  %v7416_v45 = vld [vmem:[%s9735_s16 + $0x2e8] sm:$0xff]  ;;  %v1370_v46 = vperm.slane %v8624_v14, 5 }
 0x6d0   : > { %2894 = vmatpush.bf16.msra.mxu1 %v7369_v47  ;;  %2920 = vmatpush.bf16.msrb.mxu0 %v7385_v48  ;;  %v1372_v48 = vperm.slane %v8624_v14, 7 }
 0x6d1   : > { %2881 = vmatpush.bf16.msra.mxu3 %v7361_v49  ;;  %2907 = vmatpush.bf16.msra.mxu2 %v7377_v50  ;;  %v7393_v49 = vld [vmem:[%s9735_s16 + $0x230] sm:$0xff] }
 0x6d4   : > { %2895 = vmatpush.bf16.msra.mxu1 %v7368_v52  ;;  %2921 = vmatpush.bf16.msrb.mxu0 %v7384_v53  ;;  %v7409_v52 = vld [vmem:[%s9735_s16 + $0x2b0] sm:$0xff] }
 0x6d5   : > { %2882 = vmatpush.bf16.msra.mxu3 %v7360_v54  ;;  %2908 = vmatpush.bf16.msra.mxu2 %v7376_v55  ;;  %v7399_v54 = vld [vmem:[%s9735_s16 + $0x260] sm:$0xff] }
 0x6d8   : > { %2896 = vmatpush.bf16.msra.mxu1 %v7367_v2  ;;  %2922 = vmatpush.bf16.msrb.mxu0 %v7383_v56  ;;  %v7415_v56 = vld [vmem:[%s9735_s16 + $0x2e0] sm:$0xff] }
 0x6d9   : > { %2883 = vmatpush.bf16.msra.mxu3 %v7359_v57  ;;  %2909 = vmatpush.bf16.msra.mxu2 %v7375_v58  ;;  %v7392_v58 = vld [vmem:[%s9735_s16 + $0x228] sm:$0xff] }
 0x6dc   : > { %2897 = vmatpush.bf16.msra.mxu1 %v7366_v59  ;;  %2923 = vmatpush.bf16.msrb.mxu0 %v7382_v60  ;;  %v7408_v60 = vld [vmem:[%s9735_s16 + $0x2a8] sm:$0xff] }
 0x6dd   : > { %2884 = vmatpush.bf16.msra.mxu3 %v7358_v63  ;;  %2910 = vmatpush.bf16.msra.mxu2 %v7374_v0  ;;  %v1371_v63 = vperm.slane %v8624_v14, 6  ;;  %v7398_v0 = vld [vmem:[%s9735_s16 + $0x258] sm:$0xff] }
 0x6e0   : > { %2898 = vmatpush.bf16.msra.mxu1 %v7365_v61  ;;  %2924 = vmatpush.bf16.msrb.mxu0 %v7381_v62  ;;  %v1369_v61 = vperm.slane %v8624_v14, 4  ;;  %v7397_v14 = vld [vmem:[%s9735_s16 + $0x250] sm:$0xff] }
 0x6e1   : > { %2885 = vmatpush.bf16.msra.mxu3 %v7357_v4  ;;  %2911 = vmatpush.bf16.msra.mxu2 %v7373_v5 }
 0x6e4   : > { %2899 = vmatpush.bf16.msra.mxu1 %v7364_v1  ;;  %2925 = vmatpush.bf16.msrb.mxu0 %v7380_v3  ;;  %v7414_v3 = vld [vmem:[%s9735_s16 + $0x2d8] sm:$0xff] }
 0x6e5   : > { %2886 = vmatpush.bf16.msra.mxu3 %v7356_v8  ;;  %2912 = vmatpush.bf16.msra.mxu2 %v7372_v12  ;;  %v7407_v12 = vld [vmem:[%s9735_s16 + $0x2a0] sm:$0xff] }
 0x6e8   : > { %2900 = vmatpush.bf16.msra.mxu1 %v7363_v6  ;;  %2926 = vmatpush.bf16.msrb.mxu0 %v7379_v7  ;;  %v7391_v6 = vld [vmem:[%s9735_s16 + $0x220] sm:$0xff] }
 0x6e9   : > { %2887 = vmatpush.bf16.msra.mxu3 %v7355_v13  ;;  %2913 = vmatpush.bf16.msra.mxu2 %v7371_v11 }
 0x707   : > { %v1582_v17 = vpop.f32.mrf.mxu1 }
 0x708   : > { %v1583_v18 = vadd.f32 %v1582_v17, %v1366_v28  ;;  %v1608_v19 = vpop.f32.mrf.mxu0  ;;  %v7413_v17 = vld [vmem:[%s9735_s16 + $0x2d0] sm:$0xff] }
 0x709   : > { %v1609_v20 = vadd.f32 %v1608_v19, %v1368_v15  ;;  %v7390_v19 = vld [vmem:[%s9735_s16 + $0x218] sm:$0xff] }
 0x70a   : > { %v1769_v21 = vmax.f32 %v1583_v18, 0.0 }
 0x70b   : > { %v1771_v23 = vmax.f32 %v1609_v20, 0.0  ;;  %v8700_v20 = vld [vmem:[%s9734_s15 + $0x8] sm:$0xff] }
 0x70c   : > { %v2041_v9 = vpack.c.bf16 %v1769_v21, %v1769_v21 }
 0x70d   : > { %v2043_v27 = vpack.c.bf16 %v1771_v23, %v1771_v23  ;;  %v1569_v30 = vpop.f32.mrf.mxu3 }
 0x70e   : > { %v1570_v31 = vadd.f32 %v1569_v30, %v1365_v22  ;;  %v1595_v32 = vpop.f32.mrf.mxu2  ;;  %2849 = vmatmul.bf16.vlgmr.msrb.gmra.mxu1 %v2041_v9  ;;  %v7406_v22 = vld [vmem:[%s9735_s16 + $0x298] sm:$0xff]  ;;  %v1374_v9 = vperm.slane %v8700_v20, 1  ;;  %v7389_v30 = vld [vmem:[%s9735_s16 + $0x210] sm:$0xff] }
 0x70f   : > { %v1596_v34 = vadd.f32 %v1595_v32, %v1367_v24  ;;  %2875 = vmatmul.bf16.vlgmr.msra.gmra.mxu0 %v2043_v27  ;;  %2945 = vmatpush.bf16.msrb.mxu1 %v7402_v16  ;;  %v1584_v29 = vpop.f32.mrf.mxu1  ;;  %v7396_v24 = vld [vmem:[%s9735_s16 + $0x248] sm:$0xff]  ;;  %v1376_v27 = vperm.slane %v8700_v20, 3  ;;  %v7405_v32 = vld [vmem:[%s9735_s16 + $0x290] sm:$0xff] }
 0x710   : > { %v1768_v36 = vmax.f32 %v1570_v31, 0.0  ;;  %2971 = vmatpush.bf16.msra.mxu0 %v7418_v26  ;;  %v1610_v37 = vpop.f32.mrf.mxu0  ;;  %v7412_v16 = vld [vmem:[%s9735_s16 + $0x2c8] sm:$0xff]  ;;  %v7395_v29 = vld [vmem:[%s9735_s16 + $0x240] sm:$0xff] }
 0x711   : > { %v1770_v39 = vmax.f32 %v1596_v34, 0.0  ;;  %v7411_v37 = vld [vmem:[%s9735_s16 + $0x2c0] sm:$0xff] }
 0x712   : > { %v2040_v41 = vpack.c.bf16 %v1768_v36, %v1768_v36 }
 0x713   : > { %v2042_v43 = vpack.c.bf16 %v1770_v39, %v1770_v39  ;;  %2946 = vmatpush.bf16.msrb.mxu1 %v7401_v35 }
 0x714   : > { %2972 = vmatpush.bf16.msra.mxu0 %v7417_v38  ;;  %2836 = vmatmul.bf16.vlgmr.msrb.gmra.mxu3 %v2040_v41  ;;  %v7434_v38 = vld [vmem:[%s9735_s16 + $0x378] sm:$0xff]  ;;  %v7388_v41 = vld [vmem:[%s9735_s16 + $0x208] sm:$0xff] }
 0x715   : > { %2862 = vmatmul.bf16.vlgmr.msrb.gmra.mxu2 %v2042_v43  ;;  %2932 = vmatpush.bf16.msrb.mxu3 %v7394_v40  ;;  %v1571_v47 = vpop.f32.mrf.mxu3  ;;  %v7450_v40 = vld [vmem:[%s9735_s16 + $0x3f8] sm:$0xff]  ;;  %v7404_v43 = vld [vmem:[%s9735_s16 + $0x288] sm:$0xff] }
 0x716   : > { %2958 = vmatpush.bf16.msrb.mxu2 %v7410_v42  ;;  %v1597_v50 = vpop.f32.mrf.mxu2 }
 0x717   : > { %2947 = vmatpush.bf16.msrb.mxu1 %v7400_v44  ;;  %v1634_v53 = vpop.f32.mrf.mxu1  ;;  %v1373_v44 = vperm.slane %v8700_v20, 0 }
 0x718   : > { %2973 = vmatpush.bf16.msra.mxu0 %v7416_v45  ;;  %v1635_v55 = vadd.f32 %v1634_v53, %v1370_v46  ;;  %v1660_v2 = vpop.f32.mrf.mxu0  ;;  %v1375_v46 = vperm.slane %v8700_v20, 2  ;;  %v7387_v53 = vld [vmem:[%s9735_s16 + $0x200] sm:$0xff] }
 0x719   : > { %v1661_v57 = vadd.f32 %v1660_v2, %v1372_v48  ;;  %2933 = vmatpush.bf16.msrb.mxu3 %v7393_v49  ;;  %v7433_v48 = vld [vmem:[%s9735_s16 + $0x370] sm:$0xff]  ;;  %v7403_v2 = vld [vmem:[%s9735_s16 + $0x280] sm:$0xff] }
 0x71a   : > { %v1773_v59 = vmax.f32 %v1635_v55, 0.0  ;;  %2959 = vmatpush.bf16.msrb.mxu2 %v7409_v52  ;;  %v7449_v52 = vld [vmem:[%s9735_s16 + $0x3f0] sm:$0xff] }
 0x71b   : > { %v1775_v62 = vmax.f32 %v1661_v57, 0.0  ;;  %2948 = vmatpush.bf16.msrb.mxu1 %v7399_v54 }
 0x71c   : > { %v2045_v1 = vpack.c.bf16 %v1773_v59, %v1773_v59  ;;  %2974 = vmatpush.bf16.msra.mxu0 %v7415_v56  ;;  %v7426_v56 = vld [vmem:[%s9735_s16 + $0x338] sm:$0xff] }
 0x71d   : > { %v2047_v4 = vpack.c.bf16 %v1775_v62, %v1775_v62  ;;  %2934 = vmatpush.bf16.msrb.mxu3 %v7392_v58  ;;  %v1621_v5 = vpop.f32.mrf.mxu3  ;;  %v7442_v59 = vld [vmem:[%s9735_s16 + $0x3b8] sm:$0xff]  ;;  %v7432_v62 = vld [vmem:[%s9735_s16 + $0x368] sm:$0xff] }
 0x71e   : > { %2960 = vmatpush.bf16.msrb.mxu2 %v7408_v60  ;;  %v1622_v7 = vadd.f32 %v1621_v5, %v1369_v61  ;;  %v1647_v8 = vpop.f32.mrf.mxu2  ;;  %2901 = vmatmul.bf16.vlgmr.msra.gmra.mxu1 %v2045_v1  ;;  %v7441_v5 = vld [vmem:[%s9735_s16 + $0x3b0] sm:$0xff] }
 0x71f   : > { %v1648_v13 = vadd.f32 %v1647_v8, %v1371_v63  ;;  %2927 = vmatmul.bf16.vlgmr.msrb.gmra.mxu0 %v2047_v4  ;;  %2949 = vmatpush.bf16.msrb.mxu1 %v7398_v0  ;;  %v1636_v11 = vpop.f32.mrf.mxu1  ;;  %v7448_v0 = vld [vmem:[%s9735_s16 + $0x3e8] sm:$0xff]  ;;  %v7447_v8 = vld [vmem:[%s9735_s16 + $0x3e0] sm:$0xff] }
 0x720   : > { %v1772_v28 = vmax.f32 %v1622_v7, 0.0  ;;  %2975 = vmatpush.bf16.msra.mxu0 %v7414_v3  ;;  %v1662_v15 = vpop.f32.mrf.mxu0  ;;  %v7425_v3 = vld [vmem:[%s9735_s16 + $0x330] sm:$0xff] }
 0x721   : > { %v1774_v18 = vmax.f32 %v1648_v13, 0.0  ;;  %2935 = vmatpush.bf16.msrb.mxu3 %v7391_v6  ;;  %v7431_v6 = vld [vmem:[%s9735_s16 + $0x360] sm:$0xff]  ;;  %v7424_v13 = vld [vmem:[%s9735_s16 + $0x328] sm:$0xff]  ;;  %v7430_v15 = vld [vmem:[%s9735_s16 + $0x358] sm:$0xff] }
 0x722   : > { %v2044_v21 = vpack.c.bf16 %v1772_v28, %v1772_v28  ;;  %2961 = vmatpush.bf16.msrb.mxu2 %v7407_v12 }
 0x723   : > { %v2046_v23 = vpack.c.bf16 %v1774_v18, %v1774_v18  ;;  %2950 = vmatpush.bf16.msrb.mxu1 %v7397_v14  ;;  %v7440_v14 = vld [vmem:[%s9735_s16 + $0x3a8] sm:$0xff]  ;;  %v7423_v18 = vld [vmem:[%s9735_s16 + $0x320] sm:$0xff] }
 0x724   : > { %2976 = vmatpush.bf16.msra.mxu0 %v7413_v17  ;;  %2888 = vmatmul.bf16.vlgmr.msra.gmra.mxu3 %v2044_v21  ;;  %v7446_v17 = vld [vmem:[%s9735_s16 + $0x3d8] sm:$0xff]  ;;  %v7429_v21 = vld [vmem:[%s9735_s16 + $0x350] sm:$0xff] }
 0x725   : > { %2914 = vmatmul.bf16.vlgmr.msra.gmra.mxu2 %v2046_v23  ;;  %2936 = vmatpush.bf16.msrb.mxu3 %v7390_v19  ;;  %v1623_v26 = vpop.f32.mrf.mxu3  ;;  %v7439_v19 = vld [vmem:[%s9735_s16 + $0x3a0] sm:$0xff] }
 0x726   : > { %2962 = vmatpush.bf16.msrb.mxu2 %v7406_v22  ;;  %v1649_v31 = vpop.f32.mrf.mxu2  ;;  %v1378_v22 = vperm.slane %v8700_v20, 5  ;;  %v7422_v26 = vld [vmem:[%s9735_s16 + $0x318] sm:$0xff] }
 0x727   : > { %2951 = vmatpush.bf16.msrb.mxu1 %v7396_v24  ;;  %v1686_v34 = vpop.f32.mrf.mxu1  ;;  %v7445_v24 = vld [vmem:[%s9735_s16 + $0x3d0] sm:$0xff] }
 0x728   : > { %2977 = vmatpush.bf16.msra.mxu0 %v7412_v16  ;;  %v1687_v35 = vadd.f32 %v1686_v34, %v1374_v9  ;;  %v1712_v36 = vpop.f32.mrf.mxu0  ;;  %v1380_v16 = vperm.slane %v8700_v20, 7 }
 0x729   : > { %v1713_v39 = vadd.f32 %v1712_v36, %v1376_v27  ;;  %2937 = vmatpush.bf16.msrb.mxu3 %v7389_v30  ;;  %v7438_v30 = vld [vmem:[%s9735_s16 + $0x398] sm:$0xff]  ;;  %v7421_v36 = vld [vmem:[%s9735_s16 + $0x310] sm:$0xff] }
 0x72a   : > { %v1777_v42 = vmax.f32 %v1687_v35, 0.0  ;;  %2963 = vmatpush.bf16.msrb.mxu2 %v7405_v32  ;;  %v7428_v32 = vld [vmem:[%s9735_s16 + $0x348] sm:$0xff] }
 0x72b   : > { %v1779_v45 = vmax.f32 %v1713_v39, 0.0  ;;  %2952 = vmatpush.bf16.msrb.mxu1 %v7395_v29  ;;  %v7444_v29 = vld [vmem:[%s9735_s16 + $0x3c8] sm:$0xff]  ;;  %v1379_v39 = vperm.slane %v8700_v20, 6 }
 0x72c   : > { %v2049_v47 = vpack.c.bf16 %v1777_v42, %v1777_v42  ;;  %2978 = vmatpush.bf16.msra.mxu0 %v7411_v37  ;;  %v1377_v37 = vperm.slane %v8700_v20, 4 }
 0x72d   : > { %v2051_v49 = vpack.c.bf16 %v1779_v45, %v1779_v45  ;;  %2938 = vmatpush.bf16.msrb.mxu3 %v7388_v41  ;;  %v1673_v50 = vpop.f32.mrf.mxu3 }
 0x72e   : > { %2964 = vmatpush.bf16.msrb.mxu2 %v7404_v43  ;;  %v1674_v54 = vadd.f32 %v1673_v50, %v1373_v44  ;;  %v1699_v55 = vpop.f32.mrf.mxu2  ;;  %2953 = vmatmul.bf16.vlgmr.msrb.gmra.mxu1 %v2049_v47  ;;  %v7443_v43 = vld [vmem:[%s9735_s16 + $0x3c0] sm:$0xff]  ;;  %v7436_v47 = vld [vmem:[%s9735_s16 + $0x388] sm:$0xff] }
 0x72f   : > { %2997 = vmatpush.bf16.msra.mxu1 %v7434_v38  ;;  %v1700_v57 = vadd.f32 %v1699_v55, %v1375_v46  ;;  %2979 = vmatmul.bf16.vlgmr.msra.gmra.mxu0 %v2051_v49  ;;  %v1688_v58 = vpop.f32.mrf.mxu1  ;;  %v7437_v38 = vld [vmem:[%s9735_s16 + $0x390] sm:$0xff]  ;;  %v7420_v46 = vld [vmem:[%s9735_s16 + $0x308] sm:$0xff] }
 0x730   : > { %3023 = vmatpush.bf16.msrb.mxu0 %v7450_v40  ;;  %v1776_v60 = vmax.f32 %v1674_v54, 0.0  ;;  %v1714_v61 = vpop.f32.mrf.mxu0  ;;  %v7427_v40 = vld [vmem:[%s9735_s16 + $0x340] sm:$0xff] }
 0x731   : > { %v1778_v63 = vmax.f32 %v1700_v57, 0.0  ;;  %2939 = vmatpush.bf16.msrb.mxu3 %v7387_v53  ;;  %v7435_v54 = vld [vmem:[%s9735_s16 + $0x380] sm:$0xff] }
 0x732   : > { %v2048_v1 = vpack.c.bf16 %v1776_v60, %v1776_v60  ;;  %2965 = vmatpush.bf16.msrb.mxu2 %v7403_v2 }
 0x733   : > { %2998 = vmatpush.bf16.msra.mxu1 %v7433_v48  ;;  %v2050_v4 = vpack.c.bf16 %v1778_v63, %v1778_v63 }
 0x734   : > { %3024 = vmatpush.bf16.msrb.mxu0 %v7449_v52  ;;  %2940 = vmatmul.bf16.vlgmr.msrb.gmra.mxu3 %v2048_v1  ;;  %v7419_v52 = vld [vmem:[%s9735_s16 + $0x300] sm:$0xff] }
 0x735   : > { %2984 = vmatpush.bf16.msra.mxu3 %v7426_v56  ;;  %2966 = vmatmul.bf16.vlgmr.msrb.gmra.mxu2 %v2050_v4  ;;  %v1675_v7 = vpop.f32.mrf.mxu3 }
 0x736   : > { %3010 = vmatpush.bf16.msra.mxu2 %v7442_v59  ;;  %v1701_v12 = vpop.f32.mrf.mxu2 }
 0x737   : > { %2999 = vmatpush.bf16.msra.mxu1 %v7432_v62  ;;  %v1738_v11 = vpop.f32.mrf.mxu1 }
 0x738   : > { %3025 = vmatpush.bf16.msrb.mxu0 %v7448_v0  ;;  %v1764_v28 = vpop.f32.mrf.mxu0  ;;  %v1739_v34 = vadd.f32 %v1738_v11, %v1378_v22 }
 0x739   : > { %2985 = vmatpush.bf16.msra.mxu3 %v7425_v3  ;;  %v1765_v35 = vadd.f32 %v1764_v28, %v1380_v16 }
 0x73a   : > { %3011 = vmatpush.bf16.msra.mxu2 %v7441_v5  ;;  %v1781_v41 = vmax.f32 %v1739_v34, 0.0 }
 0x73b   : > { %3000 = vmatpush.bf16.msra.mxu1 %v7431_v6  ;;  %v1783_v44 = vmax.f32 %v1765_v35, 0.0  ;;  %v7681_v6 = vld [vmem:[%s9736_s17] ss:$0 sm:$0xff] }
 0x73c   : > { %3026 = vmatpush.bf16.msrb.mxu0 %v7447_v8  ;;  %v2053_v49 = vpack.c.bf16 %v1781_v41, %v1781_v41 }
 0x73d   : > { %2986 = vmatpush.bf16.msra.mxu3 %v7424_v13  ;;  %v1725_v23 = vpop.f32.mrf.mxu3  ;;  %v2055_v50 = vpack.c.bf16 %v1783_v44, %v1783_v44 }
 0x73e   : > { %3012 = vmatpush.bf16.msra.mxu2 %v7440_v14  ;;  %v1751_v9 = vpop.f32.mrf.mxu2  ;;  %v1726_v20 = vadd.f32 %v1725_v23, %v1377_v37 }
 0x73f   : > { %3001 = vmatpush.bf16.msra.mxu1 %v7430_v15  ;;  %v1740_v27 = vpop.f32.mrf.mxu1  ;;  %v1752_v48 = vadd.f32 %v1751_v9, %v1379_v39 }
 0x740   : > { %3027 = vmatpush.bf16.msrb.mxu0 %v7446_v17  ;;  %v1766_v31 = vpop.f32.mrf.mxu0  ;;  %v1780_v53 = vmax.f32 %v1726_v20, 0.0 }
 0x741   : > { %2987 = vmatpush.bf16.msra.mxu3 %v7423_v18  ;;  %v1782_v55 = vmax.f32 %v1752_v48, 0.0 }
 0x742   : > { %3013 = vmatpush.bf16.msra.mxu2 %v7439_v19  ;;  %v2052_v2 = vpack.c.bf16 %v1780_v53, %v1780_v53 }
 0x743   : > { %3002 = vmatpush.bf16.msra.mxu1 %v7429_v21  ;;  %v2054_v56 = vpack.c.bf16 %v1782_v55, %v1782_v55 }
 0x744   : > { %3028 = vmatpush.bf16.msrb.mxu0 %v7445_v24 }
 0x745   : > { %2988 = vmatpush.bf16.msra.mxu3 %v7422_v26  ;;  %v1727_v42 = vpop.f32.mrf.mxu3 }
 0x746   : > { %3014 = vmatpush.bf16.msra.mxu2 %v7438_v30  ;;  %v1753_v45 = vpop.f32.mrf.mxu2 }
 0x747   : > { %3003 = vmatpush.bf16.msra.mxu1 %v7428_v32 }
 0x748   : > { %3029 = vmatpush.bf16.msrb.mxu0 %v7444_v29 }
 0x749   : > { %2989 = vmatpush.bf16.msra.mxu3 %v7421_v36 }
 0x74a   : > { %3015 = vmatpush.bf16.msra.mxu2 %v7437_v38 }
 0x74b   : > { %3004 = vmatpush.bf16.msra.mxu1 %v7427_v40 }
 0x74c   : > { %3030 = vmatpush.bf16.msrb.mxu0 %v7443_v43 }
 0x74d   : > { %2990 = vmatpush.bf16.msra.mxu3 %v7420_v46 }
 0x74e   : > { %3016 = vmatpush.bf16.msra.mxu2 %v7436_v47  ;;  %3005 = vmatmul.bf16.vlgmr.msra.gmra.mxu1 %v2053_v49 }
 0x74f   : > { %3031 = vmatmul.bf16.vlgmr.msrb.gmra.mxu0 %v2055_v50 }
 0x751   : > { %2991 = vmatpush.bf16.msra.mxu3 %v7419_v52 }
 0x752   : > { %3017 = vmatpush.bf16.msra.mxu2 %v7435_v54  ;;  %v7452_v54 = vld [vmem:[%s9803_s1 + $0x18] sm:$0xff] }
 0x754   : > { %2992 = vmatmul.bf16.vlgmr.msra.gmra.mxu3 %v2052_v2 }
 0x755   : > { %3018 = vmatmul.bf16.vlgmr.msra.gmra.mxu2 %v2054_v56  ;;  %3097 = vmatpush.bf16.msrb.mxu3 %v7452_v54 }
 0x78b   : > { %v2850_v57 = vpop.f32.mrf.mxu1 }
 0x78c   : > { %v2876_v58 = vpop.f32.mrf.mxu0 }
 0x793   : > { %v2852_v59 = vpop.f32.mrf.mxu1 }
 0x794   : > { %v2878_v60 = vpop.f32.mrf.mxu0 }
 0x797   : > { %v2837_v61 = vpop.f32.mrf.mxu3 }
 0x798   : > { %v2863_v62 = vpop.f32.mrf.mxu2  ;;  %v2838_v12 = vadd.f32 %v7681_v6, %v2837_v61 }
 0x79a   : > { %v2851_v14 = vadd.f32 %v2850_v57, %v2838_v12 }
 0x79b   : > { %v2902_v63 = vpop.f32.mrf.mxu1 }
 0x79c   : > { %v2928_v0 = vpop.f32.mrf.mxu0  ;;  %v2864_v17 = vadd.f32 %v2863_v62, %v2851_v14 }
 0x79e   : > { %v2877_v21 = vadd.f32 %v2876_v58, %v2864_v17 }
 0x79f   : > { %v2839_v1 = vpop.f32.mrf.mxu3 }
 0x7a0   : > { %v2865_v3 = vpop.f32.mrf.mxu2  ;;  %v7683_v1 = vld [vmem:[%s9732_s13 + $0x2] ss:$0 sm:$0xff] }
 0x7a3   : > { %v2904_v4 = vpop.f32.mrf.mxu1 }
 0x7a4   : > { %v2930_v5 = vpop.f32.mrf.mxu0 }
 0x7a7   : > { %v2889_v7 = vpop.f32.mrf.mxu3 }
 0x7a8   : > { %v2915_v8 = vpop.f32.mrf.mxu2  ;;  %v2890_v24 = vadd.f32 %v2889_v7, %v2877_v21  ;;  %v7684_v7 = vld [vmem:[%s9806_s2 + $0x1] ss:$0 sm:$0xff] }
 0x7aa   : > { %v2903_v16 = vadd.f32 %v2902_v63, %v2890_v24  ;;  %v7682_v63 = vld [vmem:[%s9731_s12 + $0x2] ss:$0 sm:$0xff] }
 0x7ab   : > { %v2954_v13 = vpop.f32.mrf.mxu1 }
 0x7ac   : > { %v2980_v11 = vpop.f32.mrf.mxu0  ;;  %v2916_v27 = vadd.f32 %v2915_v8, %v2903_v16 }
 0x7ae   : > { %v2929_v30 = vadd.f32 %v2928_v0, %v2916_v27 }
 0x7af   : > { %v2891_v28 = vpop.f32.mrf.mxu3 }
 0x7b0   : > { %v2917_v15 = vpop.f32.mrf.mxu2 }
 0x7b3   : > { %v2956_v18 = vpop.f32.mrf.mxu1 }
 0x7b4   : > { %v2982_v19 = vpop.f32.mrf.mxu0 }
 0x7b7   : > { %v2941_v22 = vpop.f32.mrf.mxu3 }
 0x7b8   : > { %v2967_v23 = vpop.f32.mrf.mxu2  ;;  %v2942_v31 = vadd.f32 %v2941_v22, %v2929_v30 }
 0x7ba   : > { %v2955_v29 = vadd.f32 %v2954_v13, %v2942_v31 }
 0x7bc   : > { %v2968_v35 = vadd.f32 %v2967_v23, %v2955_v29 }
 0x7be   : > { %v2981_v38 = vadd.f32 %v2980_v11, %v2968_v35 }
 0x7bf   : > { %v2943_v9 = vpop.f32.mrf.mxu3 }
 0x7c0   : > { %v2969_v26 = vpop.f32.mrf.mxu2 }
 0x7cb   : > { %v3006_v32 = vpop.f32.mrf.mxu1 }
 0x7cc   : > { %v3032_v34 = vpop.f32.mrf.mxu0 }
 0x7d3   : > { %v3008_v36 = vpop.f32.mrf.mxu1 }
 0x7d4   : > { %v3034_v37 = vpop.f32.mrf.mxu0 }
 0x7d7   : > { %v2993_v39 = vpop.f32.mrf.mxu3 }
 0x7d8   : > { %v2994_v40 = vadd.f32 %v2993_v39, %v2981_v38  ;;  %v3019_v41 = vpop.f32.mrf.mxu2 }
 0x7da   : > { %v3007_v42 = vadd.f32 %v3006_v32, %v2994_v40 }
 0x7dc   : > { %v3020_v43 = vadd.f32 %v3019_v41, %v3007_v42 }
 0x7de   : > { %v3033_v44 = vadd.f32 %v3032_v34, %v3020_v43 }
 0x7df   : > { %v2995_v45 = vpop.f32.mrf.mxu3 }
 0x7e0   : > { %v3021_v46 = vpop.f32.mrf.mxu2  ;;  %v3036_v20 = vadd.f32 %v3033_v44, %v8310_v25  ;;  %v7451_v25 = vld [vmem:[%s9803_s1 + $0x10] sm:$0xff] }
 0x7e1   : > { %3098 = vmatpush.bf16.msrb.mxu3 %v7451_v25 }
 0x7e2   : > { %v3039_v47 = vsel %vm829_vm0, %v3036_v20, 0.0 }
 0x7e3   : > { %3040 = vadd.xlane.f32.xlu1 %v3039_v47 }
 0x856   : > { %v3041_v48 = vpop.xlane.xlu1 %3040 }
 0x857   : > { %v3042_v49 = vmul.f32 %v3041_v48, %v8170_v51 }
 0x859   : > { %v3043_v50 = vsub.f32 %v3036_v20, %v3042_v49 }
 0x85b   : > { %v3044_v52 = vmul.f32 %v3043_v50, %v3043_v50 }
 0x85d   : > { %v3045_v53 = vsel %vm829_vm0, %v3044_v52, 0.0 }
 0x85e   : > { %3046 = vadd.xlane.f32.xlu0 %v3045_v53 }
 0x8d1   : > { %v3047_v55 = vpop.xlane.xlu0 %3046 }
 0x8d2   : > { %v3048_v2 = vmul.f32 %v3047_v55, %v8170_v51 }
 0x8d4   : > { %v3049_v56 = vadd.f32 1e-05, %v3048_v2 }
 0x8d6   : > { %7718 = vrsqrt.f32 %v3049_v56  ;;  %vm3056_vm11 = vweird.f32 %v3049_v56 }
 0x8dc   : > { %v7719_v57 = vpop.eup %7718 }
 0x8dd   : > { %v3051_v58 = vmul.f32 %v7719_v57, %v3049_v56  ;;  %vm3057_vm10 = vweird.f32 %v7719_v57 }
 0x8de   : > { %vm3058_vm12 = vmor %vm3056_vm11, %vm3057_vm10 }
 0x8df   : > { %v3052_v59 = vmul.f32 %v7719_v57, %v3051_v58 }
 0x8e1   : > { %v3053_v60 = vmul.f32 0.5, %v3052_v59 }
 0x8e3   : > { %v3054_v61 = vsub.f32 1.5, %v3053_v60 }
 0x8e5   : > { %v3055_v62 = vmul.f32 %v7719_v57, %v3054_v61 }
 0x8e7   : > { %v3059_v0 = vsel %vm3058_vm12, %v7719_v57, %v3055_v62 }
 0x8e8   : > { %v3060_v3 = vmul.f32 %v3059_v0, %v3043_v50 }
 0x8ea   : > { %v3062_v4 = vmul.f32 %v7682_v63, %v3060_v3 }
 0x8ec   : > { %v8859_v5 = vadd.f32 %v7683_v1, %v3062_v4 }
 0x8ee   : > { %v3070_v6 = vpack.c.bf16 %v8859_v5, %v8859_v5 }
 0x8f0   : > { %6262 = vmatmul.msk.bf16.vlgmr.msrb.gmra.mxu3 %vm829_vm0, %v3070_v6 }
 0x973   : > { %v3100_v8 = vpop.f32.mrf.mxu3 }
 0x974   : > { %v3101_v12 = vadd.f32 %v7684_v7, %v3100_v8 }
 0x976   : > { %v3104_v13 = vpack.c.bf16 %v3101_v12, %v3101_v12 }
 0x978   : > { %v3106_v11 = vunpack.c.l.b16 %v3104_v13 }
 0x97a   : > { %v8867_v14 = vpack.c.b16 %v3106_v11, %v3106_v11 }
 0x97b   : > { %v3102_v28 = vpop.f32.mrf.mxu3 }
 0x97c   : > { %3179 = vrot.lane.b32.xlu0 %v8867_v14, %s9816_s21  ;;  %3181 = vrot.lane.b32.xlu1 %v8867_v14, %s9817_s23 }
 0x97d   : > { %3108 = vrot.lane.b32.xlu2 %v8867_v14, %s9818_s19  ;;  %s9831_s19 = sld [smem:[#allocation23_spill]] }
 0x984   : > { %3327 = vrot.lane.b32.xlu0 %v8867_v14, %s9819_s3  ;;  %3252 = vrot.lane.b32.xlu1 %v8867_v14, %s9820_s18  ;;  %s9827_s18 = smov 8  }
 0x985   : > { %3254 = vrot.lane.b32.xlu2 %v8867_v14, %s9821_s7  ;;  %s9833_s7 = sld [smem:[#allocation26_spill]] }
 0x98d   : > { %3325 = vrot.lane.b32.xlu2 %v8867_v14, %s9822_s28  ;;  %s5413_s28 = scalar_lea.hbm %s9833_s7, %s7969_s6 }
 0x9d7   : > { %v3109_v15 = vpop.permute.xlu2 %3108 }
 0x9d8   : > { %v3114_v17 = vsel %vm852_vm2, %v3109_v15, 0 }
 0x9d9   : > { %3123 = vmatpush.bf16.xpose.msrb.mxu1 %v3114_v17 }
 0x9df   : > { %v3255_v18 = vpop.permute.xlu2 %3254 }
 0x9e0   : > { %v3260_v19 = vsel %vm852_vm2, %v3255_v18, 0  ;;  %6263 = vmatmul.msk.bf16.vlgmr.msrb.gmra.mxu1 %vm852_vm2, %v3104_v13 }
 0x9e1   : > { %3269 = vmatpush.bf16.xpose.msra.mxu1 %v3260_v19 }
 0x9e7   : > { %v3326_v26 = vpop.permute.xlu2 %3325 }
 0x9ee   : > { %v3180_v21 = vpop.permute.xlu0 %3179  ;;  %v3182_v22 = vpop.permute.xlu1 %3181 }
 0x9ef   : > { %v3187_v23 = vsel %vm852_vm2, %v3182_v22, 0 }
 0x9f0   : > { %3196 = vmatpush.bf16.xpose.msra.mxu0 %v3187_v23 }
 0x9f6   : > { %v3328_v24 = vpop.permute.xlu0 %3327  ;;  %v3253_v16 = vpop.permute.xlu1 %3252 }
 0x9f7   : > { %v3333_v9 = vsel %vm852_vm2, %v3328_v24, 0  ;;  %6266 = vmatmul.msk.bf16.vlgmr.msra.gmra.mxu0 %vm852_vm2, %v3180_v21  ;;  %6269 = vmatmul.msk.bf16.vlgmr.msra.gmra.mxu1 %vm852_vm2, %v3253_v16 }
 0x9f8   : > { %3342 = vmatpush.bf16.xpose.msrb.mxu0 %v3333_v9 }
 0xa07   : > { %6272 = vmatmul.msk.bf16.vlgmr.msrb.gmra.mxu0 %vm852_vm2, %v3326_v26 }
 0xa5d   : > { %v3125_v27 = vpop.f32.mrf.mxu1 }
 0xa5e   : > { %v3129_v30 = vmul.f32 0.35355338, %v3125_v27 }
 0xa60   : > { %v3130_v31 = vsel %vm8064_vm6, %v3129_v30, -inf }
 0xa61   : > { %v3131_v32 = vsel %vm852_vm2, %v3130_v31, -inf }
 0xa62   : > { %3132 = vmax.xlane.f32.xlu0 %v3131_v32 }
 0xa65   : > { %v3127_v34 = vpop.f32.mrf.mxu1 }
 0xa74   : > { %v3198_v29 = vpop.f32.mrf.mxu0  ;;  %v3271_v35 = vpop.f32.mrf.mxu1 }
 0xa75   : > { %v3202_v36 = vmul.f32 0.35355338, %v3198_v29  ;;  %v3275_v37 = vmul.f32 0.35355338, %v3271_v35 }
 0xa77   : > { %v3203_v38 = vsel %vm8064_vm6, %v3202_v36, -inf  ;;  %v3276_v39 = vsel %vm8064_vm6, %v3275_v37, -inf }
 0xa78   : > { %v3204_v40 = vsel %vm852_vm2, %v3203_v38, -inf  ;;  %v3277_v41 = vsel %vm852_vm2, %v3276_v39, -inf }
 0xa79   : > { %3205 = vmax.xlane.f32.xlu1 %v3204_v40  ;;  %3278 = vmax.xlane.f32.xlu2 %v3277_v41 }
 0xa7c   : > { %v3200_v42 = vpop.f32.mrf.mxu0  ;;  %v3273_v43 = vpop.f32.mrf.mxu1 }
 0xa84   : > { %v3344_v44 = vpop.f32.mrf.mxu0 }
 0xa85   : > { %v3348_v45 = vmul.f32 0.35355338, %v3344_v44 }
 0xa87   : > { %v3349_v46 = vsel %vm8064_vm6, %v3348_v45, -inf }
 0xa88   : > { %v3350_v20 = vsel %vm852_vm2, %v3349_v46, -inf }
 0xa89   : > { %3351 = vmax.xlane.f32.xlu0 %v3350_v20 }
 0xa8c   : > { %v3346_v47 = vpop.f32.mrf.mxu0 }
 0xa9d   : > { %3231 = vrot.lane.b32.xlu0 %v8867_v14, %s9823_s24  ;;  %s9828_s24 = smov 24  }
 0xad5   : > { %v3133_v48 = vpop.xlane.xlu0 %3132 }
 0xad6   : > { %v3134_v49 = vsub.f32 %v3130_v31, %v3133_v48 }
 0xad8   : > { %v3135_v50 = vmul.f32 1.442695, %v3134_v49 }
 0xada   : > { %7720 = vpow2.f32 %v3135_v50 }
 0xae0   : > { %v7721_v52 = vpop.eup %7720 }
 0xae1   : > { %v3137_v53 = vsel %vm852_vm2, %v7721_v52, 0.0 }
 0xae2   : > { %3138 = vadd.xlane.f32.xlu1 %v3137_v53 }
 0xaec   : > { %v3206_v54 = vpop.xlane.xlu1 %3205  ;;  %v3279_v25 = vpop.xlane.xlu2 %3278 }
 0xaed   : > { %v3207_v55 = vsub.f32 %v3203_v38, %v3206_v54  ;;  %v3280_v33 = vsub.f32 %v3276_v39, %v3279_v25 }
 0xaef   : > { %v3208_v2 = vmul.f32 1.442695, %v3207_v55  ;;  %v3281_v56 = vmul.f32 1.442695, %v3280_v33 }
 0xaf1   : > { %7722 = vpow2.f32 %v3208_v2 }
 0xaf2   : > { %7724 = vpow2.f32 %v3281_v56 }
 0xaf7   : > { %v8906_v57 = vpop.eup %7722 }
 0xaf8   : > { %v8908_v58 = vpop.eup %7724  ;;  %v3210_v59 = vsel %vm852_vm2, %v8906_v57, 0.0 }
 0xaf9   : > { %3211 = vadd.xlane.f32.xlu2 %v3210_v59  ;;  %v3283_v60 = vsel %vm852_vm2, %v8908_v58, 0.0 }
 0xafa   : > { %3284 = vadd.xlane.f32.xlu0 %v3283_v60 }
 0xafc   : > { %v3352_v61 = vpop.xlane.xlu0 %3351 }
 0xafd   : > { %v3353_v62 = vsub.f32 %v3349_v46, %v3352_v61 }
 0xaff   : > { %v3354_v63 = vmul.f32 1.442695, %v3353_v62  ;;  %v7456_v62 = vld [vmem:[%s9813_s30 + $0x18] sm:$0xff] }
 0xb01   : > { %7726 = vpow2.f32 %v3354_v63 }
 0xb07   : > { %v8914_v0 = vpop.eup %7726 }
 0xb08   : > { %v3356_v1 = vsel %vm852_vm2, %v8914_v0, 0.0 }
 0xb09   : > { %3357 = vadd.xlane.f32.xlu1 %v3356_v1 }
 0xb0e   : > { %3377 = vrot.lane.b32.xlu0 %v8867_v14, %s9824_s25  ;;  %s9829_s25 = smov 16  }
 0xb0f   : > { %v3232_v3 = vpop.permute.xlu0 %3231 }
 0xb10   : > { %v3237_v4 = vsel %vm905_vm7, %v3232_v3, 0 }
 0xb11   : > { %3158 = vrot.lane.b32.xlu2 %v8867_v14, %s9825_s22  ;;  %3246 = vmatpush.bf16.msra.mxu3 %v3237_v4  ;;  %v7455_v4 = vld [vmem:[%s9813_s30 + $0x10] sm:$0xff]  ;;  %s9834_s22 = sand.u32 1, %s7798_s26  }
 0xb22   : > { %3304 = vrot.lane.b32.xlu1 %v8867_v14, %s9826_s8  ;;  %s5397_s8 = scalar_lea.sflag [#allocation3], %s9834_s22 }
 0xb55   : > { %v3139_v6 = vpop.xlane.xlu1 %3138 }
 0xb56   : > { %7728 = vrcp.f32 %v3139_v6  ;;  %v3151_v13 = vand.u32 2147483648, %v3139_v6  ;;  %v3149_v28 = vand.u32 2147483647, %v3139_v6  ;;  %vm3145_vm14 = vweird.f32 %v3139_v6 }
 0xb58   : > { %v3152_v17 = vor.u32 1.1754944e-38, %v3151_v13  ;;  %vm3150_vm3 = vcmp.eq.f32.partialorder %v3149_v28, 8.507059e+37 }
 0xb5c   : > { %v7729_v7 = vpop.eup %7728 }
 0xb5d   : > { %v3141_v8 = vmul.f32 %v7729_v7, %v3139_v6  ;;  %vm3146_vm6 = vweird.f32 %v7729_v7 }
 0xb5e   : > { %vm3147_vm15 = vmor %vm3145_vm14, %vm3146_vm6 }
 0xb5f   : > { %v3142_v12 = vsub.f32 1.0, %v3141_v8 }
 0xb61   : > { %v3143_v11 = vmul.f32 %v7729_v7, %v3142_v12  ;;  %v7457_v12 = vld [vmem:[%s9729_s10 + $0x10] sm:$0xff] }
 0xb63   : > { %v3144_v15 = vadd.f32 %v7729_v7, %v3143_v11 }
 0xb65   : > { %v3148_v18 = vsel %vm3147_vm15, %v7729_v7, %v3144_v15  ;;  %v7458_v7 = vld [vmem:[%s9729_s10 + $0x18] sm:$0xff] }
 0xb66   : > { %v3153_v19 = vsel %vm3150_vm3, %v3152_v17, %v3148_v18  ;;  %3544 = vmatpush.bf16.msra.mxu0 %v7458_v7  ;;  %v6295_v17 = vld [vmem:[%s9728_s9 + $0x1] sm:$0x1] }
 0xb67   : > { %v3154_v21 = vmul.f32 %v7721_v52, %v3153_v19 }
 0xb69   : > { %6264 = vst.msk [vmem:[%s8109_s29 + $0x20] sm:$0xff] %vm852_vm2, %v3154_v21  ;;  %v3157_v34 = vpack.c.bf16 %v3154_v21, %v3154_v21 }
 0xb6a   : > { %3545 = vmatpush.bf16.msra.mxu0 %v7457_v12  ;;  %v6429_v12 = vld [vmem:[%s9733_s14 + $0x188] sm:$0xf] }
 0xb6c   : > { %v3212_v14 = vpop.xlane.xlu2 %3211 }
 0xb6d   : > { %v3285_v22 = vpop.xlane.xlu0 %3284  ;;  %7730 = vrcp.f32 %v3212_v14  ;;  %v3224_v32 = vand.u32 2147483648, %v3212_v14  ;;  %v3222_v36 = vand.u32 2147483647, %v3212_v14  ;;  %vm3218_vm8 = vweird.f32 %v3212_v14 }
 0xb6e   : > { %7732 = vrcp.f32 %v3285_v22  ;;  %v3297_v29 = vand.u32 2147483648, %v3285_v22  ;;  %v3295_v38 = vand.u32 2147483647, %v3285_v22  ;;  %vm3291_vm9 = vweird.f32 %v3285_v22 }
 0xb6f   : > { %v3225_v41 = vor.u32 1.1754944e-38, %v3224_v32  ;;  %vm3223_vm12 = vcmp.eq.f32.partialorder %v3222_v36, 8.507059e+37 }
 0xb70   : > { %v3298_v42 = vor.u32 1.1754944e-38, %v3297_v29  ;;  %vm3296_vm6 = vcmp.eq.f32.partialorder %v3295_v38, 8.507059e+37  ;;  %v7685_v29 = vld [vmem:[%s9815_s4 + $0x1] ss:$0 sm:$0xff] }
 0xb73   : > { %v7731_v23 = vpop.eup %7730 }
 0xb74   : > { %v7733_v24 = vpop.eup %7732  ;;  %v3214_v16 = vmul.f32 %v7731_v23, %v3212_v14  ;;  %v3159_v9 = vpop.permute.xlu2 %3158  ;;  %vm3219_vm4 = vweird.f32 %v7731_v23 }
 0xb75   : > { %v3287_v26 = vmul.f32 %v7733_v24, %v3285_v22  ;;  %v3164_v27 = vsel %vm905_vm7, %v3159_v9, 0  ;;  %vm3292_vm5 = vweird.f32 %v7733_v24  ;;  %vm3220_vm10 = vmor %vm3218_vm8, %vm3219_vm4  ;;  %v7454_v22 = vld [vmem:[%s9814_s0 + $0x18] sm:$0xff] }
 0xb76   : > { %v3215_v30 = vsub.f32 1.0, %v3214_v16  ;;  %3173 = vmatpush.bf16.msrb.mxu2 %v3164_v27  ;;  %vm3293_vm11 = vmor %vm3291_vm9, %vm3292_vm5  ;;  %3445 = vmatpush.bf16.msrb.mxu1 %v7454_v22  ;;  %v6359_v22 = vld [vmem:[%s9733_s14 + $0x140] sm:$0xf0] }
 0xb77   : > { %v3288_v31 = vsub.f32 1.0, %v3287_v26 }
 0xb78   : > { %v3216_v35 = vmul.f32 %v7731_v23, %v3215_v30 }
 0xb79   : > { %v3289_v37 = vmul.f32 %v7733_v24, %v3288_v31  ;;  %6265 = vmatmul.msk.bf16.vlgmr.msrb.gmra.mxu2 %vm852_vm2, %v3157_v34 }
 0xb7a   : > { %v3217_v39 = vadd.f32 %v7731_v23, %v3216_v35 }
 0xb7b   : > { %v3290_v40 = vadd.f32 %v7733_v24, %v3289_v37 }
 0xb7c   : > { %v3221_v43 = vsel %vm3220_vm10, %v7731_v23, %v3217_v39  ;;  %v3358_v44 = vpop.xlane.xlu1 %3357  ;;  %v7453_v23 = vld [vmem:[%s9814_s0 + $0x10] sm:$0xff]  ;;  %s7764_s0 = scalar_lea.hbm %s9833_s7, 2 }
 0xb7d   : > { %v3294_v45 = vsel %vm3293_vm11, %v7733_v24, %v3290_v40  ;;  %v3226_v46 = vsel %vm3223_vm12, %v3225_v41, %v3221_v43  ;;  %7734 = vrcp.f32 %v3358_v44  ;;  %v3370_v55 = vand.u32 2147483648, %v3358_v44  ;;  %3446 = vmatpush.bf16.msrb.mxu1 %v7453_v23  ;;  %v6365_v23 = vld [vmem:[%s9733_s14 + $0x108] sm:$0xf] }
 0xb7e   : > { %v3299_v20 = vsel %vm3296_vm6, %v3298_v42, %v3294_v45  ;;  %v3227_v47 = vmul.f32 %v8906_v57, %v3226_v46  ;;  %v3368_v2 = vand.u32 2147483647, %v3358_v44  ;;  %vm3364_vm15 = vweird.f32 %v3358_v44 }
 0xb7f   : > { %v3300_v48 = vmul.f32 %v8908_v58, %v3299_v20  ;;  %v3371_v57 = vor.u32 1.1754944e-38, %v3370_v55 }
 0xb80   : > { %6267 = vst.msk [vmem:[%s8109_s29 + $0x28] sm:$0xff] %vm852_vm2, %v3227_v47  ;;  %v3230_v49 = vpack.c.bf16 %v3227_v47, %v3227_v47  ;;  %v3378_v50 = vpop.permute.xlu0 %3377  ;;  %vm3369_vm4 = vcmp.eq.f32.partialorder %v3368_v2, 8.507059e+37  ;;  %v7687_v2 = vld [vmem:[%s9732_s13 + $0x4] ss:$0 sm:$0xff] }
 0xb81   : > { %6270 = vst.msk [vmem:[%s8109_s29 + $0x30] sm:$0xff] %vm852_vm2, %v3300_v48  ;;  %v3383_v52 = vsel %vm905_vm7, %v3378_v50, 0  ;;  %v3303_v3 = vpack.c.bf16 %v3300_v48, %v3300_v48 }
 0xb82   : > { %3392 = vmatpush.bf16.msrb.mxu3 %v3383_v52  ;;  %v6309_v52 = vld [vmem:[%s9730_s11 + $0x1] sm:$0x1] }
 0xb83   : > { %v7735_v53 = vpop.eup %7734  ;;  %6268 = vmatmul.msk.bf16.vlgmr.msra.gmra.mxu3 %vm852_vm2, %v3230_v49 }
 0xb84   : > { %v3360_v54 = vmul.f32 %v7735_v53, %v3358_v44  ;;  %vm3365_vm14 = vweird.f32 %v7735_v53 }
 0xb85   : > { %vm3366_vm3 = vmor %vm3364_vm15, %vm3365_vm14 }
 0xb86   : > { %v3361_v25 = vsub.f32 1.0, %v3360_v54  ;;  %v7686_v54 = vld [vmem:[%s9731_s12 + $0x4] ss:$0 sm:$0xff] }
 0xb88   : > { %v3362_v33 = vmul.f32 %v7735_v53, %v3361_v25 }
 0xb8a   : > { %v3363_v56 = vadd.f32 %v7735_v53, %v3362_v33 }
 0xb8c   : > { %v3367_v58 = vsel %vm3366_vm3, %v7735_v53, %v3363_v56 }
 0xb8d   : > { %v3372_v59 = vsel %vm3369_vm4, %v3371_v57, %v3367_v58 }
 0xb8e   : > { %v3373_v60 = vmul.f32 %v8914_v0, %v3372_v59 }
 0xb90   : > { %6273 = vst.msk [vmem:[%s8109_s29 + $0x38] sm:$0xff] %vm852_vm2, %v3373_v60  ;;  %v3376_v61 = vpack.c.bf16 %v3373_v60, %v3373_v60 }
 0xb93   : > { %6274 = vmatmul.msk.bf16.vlgmr.msrb.gmra.mxu3 %vm852_vm2, %v3376_v61 }
 0xb94   : > { %v3305_v63 = vpop.permute.xlu1 %3304 }
 0xb95   : > { %v3310_v1 = vsel %vm905_vm7, %v3305_v63, 0 }
 0xb96   : > { %3319 = vmatpush.bf16.msra.mxu2 %v3310_v1 }
 0xb99   : > { %6271 = vmatmul.msk.bf16.vlgmr.msra.gmra.mxu2 %vm852_vm2, %v3303_v3 }
 0xb9a   : > { %3508 = vmatpush.bf16.msrb.mxu2 %v7456_v62 }
 0xb9e   : > { %3509 = vmatpush.bf16.msrb.mxu2 %v7455_v4  ;;  %v6421_v4 = vld [vmem:[%s9733_s14 + $0x180] sm:$0xf] }
 0xba9   : > { %6304 = vmatmul.msk.bf16.vlgmr.msrb.gmra.mxu2 %vm829_vm0, %v8136_v10 }
 0xbfc   : > { %v3175_v0 = vpop.f32.mrf.mxu2 }
 0xc04   : > { %v3177_v6 = vpop.f32.mrf.mxu2 }
 0xc05   : > { %v7475_v6 = vld [vmem:[%s9733_s14 + $0x184] sm:$0xf] }
 0xc06   : > { %v3248_v8 = vpop.f32.mrf.mxu3 }
 0xc07   : > { %3399 = vrot.lane.b32.xlu2 %v3248_v8, %s9827_s18  ;;  %v6423_v8 = vld [vmem:[%s9733_s14 + $0x1c0] sm:$0xf0] }
 0xc0e   : > { %v3250_v13 = vpop.f32.mrf.mxu3 }
 0xc0f   : > { %v7484_v13 = vld [vmem:[%s9733_s14 + $0x1c4] sm:$0xf0] }
 0xc16   : > { %v3394_v11 = vpop.f32.mrf.mxu3 }
 0xc17   : > { %3407 = vrot.lane.b32.xlu0 %v3394_v11, %s9828_s24  ;;  %v6426_v11 = vor.u32 %v7475_v6, %v6423_v8  ;;  %v7479_v6 = vld [vmem:[%s9733_s14 + $0x1a4] sm:$0xf]  ;;  %s5415_s24 = sshll.u32 %s8060_s5, 4  ;;  %s5416_s24 = int_to_ptr.vmem [resolvable:$true] %s5415_s24 }
 0xc19   : > { %3834 = vmatpush.bf16.msra.mxu1 %v6426_v11  ;;  %v6463_v11 = vld [vmem:[%s9733_s14 + $0x1e8] sm:$0xf0] }
 0xc1c   : > { %v3321_v10 = vpop.f32.mrf.mxu2 }
 0xc1d   : > { %3403 = vrot.lane.b32.xlu1 %v3321_v10, %s9829_s25  ;;  %v6430_v10 = vor.u32 %v7484_v13, %v6429_v12  ;;  %v7488_v12 = vld [vmem:[%s9733_s14 + $0x1e4] sm:$0xf0]  ;;  %v7480_v13 = vld [vmem:[%s9733_s14 + $0x1ac] sm:$0xf]  ;;  %s5417_s25 = sshll.u32 %s5413_s28, 4  ;;  %s5418_s25 = int_to_ptr.hbm [resolvable:$true] %s5417_s25 }
 0xc1e   : > { %v3396_v28 = vpop.f32.mrf.mxu3 }
 0xc1f   : > { %v7476_v28 = vld [vmem:[%s9733_s14 + $0x18c] sm:$0xf]  ;;  %3847 = vmatpush.bf16.msra.mxu2 %v6430_v10 }
 0xc24   : > { %v3323_v15 = vpop.f32.mrf.mxu2 }
 0xc25   : > { %v6431_v15 = vld [vmem:[%s9733_s14 + $0x1c8] sm:$0xf0] }
 0xc2c   : > { %v3511_v18 = vpop.f32.mrf.mxu2 }
 0xc2d   : > { %v3512_v19 = vadd.f32 %v6295_v17, %v3511_v18  ;;  %v6434_v17 = vor.u32 %v7476_v28, %v6431_v15  ;;  %v6357_v18 = vld [vmem:[%s9733_s14 + $0x100] sm:$0xf] }
 0xc2f   : > { %v3520_v21 = vpack.c.bf16 %v3512_v19, %v3512_v19  ;;  %v7467_v19 = vld [vmem:[%s9733_s14 + $0x13c] sm:$0xf0]  ;;  %3860 = vmatpush.bf16.msrb.mxu0 %v6434_v17 }
 0xc30   : > { %v6389_v17 = vld [vmem:[%s9733_s14 + $0x120] sm:$0xf] }
 0xc31   : > { %6318 = vmatmul.msk.bf16.vlgmr.msra.gmra.mxu0 %vm829_vm0, %v3520_v21  ;;  %v7459_v21 = vld [vmem:[%s9733_s14 + $0x104] sm:$0xf] }
 0xc34   : > { %v3513_v14 = vpop.f32.mrf.mxu2 }
 0xc35   : > { %v6358_v14 = vor.u32 %v7467_v19, %v6357_v18  ;;  %v7471_v18 = vld [vmem:[%s9733_s14 + $0x15c] sm:$0xf0] }
 0xc61   : > { %v3400_v24 = vpop.permute.xlu2 %3399 }
 0xc62   : > { %v3410_v16 = vsel %vm852_vm2, %v3175_v0, %v3400_v24  ;;  %v7483_v0 = vld [vmem:[%s9733_s14 + $0x1bc] sm:$0xf0]  ;;  %v7468_v24 = vld [vmem:[%s9733_s14 + $0x144] sm:$0xf0] }
 0xc63   : > { %v6422_v7 = vor.u32 %v7483_v0, %v6421_v4  ;;  %v6453_v4 = vld [vmem:[%s9733_s14 + $0x1a0] sm:$0xf] }
 0xc64   : > { %v7487_v0 = vld [vmem:[%s9733_s14 + $0x1dc] sm:$0xf0] }
 0xc65   : > { %3821 = vmatpush.bf16.msra.mxu3 %v6422_v7  ;;  %v6455_v7 = vld [vmem:[%s9733_s14 + $0x1e0] sm:$0xf0]  ;;  %v6454_v28 = vor.u32 %v7487_v0, %v6453_v4 }
 0xc66   : > { %v6458_v15 = vor.u32 %v7479_v6, %v6455_v7  ;;  %v7519_v4 = vld [vmem:[%s9735_s16 + $0x4e0] sm:$0xff]  ;;  %v7502_v7 = vld [vmem:[%s9735_s16 + $0x458] sm:$0xff] }
 0xc67   : > { %v7495_v0 = vld [vmem:[%s9735_s16 + $0x420] sm:$0xff] }
 0xc68   : > { %v7511_v6 = vld [vmem:[%s9735_s16 + $0x4a0] sm:$0xff] }
 0xc69   : > { %3822 = vmatpush.bf16.msra.mxu3 %v6358_v14  ;;  %v7463_v14 = vld [vmem:[%s9733_s14 + $0x124] sm:$0xf] }
 0xc89   : > { %v3408_v26 = vpop.permute.xlu0 %3407 }
 0xc8f   : > { %v3404_v9 = vpop.permute.xlu1 %3403 }
 0xc90   : > { %v3411_v27 = vsel %vm782_vm1, %v3410_v16, %v3404_v9  ;;  %v6362_v16 = vor.u32 %v7459_v21, %v6359_v22  ;;  %v6366_v9 = vor.u32 %v7468_v24, %v6365_v23  ;;  %v6466_v21 = vor.u32 %v7480_v13, %v6463_v11  ;;  %v6391_v22 = vld [vmem:[%s9733_s14 + $0x160] sm:$0xf0]  ;;  %v6397_v23 = vld [vmem:[%s9733_s14 + $0x128] sm:$0xf]  ;;  %v7510_v13 = vld [vmem:[%s9735_s16 + $0x498] sm:$0xff] }
 0xc91   : > { %v3412_v30 = vsel %vm1155_vm13, %v3411_v27, %v3408_v26  ;;  %v7460_v26 = vld [vmem:[%s9733_s14 + $0x10c] sm:$0xf]  ;;  %v7472_v24 = vld [vmem:[%s9733_s14 + $0x164] sm:$0xf0]  ;;  %v7501_v11 = vld [vmem:[%s9735_s16 + $0x450] sm:$0xff] }
 0xc92   : > { %v3418_v31 = vpack.c.bf16 %v3412_v30, %v3412_v30  ;;  %v6367_v27 = vld [vmem:[%s9733_s14 + $0x148] sm:$0xf0]  ;;  %3835 = vmatpush.bf16.msra.mxu1 %v6362_v16  ;;  %3848 = vmatpush.bf16.msra.mxu2 %v6366_v9 }
 0xc93   : > { %v6370_v30 = vor.u32 %v7460_v26, %v6367_v27  ;;  %v7464_v16 = vld [vmem:[%s9733_s14 + $0x12c] sm:$0xf]  ;;  %v6390_v26 = vor.u32 %v7471_v18, %v6389_v17  ;;  %v6394_v27 = vor.u32 %v7463_v14, %v6391_v22  ;;  %v7499_v14 = vld [vmem:[%s9735_s16 + $0x440] sm:$0xff] }
 0xc94   : > { %6288 = vmatmul.msk.bf16.vlgmr.msrb.gmra.mxu1 %vm829_vm0, %v3418_v31  ;;  %v6399_v9 = vld [vmem:[%s9733_s14 + $0x168] sm:$0xf0]  ;;  %v7515_v22 = vld [vmem:[%s9735_s16 + $0x4c0] sm:$0xff] }
 0xc95   : > { %3861 = vmatpush.bf16.msrb.mxu0 %v6370_v30  ;;  %v6398_v30 = vor.u32 %v7472_v24, %v6397_v23  ;;  %v7500_v17 = vld [vmem:[%s9735_s16 + $0x448] sm:$0xff]  ;;  %v7538_v23 = vld [vmem:[%s9735_s16 + $0x578] sm:$0xff] }
 0xc96   : > { %v7516_v18 = vld [vmem:[%s9735_s16 + $0x4c8] sm:$0xff]  ;;  %v7554_v24 = vld [vmem:[%s9735_s16 + $0x5f8] sm:$0xff] }
 0xcae   : > { %v3547_v32 = vpop.f32.mrf.mxu0 }
 0xcaf   : > { %v3548_v55 = vadd.f32 %v6309_v52, %v3547_v32  ;;  %v6437_v32 = vld [vmem:[%s9733_s14 + $0x190] sm:$0xf] }
 0xcb1   : > { %v3551_v57 = vperm.slane %v3548_v55, 0 }
 0xcb6   : > { %v3549_v34 = vpop.f32.mrf.mxu0 }
 0xcb7   : > { %v7485_v34 = vld [vmem:[%s9733_s14 + $0x1cc] sm:$0xf0] }
 0xd11   : > { %v3448_v35 = vpop.f32.mrf.mxu1 }
 0xd12   : > { %v3449_v36 = vadd.f32 %v7685_v29, %v3448_v35  ;;  %v7477_v29 = vld [vmem:[%s9733_s14 + $0x194] sm:$0xf] }
 0xd14   : > { %v3452_v37 = vadd.f32 %v3449_v36, %v8859_v5  ;;  %v6438_v36 = vor.u32 %v7485_v34, %v6437_v32  ;;  %v6469_v32 = vld [vmem:[%s9733_s14 + $0x1b0] sm:$0xf] }
 0xd15   : > { %v7489_v34 = vld [vmem:[%s9733_s14 + $0x1ec] sm:$0xf0] }
 0xd16   : > { %v3457_v38 = vsel %vm829_vm0, %v3452_v37, 0.0  ;;  %3873 = vmatpush.bf16.msrb.mxu3 %v6438_v36  ;;  %v6477_v36 = vld [vmem:[%s9733_s14 + $0x1b8] sm:$0xf] }
 0xd17   : > { %3458 = vadd.xlane.f32.xlu2 %v3457_v38  ;;  %v6445_v38 = vld [vmem:[%s9733_s14 + $0x198] sm:$0xf] }
 0xd19   : > { %v3450_v39 = vpop.f32.mrf.mxu1 }
 0xd1a   : > { %v7486_v39 = vld [vmem:[%s9733_s14 + $0x1d4] sm:$0xf0] }
 0xd8a   : > { %v3459_v40 = vpop.xlane.xlu2 %3458 }
 0xd8b   : > { %v3460_v41 = vmul.f32 %v3459_v40, %v8170_v51 }
 0xd8d   : > { %v3461_v42 = vsub.f32 %v3452_v37, %v3460_v41  ;;  %v6439_v37 = vld [vmem:[%s9733_s14 + $0x1d0] sm:$0xf0]  ;;  %v6446_v41 = vor.u32 %v7486_v39, %v6445_v38  ;;  %v7482_v38 = vld [vmem:[%s9733_s14 + $0x1bc] sm:$0xf] }
 0xd8e   : > { %v6442_v40 = vor.u32 %v7477_v29, %v6439_v37  ;;  %v7481_v29 = vld [vmem:[%s9733_s14 + $0x1b4] sm:$0xf]  ;;  %v7490_v37 = vld [vmem:[%s9733_s14 + $0x1f4] sm:$0xf0]  ;;  %v6479_v39 = vld [vmem:[%s9733_s14 + $0x1f8] sm:$0xf0] }
 0xd8f   : > { %v3462_v43 = vmul.f32 %v3461_v42, %v3461_v42  ;;  %3899 = vmatpush.bf16.msrb.mxu2 %v6446_v41 }
 0xd90   : > { %3886 = vmatpush.bf16.msrb.mxu1 %v6442_v40  ;;  %v6470_v40 = vor.u32 %v7489_v34, %v6469_v32  ;;  %v7529_v32 = vld [vmem:[%s9735_s16 + $0x530] sm:$0xff] }
 0xd91   : > { %v3463_v44 = vsel %vm829_vm0, %v3462_v43, 0.0  ;;  %v6447_v43 = vld [vmem:[%s9733_s14 + $0x1d8] sm:$0xf0]  ;;  %v7545_v34 = vld [vmem:[%s9735_s16 + $0x5b0] sm:$0xff] }
 0xd92   : > { %3464 = vadd.xlane.f32.xlu1 %v3463_v44  ;;  %v6373_v44 = vld [vmem:[%s9733_s14 + $0x110] sm:$0xf] }
 0xe05   : > { %v3465_v45 = vpop.xlane.xlu1 %3464 }
 0xe06   : > { %v3466_v46 = vmul.f32 %v3465_v45, %v8170_v51 }
 0xe08   : > { %v3467_v20 = vadd.f32 1e-05, %v3466_v46 }
 0xe0a   : > { %7736 = vrsqrt.f32 %v3467_v20  ;;  %vm3474_vm2 = vweird.f32 %v3467_v20 }
 0xe10   : > { %v7737_v47 = vpop.eup %7736 }
 0xe11   : > { %v3469_v48 = vmul.f32 %v7737_v47, %v3467_v20  ;;  %vm3475_vm1 = vweird.f32 %v7737_v47  ;;  %v7469_v20 = vld [vmem:[%s9733_s14 + $0x14c] sm:$0xf0] }
 0xe12   : > { %vm3476_vm7 = vmor %vm3474_vm2, %vm3475_vm1 }
 0xe13   : > { %v3470_v5 = vmul.f32 %v7737_v47, %v3469_v48  ;;  %v6374_v48 = vor.u32 %v7469_v20, %v6373_v44  ;;  %v6478_v44 = vor.u32 %v7490_v37, %v6477_v36  ;;  %v6407_v20 = vld [vmem:[%s9733_s14 + $0x170] sm:$0xf0]  ;;  %v7528_v36 = vld [vmem:[%s9735_s16 + $0x528] sm:$0xff] }
 0xe14   : > { %v7544_v37 = vld [vmem:[%s9735_s16 + $0x5a8] sm:$0xff] }
 0xe15   : > { %v3471_v49 = vmul.f32 0.5, %v3470_v5  ;;  %v6375_v5 = vld [vmem:[%s9733_s14 + $0x150] sm:$0xf0]  ;;  %3874 = vmatpush.bf16.msrb.mxu3 %v6374_v48  ;;  %v7474_v48 = vld [vmem:[%s9733_s14 + $0x174] sm:$0xf0] }
 0xe17   : > { %v3472_v50 = vsub.f32 1.5, %v3471_v49  ;;  %v6381_v49 = vld [vmem:[%s9733_s14 + $0x118] sm:$0xf] }
 0xe19   : > { %v3473_v53 = vmul.f32 %v7737_v47, %v3472_v50  ;;  %v7470_v50 = vld [vmem:[%s9733_s14 + $0x154] sm:$0xf0] }
 0xe1b   : > { %v3477_v25 = vsel %vm3476_vm7, %v7737_v47, %v3473_v53  ;;  %v7461_v47 = vld [vmem:[%s9733_s14 + $0x114] sm:$0xf]  ;;  %v6382_v53 = vor.u32 %v7470_v50, %v6381_v49  ;;  %v6415_v49 = vld [vmem:[%s9733_s14 + $0x178] sm:$0xf0] }
 0xe1c   : > { %v3478_v33 = vmul.f32 %v3477_v25, %v3461_v42  ;;  %v7478_v42 = vld [vmem:[%s9733_s14 + $0x19c] sm:$0xf]  ;;  %v6378_v52 = vor.u32 %v7461_v47, %v6375_v5  ;;  %v6413_v47 = vld [vmem:[%s9733_s14 + $0x138] sm:$0xf] }
 0xe1d   : > { %v6450_v46 = vor.u32 %v7478_v42, %v6447_v43  ;;  %v6383_v25 = vld [vmem:[%s9733_s14 + $0x158] sm:$0xf0]  ;;  %3900 = vmatpush.bf16.msrb.mxu2 %v6382_v53  ;;  %v6405_v42 = vld [vmem:[%s9733_s14 + $0x130] sm:$0xf]  ;;  %v6414_v53 = vor.u32 %v7474_v48, %v6413_v47  ;;  %v7532_v47 = vld [vmem:[%s9735_s16 + $0x548] sm:$0xff] }
 0xe1e   : > { %v3480_v56 = vmul.f32 %v7686_v54, %v3478_v33  ;;  %v7462_v54 = vld [vmem:[%s9733_s14 + $0x11c] sm:$0xf]  ;;  %3887 = vmatpush.bf16.msrb.mxu1 %v6378_v52  ;;  %v7473_v43 = vld [vmem:[%s9733_s14 + $0x16c] sm:$0xf0]  ;;  %v7548_v48 = vld [vmem:[%s9735_s16 + $0x5c8] sm:$0xff] }
 0xe1f   : > { %3912 = vmatpush.bf16.msra.mxu0 %v6450_v46  ;;  %v6386_v55 = vor.u32 %v7462_v54, %v6383_v25  ;;  %v7465_v46 = vld [vmem:[%s9733_s14 + $0x134] sm:$0xf]  ;;  %v7466_v5 = vld [vmem:[%s9733_s14 + $0x13c] sm:$0xf]  ;;  %v6406_v50 = vor.u32 %v7473_v43, %v6405_v42 }
 0xe20   : > { %v3482_v58 = vadd.f32 %v7687_v2, %v3480_v56  ;;  %v6410_v52 = vor.u32 %v7465_v46, %v6407_v20  ;;  %v6418_v54 = vor.u32 %v7466_v5, %v6415_v49  ;;  %v7506_v25 = vld [vmem:[%s9735_s16 + $0x478] sm:$0xff]  ;;  %v7525_v5 = vld [vmem:[%s9735_s16 + $0x510] sm:$0xff] }
 0xe21   : > { %v7534_v42 = vld [vmem:[%s9735_s16 + $0x558] sm:$0xff]  ;;  %v7541_v49 = vld [vmem:[%s9735_s16 + $0x590] sm:$0xff] }
 0xe22   : > { %v3552_v59 = vadd.f32 %v3551_v57, %v3482_v58  ;;  %v7550_v43 = vld [vmem:[%s9735_s16 + $0x5d8] sm:$0xff] }
 0xe23   : > { %3913 = vmatpush.bf16.msra.mxu0 %v6386_v55  ;;  %v7522_v55 = vld [vmem:[%s9735_s16 + $0x4f8] sm:$0xff] }
 0xe24   : > { %v3555_v60 = vsel %vm829_vm0, %v3552_v59, 0.0  ;;  %v7526_v46 = vld [vmem:[%s9735_s16 + $0x518] sm:$0xff] }
 0xe25   : > { %3556 = vadd.xlane.f32.xlu0 %v3555_v60  ;;  %v7688_v60 = vld [vmem:[%s9731_s12 + $0x5] ss:$0 sm:$0xff]  ;;  %v7542_v20 = vld [vmem:[%s9735_s16 + $0x598] sm:$0xff] }
 0xe98   : > { %v3557_v61 = vpop.xlane.xlu0 %3556 }
 0xe99   : > { %v3558_v62 = vmul.f32 %v3557_v61, %v8170_v51 }
 0xe9b   : > { %v8993_v63 = vsub.f32 %v3552_v59, %v3558_v62  ;;  %v7689_v62 = vld [vmem:[%s9732_s13 + $0x5] ss:$0 sm:$0xff] }
 0xe9d   : > { %v3560_v1 = vmul.f32 %v8993_v63, %v8993_v63 }
 0xe9f   : > { %v3561_v3 = vsel %vm829_vm0, %v3560_v1, 0.0 }
 0xea0   : > { %3562 = vadd.xlane.f32.xlu2 %v3561_v3 }
 0xf13   : > { %v3563_v31 = vpop.xlane.xlu2 %3562 }
 0xf14   : > { %v3564_v35 = vmul.f32 %v3563_v31, %v8170_v51  ;;  %v6402_v31 = vor.u32 %v7464_v16, %v6399_v9  ;;  %v7491_v16 = vld [vmem:[%s9735_s16 + $0x400] sm:$0xff] }
 0xf15   : > { %v7507_v9 = vld [vmem:[%s9735_s16 + $0x480] sm:$0xff] }
 0xf16   : > { %v3565_v45 = vadd.f32 1e-05, %v3564_v35  ;;  %v6471_v35 = vld [vmem:[%s9733_s14 + $0x1f0] sm:$0xf0] }
 0xf17   : > { %v6474_v41 = vor.u32 %v7481_v29, %v6471_v35  ;;  %v7536_v29 = vld [vmem:[%s9735_s16 + $0x568] sm:$0xff] }
 0xf18   : > { %7738 = vrsqrt.f32 %v3565_v45  ;;  %vm3572_vm5 = vweird.f32 %v3565_v45  ;;  %v7552_v35 = vld [vmem:[%s9735_s16 + $0x5e8] sm:$0xff] }
 0xf1e   : > { %v7739_v33 = vpop.eup %7738 }
 0xf1f   : > { %v3567_v2 = vmul.f32 %v7739_v33, %v3565_v45  ;;  %vm3573_vm13 = vweird.f32 %v7739_v33  ;;  %v6482_v45 = vor.u32 %v7482_v38, %v6479_v39  ;;  %v7535_v38 = vld [vmem:[%s9735_s16 + $0x560] sm:$0xff] }
 0xf20   : > { %vm3574_vm8 = vmor %vm3572_vm5, %vm3573_vm13  ;;  %v7551_v39 = vld [vmem:[%s9735_s16 + $0x5e0] sm:$0xff] }
 0xf21   : > { %v3568_v56 = vmul.f32 %v7739_v33, %v3567_v2  ;;  %v7514_v2 = vld [vmem:[%s9735_s16 + $0x4b8] sm:$0xff] }
 0xf23   : > { %v3569_v57 = vmul.f32 0.5, %v3568_v56  ;;  %v7505_v56 = vld [vmem:[%s9735_s16 + $0x470] sm:$0xff] }
 0xf25   : > { %v3570_v58 = vsub.f32 1.5, %v3569_v57  ;;  %v7521_v57 = vld [vmem:[%s9735_s16 + $0x4f0] sm:$0xff] }
 0xf27   : > { %v3571_v59 = vmul.f32 %v7739_v33, %v3570_v58  ;;  %v7497_v58 = vld [vmem:[%s9735_s16 + $0x430] sm:$0xff] }
 0xf29   : > { %v3575_v61 = vsel %vm3574_vm8, %v7739_v33, %v3571_v59  ;;  %v7498_v33 = vld [vmem:[%s9735_s16 + $0x438] sm:$0xff]  ;;  %v7513_v59 = vld [vmem:[%s9735_s16 + $0x4b0] sm:$0xff] }
 0xf2a   : > { %v3576_v1 = vmul.f32 %v3575_v61, %v8993_v63  ;;  %v6461_v63 = vld [vmem:[%s9733_s14 + $0x1a8] sm:$0xf] }
 0xf2b   : > { %v6462_v19 = vor.u32 %v7488_v12, %v6461_v63  ;;  %v7520_v61 = vld [vmem:[%s9735_s16 + $0x4e8] sm:$0xff]  ;;  %v7518_v63 = vld [vmem:[%s9735_s16 + $0x4d8] sm:$0xff] }
 0xf2c   : > { %v3578_v3 = vmul.f32 %v7688_v60, %v3576_v1  ;;  %v7504_v60 = vld [vmem:[%s9735_s16 + $0x468] sm:$0xff]  ;;  %v7494_v12 = vld [vmem:[%s9735_s16 + $0x418] sm:$0xff] }
 0xf2d   : > { %v7512_v1 = vld [vmem:[%s9735_s16 + $0x4a8] sm:$0xff] }
 0xf2e   : > { %v9117_v8 = vadd.f32 %v7689_v62, %v3578_v3  ;;  %v7496_v62 = vld [vmem:[%s9735_s16 + $0x428] sm:$0xff]  ;;  %v7503_v3 = vld [vmem:[%s9735_s16 + $0x460] sm:$0xff] }
 0xf30   : > { %v9130_v10 = vpack.c.bf16 %v9117_v8, %v9117_v8 }
 0xf32   : > { %6483 = vmatmul.msk.bf16.vlgmr.msra.gmra.mxu3 %vm829_vm0, %v9130_v10  ;;  %6484 = vmatmul.msk.bf16.vlgmr.msra.gmra.mxu1 %vm829_vm0, %v9130_v10 }
 0xf33   : > { %6485 = vmatmul.msk.bf16.vlgmr.msra.gmra.mxu2 %vm829_vm0, %v9130_v10  ;;  %6486 = vmatmul.msk.bf16.vlgmr.msrb.gmra.mxu0 %vm829_vm0, %v9130_v10 }
 0xf34   : > { %3925 = vmatpush.bf16.msra.mxu3 %v6454_v28  ;;  %3938 = vmatpush.bf16.msra.mxu1 %v6458_v15  ;;  %v7517_v28 = vld [vmem:[%s9735_s16 + $0x4d0] sm:$0xff] }
 0xf35   : > { %3951 = vmatpush.bf16.msra.mxu2 %v6462_v19  ;;  %3964 = vmatpush.bf16.msrb.mxu0 %v6466_v21  ;;  %v7493_v15 = vld [vmem:[%s9735_s16 + $0x410] sm:$0xff]  ;;  %v7492_v19 = vld [vmem:[%s9735_s16 + $0x408] sm:$0xff] }
 0xf36   : > { %v7508_v21 = vld [vmem:[%s9735_s16 + $0x488] sm:$0xff] }
 0xf38   : > { %3926 = vmatpush.bf16.msra.mxu3 %v6390_v26  ;;  %3939 = vmatpush.bf16.msra.mxu1 %v6394_v27  ;;  %v7530_v26 = vld [vmem:[%s9735_s16 + $0x538] sm:$0xff] }
 0xf39   : > { %3952 = vmatpush.bf16.msra.mxu2 %v6398_v30  ;;  %3965 = vmatpush.bf16.msrb.mxu0 %v6402_v31  ;;  %v7546_v27 = vld [vmem:[%s9735_s16 + $0x5b8] sm:$0xff]  ;;  %v7537_v30 = vld [vmem:[%s9735_s16 + $0x570] sm:$0xff] }
 0xf3a   : > { %v7553_v31 = vld [vmem:[%s9735_s16 + $0x5f0] sm:$0xff] }
 0xf42   : > { %6487 = vmatmul.msk.bf16.vlgmr.msrb.gmra.mxu3 %vm829_vm0, %v9130_v10  ;;  %6488 = vmatmul.msk.bf16.vlgmr.msrb.gmra.mxu1 %vm829_vm0, %v9130_v10 }
 0xf43   : > { %6489 = vmatmul.msk.bf16.vlgmr.msrb.gmra.mxu2 %vm829_vm0, %v9130_v10  ;;  %6490 = vmatmul.msk.bf16.vlgmr.msra.gmra.mxu0 %vm829_vm0, %v9130_v10 }
 0xf44   : > { %3977 = vmatpush.bf16.msrb.mxu3 %v6470_v40  ;;  %3990 = vmatpush.bf16.msrb.mxu1 %v6474_v41  ;;  %v7527_v40 = vld [vmem:[%s9735_s16 + $0x520] sm:$0xff] }
 0xf45   : > { %4003 = vmatpush.bf16.msrb.mxu2 %v6478_v44  ;;  %4016 = vmatpush.bf16.msra.mxu0 %v6482_v45  ;;  %v7543_v41 = vld [vmem:[%s9735_s16 + $0x5a0] sm:$0xff]  ;;  %v7533_v44 = vld [vmem:[%s9735_s16 + $0x550] sm:$0xff] }
 0xf46   : > { %v7549_v45 = vld [vmem:[%s9735_s16 + $0x5d0] sm:$0xff] }
 0xf48   : > { %3978 = vmatpush.bf16.msrb.mxu3 %v6406_v50  ;;  %3991 = vmatpush.bf16.msrb.mxu1 %v6410_v52  ;;  %v7531_v50 = vld [vmem:[%s9735_s16 + $0x540] sm:$0xff] }
 0xf49   : > { %4004 = vmatpush.bf16.msrb.mxu2 %v6414_v53  ;;  %4017 = vmatpush.bf16.msra.mxu0 %v6418_v54  ;;  %v7547_v52 = vld [vmem:[%s9735_s16 + $0x5c0] sm:$0xff]  ;;  %v7524_v53 = vld [vmem:[%s9735_s16 + $0x508] sm:$0xff] }
 0xf4a   : > { %v7540_v54 = vld [vmem:[%s9735_s16 + $0x588] sm:$0xff] }
 0xf52   : > { %6491 = vmatmul.msk.bf16.vlgmr.msra.gmra.mxu3 %vm829_vm0, %v9130_v10  ;;  %6492 = vmatmul.msk.bf16.vlgmr.msra.gmra.mxu1 %vm829_vm0, %v9130_v10 }
 0xf53   : > { %6493 = vmatmul.msk.bf16.vlgmr.msra.gmra.mxu2 %vm829_vm0, %v9130_v10  ;;  %6494 = vmatmul.msk.bf16.vlgmr.msrb.gmra.mxu0 %vm829_vm0, %v9130_v10 }
 0xf54   : > { %5098 = vmatpush.bf16.msra.mxu1 %v7506_v25  ;;  %5124 = vmatpush.bf16.msrb.mxu0 %v7522_v55  ;;  %v7523_v25 = vld [vmem:[%s9735_s16 + $0x500] sm:$0xff] }
 0xf55   : > { %5085 = vmatpush.bf16.msra.mxu3 %v7498_v33  ;;  %5111 = vmatpush.bf16.msra.mxu2 %v7514_v2  ;;  %v7539_v55 = vld [vmem:[%s9735_s16 + $0x580] sm:$0xff]  ;;  %v9431_v33 = vld [vmem:[%s9734_s15 + $0x10] sm:$0xff] }
 0xf56   : > { %v3621_v2 = vperm.slane %v9431_v33, 1 }
 0xf58   : > { %5099 = vmatpush.bf16.msra.mxu1 %v7505_v56  ;;  %5125 = vmatpush.bf16.msrb.mxu0 %v7521_v57  ;;  %v3623_v56 = vperm.slane %v9431_v33, 3 }
 0xf59   : > { %5086 = vmatpush.bf16.msra.mxu3 %v7497_v58  ;;  %5112 = vmatpush.bf16.msra.mxu2 %v7513_v59 }
 0xf5c   : > { %5100 = vmatpush.bf16.msra.mxu1 %v7504_v60  ;;  %5126 = vmatpush.bf16.msrb.mxu0 %v7520_v61 }
 0xf5d   : > { %5087 = vmatpush.bf16.msra.mxu3 %v7496_v62  ;;  %5113 = vmatpush.bf16.msra.mxu2 %v7512_v1  ;;  %v3620_v62 = vperm.slane %v9431_v33, 0 }
 0xf60   : > { %5101 = vmatpush.bf16.msra.mxu1 %v7503_v3  ;;  %5127 = vmatpush.bf16.msrb.mxu0 %v7519_v4  ;;  %v3622_v3 = vperm.slane %v9431_v33, 2  ;;  %v7570_v4 = vld [vmem:[%s9735_s16 + $0x678] sm:$0xff] }
 0xf61   : > { %5088 = vmatpush.bf16.msra.mxu3 %v7495_v0  ;;  %5114 = vmatpush.bf16.msra.mxu2 %v7511_v6  ;;  %v7586_v6 = vld [vmem:[%s9735_s16 + $0x6f8] sm:$0xff] }
 0xf62   : > { %6495 = vmatmul.msk.bf16.vlgmr.msrb.gmra.mxu3 %vm829_vm0, %v9130_v10  ;;  %6496 = vmatmul.msk.bf16.vlgmr.msrb.gmra.mxu1 %vm829_vm0, %v9130_v10 }
 0xf63   : > { %6497 = vmatmul.msk.bf16.vlgmr.msrb.gmra.mxu2 %vm829_vm0, %v9130_v10  ;;  %6498 = vmatmul.msk.bf16.vlgmr.msra.gmra.mxu0 %vm829_vm0, %v9130_v10  ;;  %v7509_v10 = vld [vmem:[%s9735_s16 + $0x490] sm:$0xff] }
 0xf64   : > { %5102 = vmatpush.bf16.msra.mxu1 %v7502_v7  ;;  %5128 = vmatpush.bf16.msrb.mxu0 %v7518_v63 }
 0xf65   : > { %5089 = vmatpush.bf16.msra.mxu3 %v7494_v12  ;;  %5115 = vmatpush.bf16.msra.mxu2 %v7510_v13 }
 0xf68   : > { %5103 = vmatpush.bf16.msra.mxu1 %v7501_v11  ;;  %5129 = vmatpush.bf16.msrb.mxu0 %v7517_v28 }
 0xf69   : > { %5090 = vmatpush.bf16.msra.mxu3 %v7493_v15  ;;  %5116 = vmatpush.bf16.msra.mxu2 %v7509_v10  ;;  %v7569_v15 = vld [vmem:[%s9735_s16 + $0x670] sm:$0xff] }
 0xf6c   : > { %5104 = vmatpush.bf16.msra.mxu1 %v7500_v17  ;;  %5130 = vmatpush.bf16.msrb.mxu0 %v7516_v18  ;;  %v7585_v18 = vld [vmem:[%s9735_s16 + $0x6f0] sm:$0xff] }
 0xf6d   : > { %5091 = vmatpush.bf16.msra.mxu3 %v7492_v19  ;;  %5117 = vmatpush.bf16.msra.mxu2 %v7508_v21  ;;  %v7562_v21 = vld [vmem:[%s9735_s16 + $0x638] sm:$0xff] }
 0xf70   : > { %5105 = vmatpush.bf16.msra.mxu1 %v7499_v14  ;;  %5131 = vmatpush.bf16.msrb.mxu0 %v7515_v22  ;;  %v7578_v22 = vld [vmem:[%s9735_s16 + $0x6b8] sm:$0xff] }
 0xf71   : > { %5092 = vmatpush.bf16.msra.mxu3 %v7491_v16  ;;  %5118 = vmatpush.bf16.msra.mxu2 %v7507_v9  ;;  %v7584_v16 = vld [vmem:[%s9735_s16 + $0x6e8] sm:$0xff]  ;;  %v3625_v9 = vperm.slane %v9431_v33, 5 }
 0xf74   : > { %5150 = vmatpush.bf16.msrb.mxu1 %v7538_v23  ;;  %5176 = vmatpush.bf16.msra.mxu0 %v7554_v24  ;;  %v7568_v24 = vld [vmem:[%s9735_s16 + $0x668] sm:$0xff] }
 0xf75   : > { %5137 = vmatpush.bf16.msrb.mxu3 %v7530_v26  ;;  %5163 = vmatpush.bf16.msrb.mxu2 %v7546_v27  ;;  %v3627_v27 = vperm.slane %v9431_v33, 7 }
 0xf78   : > { %5151 = vmatpush.bf16.msrb.mxu1 %v7537_v30  ;;  %5177 = vmatpush.bf16.msra.mxu0 %v7553_v31  ;;  %v7561_v30 = vld [vmem:[%s9735_s16 + $0x630] sm:$0xff] }
 0xf79   : > { %5138 = vmatpush.bf16.msrb.mxu3 %v7529_v32  ;;  %5164 = vmatpush.bf16.msrb.mxu2 %v7545_v34  ;;  %v7577_v32 = vld [vmem:[%s9735_s16 + $0x6b0] sm:$0xff] }
 0xf7c   : > { %5152 = vmatpush.bf16.msrb.mxu1 %v7536_v29  ;;  %5178 = vmatpush.bf16.msra.mxu0 %v7552_v35  ;;  %v7567_v29 = vld [vmem:[%s9735_s16 + $0x660] sm:$0xff] }
 0xf7d   : > { %5139 = vmatpush.bf16.msrb.mxu3 %v7528_v36  ;;  %5165 = vmatpush.bf16.msrb.mxu2 %v7544_v37  ;;  %v7583_v37 = vld [vmem:[%s9735_s16 + $0x6e0] sm:$0xff] }
 0xf80   : > { %5153 = vmatpush.bf16.msrb.mxu1 %v7535_v38  ;;  %5179 = vmatpush.bf16.msra.mxu0 %v7551_v39  ;;  %v7560_v39 = vld [vmem:[%s9735_s16 + $0x628] sm:$0xff] }
 0xf81   : > { %5140 = vmatpush.bf16.msrb.mxu3 %v7527_v40  ;;  %5166 = vmatpush.bf16.msrb.mxu2 %v7543_v41  ;;  %v7576_v41 = vld [vmem:[%s9735_s16 + $0x6a8] sm:$0xff] }
 0xf84   : > { %5154 = vmatpush.bf16.msrb.mxu1 %v7534_v42  ;;  %5180 = vmatpush.bf16.msra.mxu0 %v7550_v43  ;;  %v3624_v42 = vperm.slane %v9431_v33, 4 }
 0xf85   : > { %5141 = vmatpush.bf16.msrb.mxu3 %v7526_v46  ;;  %5167 = vmatpush.bf16.msrb.mxu2 %v7542_v20  ;;  %v7582_v20 = vld [vmem:[%s9735_s16 + $0x6d8] sm:$0xff] }
 0xf88   : > { %5155 = vmatpush.bf16.msrb.mxu1 %v7533_v44  ;;  %5181 = vmatpush.bf16.msra.mxu0 %v7549_v45  ;;  %v3626_v44 = vperm.slane %v9431_v33, 6  ;;  %v7566_v45 = vld [vmem:[%s9735_s16 + $0x658] sm:$0xff] }
 0xf89   : > { %5142 = vmatpush.bf16.msrb.mxu3 %v7525_v5  ;;  %5168 = vmatpush.bf16.msrb.mxu2 %v7541_v49  ;;  %v7559_v5 = vld [vmem:[%s9735_s16 + $0x620] sm:$0xff] }
 0xf8c   : > { %5156 = vmatpush.bf16.msrb.mxu1 %v7532_v47  ;;  %5182 = vmatpush.bf16.msra.mxu0 %v7548_v48 }
 0xf8d   : > { %5143 = vmatpush.bf16.msrb.mxu3 %v7524_v53  ;;  %5169 = vmatpush.bf16.msrb.mxu2 %v7540_v54 }
 0xf90   : > { %5157 = vmatpush.bf16.msrb.mxu1 %v7531_v50  ;;  %5183 = vmatpush.bf16.msra.mxu0 %v7547_v52  ;;  %v7575_v52 = vld [vmem:[%s9735_s16 + $0x6a0] sm:$0xff] }
 0xf91   : > { %5144 = vmatpush.bf16.msrb.mxu3 %v7523_v25  ;;  %5170 = vmatpush.bf16.msrb.mxu2 %v7539_v55  ;;  %v7565_v25 = vld [vmem:[%s9735_s16 + $0x650] sm:$0xff] }
 0xfaf   : > { %v3837_v57 = vpop.f32.mrf.mxu1 }
 0xfb0   : > { %v3838_v58 = vadd.f32 %v3837_v57, %v3621_v2  ;;  %v3863_v59 = vpop.f32.mrf.mxu0  ;;  %v7581_v2 = vld [vmem:[%s9735_s16 + $0x6d0] sm:$0xff]  ;;  %v7558_v57 = vld [vmem:[%s9735_s16 + $0x618] sm:$0xff] }
 0xfb1   : > { %v3864_v60 = vadd.f32 %v3863_v59, %v3623_v56 }
 0xfb2   : > { %v4024_v61 = vmax.f32 %v3838_v58, 0.0  ;;  %v9507_v58 = vld [vmem:[%s9734_s15 + $0x18] sm:$0xff] }
 0xfb3   : > { %v4026_v1 = vmax.f32 %v3864_v60, 0.0  ;;  %v7574_v60 = vld [vmem:[%s9735_s16 + $0x698] sm:$0xff] }
 0xfb4   : > { %v4297_v0 = vpack.c.bf16 %v4024_v61, %v4024_v61 }
 0xfb5   : > { %v4299_v7 = vpack.c.bf16 %v4026_v1, %v4026_v1  ;;  %v3824_v63 = vpop.f32.mrf.mxu3  ;;  %v7580_v1 = vld [vmem:[%s9735_s16 + $0x6c8] sm:$0xff] }
 0xfb6   : > { %v3825_v12 = vadd.f32 %v3824_v63, %v3620_v62  ;;  %v3850_v13 = vpop.f32.mrf.mxu2  ;;  %5106 = vmatmul.bf16.vlgmr.msra.gmra.mxu1 %v4297_v0  ;;  %v7564_v62 = vld [vmem:[%s9735_s16 + $0x648] sm:$0xff]  ;;  %v3631_v0 = vperm.slane %v9507_v58, 3  ;;  %v7573_v63 = vld [vmem:[%s9735_s16 + $0x690] sm:$0xff] }
 0xfb7   : > { %v3851_v11 = vadd.f32 %v3850_v13, %v3622_v3  ;;  %5132 = vmatmul.bf16.vlgmr.msrb.gmra.mxu0 %v4299_v7  ;;  %5202 = vmatpush.bf16.msra.mxu1 %v7570_v4  ;;  %v3839_v28 = vpop.f32.mrf.mxu1  ;;  %v3629_v3 = vperm.slane %v9507_v58, 1  ;;  %v7563_v13 = vld [vmem:[%s9735_s16 + $0x640] sm:$0xff] }
 0xfb8   : > { %v4023_v10 = vmax.f32 %v3825_v12, 0.0  ;;  %5228 = vmatpush.bf16.msrb.mxu0 %v7586_v6  ;;  %v3865_v17 = vpop.f32.mrf.mxu0  ;;  %v7557_v6 = vld [vmem:[%s9735_s16 + $0x610] sm:$0xff] }
 0xfb9   : > { %v4025_v19 = vmax.f32 %v3851_v11, 0.0 }
 0xfba   : > { %v4296_v14 = vpack.c.bf16 %v4023_v10, %v4023_v10  ;;  %v7602_v10 = vld [vmem:[%s9735_s16 + $0x778] sm:$0xff] }
 0xfbb   : > { %v4298_v23 = vpack.c.bf16 %v4025_v19, %v4025_v19  ;;  %5203 = vmatpush.bf16.msra.mxu1 %v7569_v15  ;;  %v7579_v15 = vld [vmem:[%s9735_s16 + $0x6c0] sm:$0xff]  ;;  %v7556_v19 = vld [vmem:[%s9735_s16 + $0x608] sm:$0xff] }
 0xfbc   : > { %5229 = vmatpush.bf16.msrb.mxu0 %v7585_v18  ;;  %5093 = vmatmul.bf16.vlgmr.msra.gmra.mxu3 %v4296_v14  ;;  %v7618_v18 = vld [vmem:[%s9735_s16 + $0x7f8] sm:$0xff]  ;;  %v7572_v14 = vld [vmem:[%s9735_s16 + $0x688] sm:$0xff] }
 0xfbd   : > { %5119 = vmatmul.bf16.vlgmr.msra.gmra.mxu2 %v4298_v23  ;;  %5189 = vmatpush.bf16.msra.mxu3 %v7562_v21  ;;  %v3826_v26 = vpop.f32.mrf.mxu3 }
 0xfbe   : > { %5215 = vmatpush.bf16.msra.mxu2 %v7578_v22  ;;  %v3852_v31 = vpop.f32.mrf.mxu2  ;;  %v3628_v22 = vperm.slane %v9507_v58, 0 }
 0xfbf   : > { %5204 = vmatpush.bf16.msra.mxu1 %v7568_v24  ;;  %v3889_v34 = vpop.f32.mrf.mxu1  ;;  %v3630_v24 = vperm.slane %v9507_v58, 2  ;;  %v7555_v31 = vld [vmem:[%s9735_s16 + $0x600] sm:$0xff] }
 0xfc0   : > { %5230 = vmatpush.bf16.msrb.mxu0 %v7584_v16  ;;  %v3890_v35 = vadd.f32 %v3889_v34, %v3625_v9  ;;  %v3915_v36 = vpop.f32.mrf.mxu0  ;;  %v7601_v9 = vld [vmem:[%s9735_s16 + $0x770] sm:$0xff] }
 0xfc1   : > { %v3916_v38 = vadd.f32 %v3915_v36, %v3627_v27  ;;  %5190 = vmatpush.bf16.msra.mxu3 %v7561_v30  ;;  %v7617_v30 = vld [vmem:[%s9735_s16 + $0x7f0] sm:$0xff] }
 0xfc2   : > { %v4028_v40 = vmax.f32 %v3890_v35, 0.0  ;;  %5216 = vmatpush.bf16.msra.mxu2 %v7577_v32  ;;  %v7594_v35 = vld [vmem:[%s9735_s16 + $0x738] sm:$0xff] }
 0xfc3   : > { %v4030_v43 = vmax.f32 %v3916_v38, 0.0  ;;  %5205 = vmatpush.bf16.msra.mxu1 %v7567_v29  ;;  %v7571_v29 = vld [vmem:[%s9735_s16 + $0x680] sm:$0xff]  ;;  %v7610_v38 = vld [vmem:[%s9735_s16 + $0x7b8] sm:$0xff] }
 0xfc4   : > { %v4301_v46 = vpack.c.bf16 %v4028_v40, %v4028_v40  ;;  %5231 = vmatpush.bf16.msrb.mxu0 %v7583_v37 }
 0xfc5   : > { %v4303_v47 = vpack.c.bf16 %v4030_v43, %v4030_v43  ;;  %5191 = vmatpush.bf16.msra.mxu3 %v7560_v39  ;;  %v3876_v48 = vpop.f32.mrf.mxu3  ;;  %v7616_v43 = vld [vmem:[%s9735_s16 + $0x7e8] sm:$0xff] }
 0xfc6   : > { %5217 = vmatpush.bf16.msra.mxu2 %v7576_v41  ;;  %v3877_v49 = vadd.f32 %v3876_v48, %v3624_v42  ;;  %v3902_v50 = vpop.f32.mrf.mxu2  ;;  %5158 = vmatmul.bf16.vlgmr.msrb.gmra.mxu1 %v4301_v46  ;;  %v7600_v41 = vld [vmem:[%s9735_s16 + $0x768] sm:$0xff] }
 0xfc7   : > { %v3903_v53 = vadd.f32 %v3902_v50, %v3626_v44  ;;  %5184 = vmatmul.bf16.vlgmr.msra.gmra.mxu0 %v4303_v47  ;;  %5206 = vmatpush.bf16.msra.mxu1 %v7566_v45  ;;  %v3891_v54 = vpop.f32.mrf.mxu1  ;;  %v7593_v45 = vld [vmem:[%s9735_s16 + $0x730] sm:$0xff]  ;;  %v7599_v47 = vld [vmem:[%s9735_s16 + $0x760] sm:$0xff]  ;;  %v7592_v50 = vld [vmem:[%s9735_s16 + $0x728] sm:$0xff] }
 0xfc8   : > { %v4027_v55 = vmax.f32 %v3877_v49, 0.0  ;;  %5232 = vmatpush.bf16.msrb.mxu0 %v7582_v20  ;;  %v3917_v33 = vpop.f32.mrf.mxu0  ;;  %v7609_v20 = vld [vmem:[%s9735_s16 + $0x7b0] sm:$0xff] }
 0xfc9   : > { %v4029_v56 = vmax.f32 %v3903_v53, 0.0  ;;  %5192 = vmatpush.bf16.msra.mxu3 %v7559_v5  ;;  %v7615_v5 = vld [vmem:[%s9735_s16 + $0x7e0] sm:$0xff]  ;;  %v7608_v53 = vld [vmem:[%s9735_s16 + $0x7a8] sm:$0xff] }
 0xfca   : > { %v4300_v59 = vpack.c.bf16 %v4027_v55, %v4027_v55  ;;  %5218 = vmatpush.bf16.msra.mxu2 %v7575_v52  ;;  %v7614_v55 = vld [vmem:[%s9735_s16 + $0x7d8] sm:$0xff]  ;;  %v7591_v33 = vld [vmem:[%s9735_s16 + $0x720] sm:$0xff] }
 0xfcb   : > { %v4302_v61 = vpack.c.bf16 %v4029_v56, %v4029_v56  ;;  %5207 = vmatpush.bf16.msra.mxu1 %v7565_v25  ;;  %v7598_v25 = vld [vmem:[%s9735_s16 + $0x758] sm:$0xff]  ;;  %v7597_v56 = vld [vmem:[%s9735_s16 + $0x750] sm:$0xff] }
 0xfcc   : > { %5233 = vmatpush.bf16.msrb.mxu0 %v7581_v2  ;;  %5145 = vmatmul.bf16.vlgmr.msrb.gmra.mxu3 %v4300_v59  ;;  %v7607_v2 = vld [vmem:[%s9735_s16 + $0x7a0] sm:$0xff] }
 0xfcd   : > { %5171 = vmatmul.bf16.vlgmr.msrb.gmra.mxu2 %v4302_v61  ;;  %5193 = vmatpush.bf16.msra.mxu3 %v7558_v57  ;;  %v3878_v4 = vpop.f32.mrf.mxu3  ;;  %v3633_v57 = vperm.slane %v9507_v58, 5  ;;  %v3635_v61 = vperm.slane %v9507_v58, 7 }
 0xfce   : > { %5219 = vmatpush.bf16.msra.mxu2 %v7574_v60  ;;  %v3904_v7 = vpop.f32.mrf.mxu2  ;;  %v7613_v60 = vld [vmem:[%s9735_s16 + $0x7d0] sm:$0xff]  ;;  %v7606_v4 = vld [vmem:[%s9735_s16 + $0x798] sm:$0xff] }
 0xfcf   : > { %5208 = vmatpush.bf16.msra.mxu1 %v7564_v62  ;;  %v3941_v12 = vpop.f32.mrf.mxu1 }
 0xfd0   : > { %5234 = vmatpush.bf16.msrb.mxu0 %v7580_v1  ;;  %v3942_v11 = vadd.f32 %v3941_v12, %v3629_v3  ;;  %v3967_v28 = vpop.f32.mrf.mxu0  ;;  %v7590_v1 = vld [vmem:[%s9735_s16 + $0x718] sm:$0xff] }
 0xfd1   : > { %v3968_v17 = vadd.f32 %v3967_v28, %v3631_v0  ;;  %5194 = vmatpush.bf16.msra.mxu3 %v7557_v6  ;;  %v7596_v6 = vld [vmem:[%s9735_s16 + $0x748] sm:$0xff]  ;;  %v7605_v28 = vld [vmem:[%s9735_s16 + $0x790] sm:$0xff] }
 0xfd2   : > { %v4032_v21 = vmax.f32 %v3942_v11, 0.0  ;;  %5220 = vmatpush.bf16.msra.mxu2 %v7573_v63  ;;  %v7612_v63 = vld [vmem:[%s9735_s16 + $0x7c8] sm:$0xff]  ;;  %v3632_v11 = vperm.slane %v9507_v58, 4 }
 0xfd3   : > { %v4034_v23 = vmax.f32 %v3968_v17, 0.0  ;;  %5209 = vmatpush.bf16.msra.mxu1 %v7563_v13  ;;  %v7589_v13 = vld [vmem:[%s9735_s16 + $0x710] sm:$0xff] }
 0xfd4   : > { %v4305_v16 = vpack.c.bf16 %v4032_v21, %v4032_v21  ;;  %5235 = vmatpush.bf16.msrb.mxu0 %v7579_v15  ;;  %v3634_v15 = vperm.slane %v9507_v58, 6 }
 0xfd5   : > { %v4307_v26 = vpack.c.bf16 %v4034_v23, %v4034_v23  ;;  %5195 = vmatpush.bf16.msra.mxu3 %v7556_v19  ;;  %v3928_v27 = vpop.f32.mrf.mxu3  ;;  %v7611_v19 = vld [vmem:[%s9735_s16 + $0x7c0] sm:$0xff]  ;;  %v7604_v23 = vld [vmem:[%s9735_s16 + $0x788] sm:$0xff] }
 0xfd6   : > { %5221 = vmatpush.bf16.msra.mxu2 %v7572_v14  ;;  %v3929_v32 = vadd.f32 %v3928_v27, %v3628_v22  ;;  %v3954_v34 = vpop.f32.mrf.mxu2  ;;  %5210 = vmatmul.bf16.vlgmr.msra.gmra.mxu1 %v4305_v16  ;;  %v7588_v22 = vld [vmem:[%s9735_s16 + $0x708] sm:$0xff] }
 0xfd7   : > { %5254 = vmatpush.bf16.msrb.mxu1 %v7602_v10  ;;  %v3955_v36 = vadd.f32 %v3954_v34, %v3630_v24  ;;  %5236 = vmatmul.bf16.vlgmr.msrb.gmra.mxu0 %v4307_v26  ;;  %v3943_v37 = vpop.f32.mrf.mxu1  ;;  %v7595_v10 = vld [vmem:[%s9735_s16 + $0x740] sm:$0xff] }
 0xfd8   : > { %5280 = vmatpush.bf16.msra.mxu0 %v7618_v18  ;;  %v4031_v39 = vmax.f32 %v3929_v32, 0.0  ;;  %v3969_v40 = vpop.f32.mrf.mxu0  ;;  %v7587_v26 = vld [vmem:[%s9735_s16 + $0x700] sm:$0xff] }
 0xfd9   : > { %v4033_v42 = vmax.f32 %v3955_v36, 0.0  ;;  %5196 = vmatpush.bf16.msra.mxu3 %v7555_v31 }
 0xfda   : > { %v4304_v44 = vpack.c.bf16 %v4031_v39, %v4031_v39  ;;  %5222 = vmatpush.bf16.msra.mxu2 %v7571_v29 }
 0xfdb   : > { %5255 = vmatpush.bf16.msrb.mxu1 %v7601_v9  ;;  %v4306_v46 = vpack.c.bf16 %v4033_v42, %v4033_v42 }
 0xfdc   : > { %5281 = vmatpush.bf16.msra.mxu0 %v7617_v30  ;;  %5197 = vmatmul.bf16.vlgmr.msra.gmra.mxu3 %v4304_v44  ;;  %v7603_v30 = vld [vmem:[%s9735_s16 + $0x780] sm:$0xff] }
 0xfdd   : > { %5241 = vmatpush.bf16.msrb.mxu3 %v7594_v35  ;;  %5223 = vmatmul.bf16.vlgmr.msra.gmra.mxu2 %v4306_v46  ;;  %v3930_v48 = vpop.f32.mrf.mxu3  ;;  %v7690_v46 = vld [vmem:[%s9736_s17 + $0x1] ss:$0 sm:$0xff] }
 0xfde   : > { %5267 = vmatpush.bf16.msrb.mxu2 %v7610_v38  ;;  %v3956_v49 = vpop.f32.mrf.mxu2 }
 0xfdf   : > { %5256 = vmatpush.bf16.msrb.mxu1 %v7600_v41  ;;  %v3993_v52 = vpop.f32.mrf.mxu1 }
 0xfe0   : > { %5282 = vmatpush.bf16.msra.mxu0 %v7616_v43  ;;  %v4019_v54 = vpop.f32.mrf.mxu0  ;;  %v3994_v7 = vadd.f32 %v3993_v52, %v3633_v57 }
 0xfe1   : > { %5242 = vmatpush.bf16.msrb.mxu3 %v7593_v45  ;;  %v4020_v12 = vadd.f32 %v4019_v54, %v3635_v61 }
 0xfe2   : > { %5268 = vmatpush.bf16.msrb.mxu2 %v7609_v20  ;;  %v4036_v17 = vmax.f32 %v3994_v7, 0.0 }
 0xfe3   : > { %5257 = vmatpush.bf16.msrb.mxu1 %v7599_v47  ;;  %v4038_v21 = vmax.f32 %v4020_v12, 0.0 }
 0xfe4   : > { %5283 = vmatpush.bf16.msra.mxu0 %v7615_v5  ;;  %v4309_v16 = vpack.c.bf16 %v4036_v17, %v4036_v17 }
 0xfe5   : > { %5243 = vmatpush.bf16.msrb.mxu3 %v7592_v50  ;;  %v3980_v59 = vpop.f32.mrf.mxu3  ;;  %v4311_v9 = vpack.c.bf16 %v4038_v21, %v4038_v21 }
 0xfe6   : > { %5269 = vmatpush.bf16.msrb.mxu2 %v7608_v53  ;;  %v4006_v62 = vpop.f32.mrf.mxu2  ;;  %v3981_v58 = vadd.f32 %v3980_v59, %v3632_v11 }
 0xfe7   : > { %5258 = vmatpush.bf16.msrb.mxu1 %v7598_v25  ;;  %v3995_v3 = vpop.f32.mrf.mxu1  ;;  %v4007_v24 = vadd.f32 %v4006_v62, %v3634_v15 }
 0xfe8   : > { %5284 = vmatpush.bf16.msra.mxu0 %v7614_v55  ;;  %v4021_v0 = vpop.f32.mrf.mxu0  ;;  %v4035_v27 = vmax.f32 %v3981_v58, 0.0 }
 0xfe9   : > { %5244 = vmatpush.bf16.msrb.mxu3 %v7591_v33  ;;  %v4037_v31 = vmax.f32 %v4007_v24, 0.0 }
 0xfea   : > { %5270 = vmatpush.bf16.msrb.mxu2 %v7607_v2  ;;  %v4308_v32 = vpack.c.bf16 %v4035_v27, %v4035_v27 }
 0xfeb   : > { %5259 = vmatpush.bf16.msrb.mxu1 %v7597_v56  ;;  %v4310_v34 = vpack.c.bf16 %v4037_v31, %v4037_v31 }
 0xfec   : > { %5285 = vmatpush.bf16.msra.mxu0 %v7613_v60 }
 0xfed   : > { %5245 = vmatpush.bf16.msrb.mxu3 %v7590_v1  ;;  %v3982_v18 = vpop.f32.mrf.mxu3 }
 0xfee   : > { %5271 = vmatpush.bf16.msrb.mxu2 %v7606_v4  ;;  %v4008_v14 = vpop.f32.mrf.mxu2 }
 0xfef   : > { %5260 = vmatpush.bf16.msrb.mxu1 %v7596_v6 }
 0xff0   : > { %5286 = vmatpush.bf16.msra.mxu0 %v7612_v63 }
 0xff1   : > { %5246 = vmatpush.bf16.msrb.mxu3 %v7589_v13 }
 0xff2   : > { %5272 = vmatpush.bf16.msrb.mxu2 %v7605_v28 }
 0xff3   : > { %5261 = vmatpush.bf16.msrb.mxu1 %v7595_v10 }
 0xff4   : > { %5287 = vmatpush.bf16.msra.mxu0 %v7611_v19 }
 0xff5   : > { %5247 = vmatpush.bf16.msrb.mxu3 %v7588_v22 }
 0xff6   : > { %5273 = vmatpush.bf16.msrb.mxu2 %v7604_v23  ;;  %5262 = vmatmul.bf16.vlgmr.msrb.gmra.mxu1 %v4309_v16 }
 0xff7   : > { %5288 = vmatmul.bf16.vlgmr.msra.gmra.mxu0 %v4311_v9 }
 0xff9   : > { %5248 = vmatpush.bf16.msrb.mxu3 %v7587_v26 }
 0xffa   : > { %5274 = vmatpush.bf16.msrb.mxu2 %v7603_v30 }
 0xffc   : > { %5249 = vmatmul.bf16.vlgmr.msrb.gmra.mxu3 %v4308_v32 }
 0xffd   : > { %5275 = vmatmul.bf16.vlgmr.msrb.gmra.mxu2 %v4310_v34 }
0x1033   : > { %v5107_v29 = vpop.f32.mrf.mxu1 }
0x1034   : > { %v5133_v35 = vpop.f32.mrf.mxu0 }
0x103b   : > { %v5109_v36 = vpop.f32.mrf.mxu1 }
0x103c   : > { %v5135_v37 = vpop.f32.mrf.mxu0  ;;  %v7691_v36 = vld [vmem:[%s9731_s12 + $0x6] ss:$0 sm:$0xff] }
0x103f   : > { %v5094_v38 = vpop.f32.mrf.mxu3 }
0x1040   : > { %v5120_v39 = vpop.f32.mrf.mxu2  ;;  %v5095_v48 = vadd.f32 %v7690_v46, %v5094_v38 }
0x1042   : > { %v5108_v50 = vadd.f32 %v5107_v29, %v5095_v48  ;;  %v7619_v48 = vld [vmem:[%s9739_s20] sm:$0xff] }
0x1043   : > { %v5159_v40 = vpop.f32.mrf.mxu1 }
0x1044   : > { %v5185_v41 = vpop.f32.mrf.mxu0  ;;  %v5121_v54 = vadd.f32 %v5120_v39, %v5108_v50  ;;  %v7692_v39 = vld [vmem:[%s9732_s13 + $0x6] ss:$0 sm:$0xff] }
0x1046   : > { %v5134_v33 = vadd.f32 %v5133_v35, %v5121_v54 }
0x1047   : > { %v5096_v42 = vpop.f32.mrf.mxu3 }
0x1048   : > { %v5122_v43 = vpop.f32.mrf.mxu2 }
0x104b   : > { %v5161_v44 = vpop.f32.mrf.mxu1 }
0x104c   : > { %v5187_v45 = vpop.f32.mrf.mxu0 }
0x104f   : > { %v5146_v20 = vpop.f32.mrf.mxu3 }
0x1050   : > { %v5172_v47 = vpop.f32.mrf.mxu2  ;;  %v5147_v57 = vadd.f32 %v5146_v20, %v5134_v33 }
0x1052   : > { %v5160_v59 = vadd.f32 %v5159_v40, %v5147_v57 }
0x1053   : > { %v5211_v5 = vpop.f32.mrf.mxu1 }
0x1054   : > { %v5237_v49 = vpop.f32.mrf.mxu0  ;;  %v5173_v62 = vadd.f32 %v5172_v47, %v5160_v59  ;;  %v7620_v47 = vld [vmem:[%s9739_s20 + $0x8] sm:$0xff] }
0x1055   : > { %5384 = vmatpush.bf16.msra.mxu3 %v7620_v47 }
0x1056   : > { %v5186_v1 = vadd.f32 %v5185_v41, %v5173_v62 }
0x1057   : > { %v5148_v52 = vpop.f32.mrf.mxu3 }
0x1058   : > { %v5174_v53 = vpop.f32.mrf.mxu2 }
0x1059   : > { %5385 = vmatpush.bf16.msra.mxu3 %v7619_v48 }
0x105b   : > { %v5213_v25 = vpop.f32.mrf.mxu1 }
0x105c   : > { %v5239_v55 = vpop.f32.mrf.mxu0 }
0x105f   : > { %v5198_v2 = vpop.f32.mrf.mxu3 }
0x1060   : > { %v5224_v56 = vpop.f32.mrf.mxu2  ;;  %v5199_v3 = vadd.f32 %v5198_v2, %v5186_v1  ;;  %v7693_v2 = vld [vmem:[%s9830_s27] ss:$0 sm:$0xff]  ;;  %s7758_s27 = sshra.s32 %s5418_s25, 4  ;;  %s7759_s27 = int_to_ptr.hbm [resolvable:$true] %s7758_s27 }
0x1061   : > { %s7760_s21 = scalar_lea.hbm %s7759_s27, 1  ;;  %p7765_p0 = scmp.lt.s32.totalorder %s7759_s27, %s9833_s7 }
0x1062   : > { %v5212_v6 = vadd.f32 %v5211_v5, %v5199_v3  ;;  %p7761_p11 = scmp.ne.s32.totalorder %s7759_s27, %s7760_s21  ;;  %p7766_p1 = scmp.lt.s32.totalorder %s7764_s0, %s7760_s21 }
0x1064   : > { %v5225_v7 = vadd.f32 %v5224_v56, %v5212_v6  ;;  %p7762_p12 = pnand %p7761_p11, %p7986_p5  ;;  %p7767_p2 = por %p7766_p1, %p7765_p0 }
0x1066   : > { %v5238_v13 = vadd.f32 %v5237_v49, %v5225_v7  ;;  %p7763_p13 = pneg %p7762_p12 }
0x1067   : > { %v5200_v60 = vpop.f32.mrf.mxu3 }
0x1068   : > { %v5226_v61 = vpop.f32.mrf.mxu2  ;;  %p7768_p3 = pnand %p7767_p2, %p7763_p13 }
0x1073   : > { %v5263_v4 = vpop.f32.mrf.mxu1 }
0x1074   : > { %v5289_v0 = vpop.f32.mrf.mxu0 }
0x107b   : > { %v5265_v63 = vpop.f32.mrf.mxu1 }
0x107c   : > { %v5291_v12 = vpop.f32.mrf.mxu0 }
0x107f   : > { %v5250_v11 = vpop.f32.mrf.mxu3 }
0x1080   : > { %v5251_v28 = vadd.f32 %v5250_v11, %v5238_v13  ;;  %v5276_v15 = vpop.f32.mrf.mxu2 }
0x1082   : > { %v5264_v10 = vadd.f32 %v5263_v4, %v5251_v28 }
0x1084   : > { %v5277_v17 = vadd.f32 %v5276_v15, %v5264_v10 }
0x1086   : > { %v5290_v18 = vadd.f32 %v5289_v0, %v5277_v17 }
0x1087   : > { %v5252_v19 = vpop.f32.mrf.mxu3 }
0x1088   : > { %v5278_v21 = vpop.f32.mrf.mxu2  ;;  %v5293_v14 = vadd.f32 %v5290_v18, %v9117_v8 }
0x108a   : > { %v5296_v22 = vsel %vm829_vm0, %v5293_v14, 0.0 }
0x108b   : > { %5297 = vadd.xlane.f32.xlu1 %v5296_v22 }
0x10fe   : > { %v5298_v58 = vpop.xlane.xlu1 %5297 }
0x10ff   : > { %v5299_v23 = vmul.f32 %v5298_v58, %v8170_v51 }
0x1101   : > { %v5300_v24 = vsub.f32 %v5293_v14, %v5299_v23 }
0x1103   : > { %v5301_v16 = vmul.f32 %v5300_v24, %v5300_v24 }
0x1105   : > { %v5302_v9 = vsel %vm829_vm0, %v5301_v16, 0.0 }
0x1106   : > { %5303 = vadd.xlane.f32.xlu0 %v5302_v9 }
0x1179   : > { %v5304_v26 = vpop.xlane.xlu0 %5303 }
0x117a   : > { %v5305_v27 = vmul.f32 %v5304_v26, %v8170_v51 }
0x117c   : > { %v5306_v30 = vadd.f32 1e-05, %v5305_v27 }
0x117e   : > { %7740 = vrsqrt.f32 %v5306_v30  ;;  %vm5313_vm10 = vweird.f32 %v5306_v30 }
0x1184   : > { %v7741_v31 = vpop.eup %7740 }
0x1185   : > { %v5308_v32 = vmul.f32 %v7741_v31, %v5306_v30  ;;  %vm5314_vm9 = vweird.f32 %v7741_v31 }
0x1186   : > { %vm5315_vm11 = vmor %vm5313_vm10, %vm5314_vm9 }
0x1187   : > { %v5309_v34 = vmul.f32 %v7741_v31, %v5308_v32 }
0x1189   : > { %v5310_v8 = vmul.f32 0.5, %v5309_v34 }
0x118b   : > { %v5311_v29 = vsub.f32 1.5, %v5310_v8 }
0x118d   : > { %v5312_v35 = vmul.f32 %v7741_v31, %v5311_v29 }
0x118f   : > { %v5316_v37 = vsel %vm5315_vm11, %v7741_v31, %v5312_v35 }
0x1190   : > { %v5317_v38 = vmul.f32 %v5316_v37, %v5300_v24 }
0x1192   : > { %v5319_v40 = vmul.f32 %v7691_v36, %v5317_v38 }
0x1194   : > { %v5321_v41 = vadd.f32 %v7692_v39, %v5319_v40 }
0x1196   : > { %v5324_v42 = vsel %vm829_vm0, %v5321_v41, 0.0 }
0x1197   : > { %5325 = vadd.xlane.f32.xlu2 %v5324_v42 }
0x120a   : > { %v5326_v43 = vpop.xlane.xlu2 %5325 }
0x120b   : > { %v5327_v44 = vmul.f32 %v5326_v43, %v8170_v51 }
0x120d   : > { %v5328_v45 = vsub.f32 %v5321_v41, %v5327_v44 }
0x120f   : > { %v5329_v46 = vmul.f32 %v5328_v45, %v5328_v45 }
0x1211   : > { %v5330_v20 = vsel %vm829_vm0, %v5329_v46, 0.0 }
0x1212   : > { %5331 = vadd.xlane.f32.xlu1 %v5330_v20 }
0x1285   : > { %v5332_v5 = vpop.xlane.xlu1 %5331 }
0x1286   : > { %v5333_v49 = vmul.f32 %v5332_v5, %v8170_v51  ;;  %v7694_v51 = vld [vmem:[%s9831_s19] ss:$0 sm:$0xff] }
0x1288   : > { %v5334_v50 = vadd.f32 1e-05, %v5333_v49 }
0x128a   : > { %7742 = vrsqrt.f32 %v5334_v50  ;;  %vm5341_vm6 = vweird.f32 %v5334_v50 }
0x1290   : > { %v7743_v52 = vpop.eup %7742 }
0x1291   : > { %v5336_v53 = vmul.f32 %v7743_v52, %v5334_v50  ;;  %vm5342_vm12 = vweird.f32 %v7743_v52 }
0x1292   : > { %vm5343_vm14 = vmor %vm5341_vm6, %vm5342_vm12 }
0x1293   : > { %v5337_v54 = vmul.f32 %v7743_v52, %v5336_v53 }
0x1295   : > { %v5338_v25 = vmul.f32 0.5, %v5337_v54 }
0x1297   : > { %v5339_v55 = vsub.f32 1.5, %v5338_v25 }
0x1299   : > { %v5340_v33 = vmul.f32 %v7743_v52, %v5339_v55 }
0x129b   : > { %v5344_v56 = vsel %vm5343_vm14, %v7743_v52, %v5340_v33 }
0x129c   : > { %v5345_v57 = vmul.f32 %v5344_v56, %v5328_v45 }
0x129e   : > { %v5349_v59 = vmul.f32 %v7693_v2, %v5345_v57 }
0x12a0   : > { %v5353_v60 = vadd.f32 %v7694_v51, %v5349_v59 }
0x12a2   : > { %v5358_v61 = vpack.c.bf16 %v5353_v60, %v5353_v60 }
0x12a4   : > { %7278 = vmatmul.msk.bf16.vlgmr.msra.gmra.mxu3 %vm829_vm0, %v5358_v61 }
0x12a5   : > { %7771 = shalt.err (!%p7768_p3)
}
0x12a6   : > { %s9835_s6 = sld [smem:[#allocation12_spill]] }
0x12a7   : > { %7621 = dma.vmem_to_hbm [thread:$0]  (%p7986_p5), %s5416_s24, 16, %s5418_s25, %s5397_s8  }
0x12a8   : > { %s9836_s28 = sld [smem:[#allocation24_spill]] }
0x12a9   : > { %s9838_s19 = sld [smem:[#allocation25_spill]] }
0x12ac   : > { %s9837_s22 = sshll.u32 %s9835_s6, 3 }
0x12ae   : > { %v7695_v62 = vld [vmem:[%s9836_s28] ss:$0 sm:$0xff] }
0x12af   : > { %s763_s4 = scalar_lea.vmem %s9838_s19, %s9837_s22 }
0x1327   : > { %v5387_v1 = vpop.f32.mrf.mxu3 }
0x1328   : > { %v5388_v3 = vadd.f32 %v7695_v62, %v5387_v1 }
0x132a   : > { %5391 = vst [vmem:[%s763_s4] sm:$0xff] %v5388_v3 }
0x132f   : > { %v5389_v4 = vpop.f32.mrf.mxu3 }
0x1330 PF: > { %s9839_s1 = sld [smem:[#allocation7_spill]] }
0x1331   : > { %s9840_s0 = sld [smem:[#allocation5_spill]] }
0x1336   : > { %p7627_p4 = scmp.ge.s32.totalorder %s9839_s1, 2 }
0x1337   : > { %s5439_s29 = sand.u32 1, %s9840_s0  }
0x1338   : > { %p7624_p5 = pnand %p7627_p4, %p7990_p6  ;;  %s5440_s24 = scalar_lea.sflag [#allocation3], %s5439_s29 }
0x133a   : > { %p7625_p7 = pneg %p7624_p5 }
0x133c   : > { %7789 = dma.done.wait (%p7625_p7), %s5440_s24, 16  }
0x133d   : > { %7791 = vsyncadd (%p7625_p7), %s5440_s24, 4294967280  ;;  %s9842_s28 = sld [smem:[#allocation8_spill]]  ;;  %s9845_s5 = smov %s7798_s26 }
0x133e   : > { %s9843_s2 = sld [smem:[#allocation6_spill]] }
0x133f   : > { %s9844_s27 = sld [smem:[#allocation9_spill]] }
0x1343   : > { %p35_p8 = scmp.ge.s32.totalorder %s9842_s28, 4  }
0x1344   : > { %s9846_s26 = smov %s9843_s2 }
0x1345   :  { %37 = sbr.rel (!%p35_p8) target bundleno = 19 (0x13), region = 191 }
0x134a   :  { %5453 = vsyncpa [#allocation3], 1 }
0x134b   :  { %5455 = vsyncpa [#allocation3 + $0x1], 1 }

</bundles_post_ra>
